<compile_context>
chip_gen: v5e
topology: v5e:2x2
jax: 0.10.0
libtpu: 0.0.40
codegen_flags: <defaults>
</compile_context>

<pallas_src>
import math

import jax
import jax.numpy as jnp
from jax.experimental import pallas as pl
from jax.experimental.pallas import tpu as pltpu

# Real (PyTorch) feature sizes.
DX = 307                       # input features
D1, D2, D3, D4 = 400, 300, 200, 1

# Lane-aligned padded sizes (multiples of 128).
KX = 384
N1, N2, N3 = 512, 384, 256

# Column offsets of each segment inside the resident activation buffer
# [ x | h1 | h2 ]  (h3 is never stored: layer 4 consumes it straight from
# the value computed in layer 3).
OFF_X = 0
OFF_1 = KX                      # 384
OFF_2 = KX + N1                 # 896
OFF_3 = KX + N1 + N2            # 1280  (acts scratch width)
K_TOT = KX + N1 + N2 + N3       # 1536  (folded layer-4 weight-row width)


# ---------------------------------------------------------------------------
# Kernel: whole 4-layer MLP for one batch tile.
# ---------------------------------------------------------------------------
def _fused_mlp_kernel(x_ref, w1_ref, w2_ref, w3_ref, vecs_ref, o_ref, acts_ref):
    # vecs_ref (f32, (8, K_TOT)):
    #   row 0: b1 (padded)     row 1: b2 folded     row 2: b3 folded
    #   row 3: b4 folded scalar at col 0
    #   row 4: folded layer-4 weight row over [ x | h1 | h2 | h3 ] columns.

    # Input tile is already bf16 + zero-padded; keep it in a value (register /
    # compiler temp) and also stage it into the resident activation buffer.
    xb = x_ref[...]                                   # bf16 (bt, KX)
    acts_ref[:, OFF_X:OFF_1] = xb

    # Layer 1: h1 = relu(x @ W1 + b1)
    y1 = jnp.dot(xb, w1_ref[...], preferred_element_type=jnp.float32)
    h1 = jnp.maximum(y1 + vecs_ref[0:1, :N1], 0.0).astype(jnp.bfloat16)
    acts_ref[:, OFF_1:OFF_2] = h1

    # Layer 2: h2 = relu([x, bn1(h1)] @ W2 + b2)   (bn1 folded into W2/b2)
    # Split dot: x-prefix and fresh h1 both come from values, not the scratch,
    # so there is no store->load dependency stalling the MXU.
    y2 = (jnp.dot(xb, w2_ref[:OFF_1, :], preferred_element_type=jnp.float32)
          + jnp.dot(h1, w2_ref[OFF_1:, :], preferred_element_type=jnp.float32))
    h2 = jnp.maximum(y2 + vecs_ref[1:2, :N2], 0.0).astype(jnp.bfloat16)
    acts_ref[:, OFF_2:OFF_3] = h2

    # Layer 3: h3 = relu([x, bn1(h1), bn2(h2)] @ W3 + b3)
    # Prefix [x|h1] was stored a full layer ago; fresh h2 comes from the value.
    y3 = (jnp.dot(acts_ref[:, :OFF_2], w3_ref[:OFF_2, :],
                  preferred_element_type=jnp.float32)
          + jnp.dot(h2, w3_ref[OFF_2:, :], preferred_element_type=jnp.float32))
    h3 = jnp.maximum(y3 + vecs_ref[2:3, :N3], 0.0)    # stays f32 for the reduce

    # Layer 4: single real output column -> VPU multiply + lane reduction
    # against the folded f32 weight row (no padded MXU matmul, no 384 KB W4
    # stream).  Padded columns of acts / h3 / the weight row are all zero.
    w4_pref = vecs_ref[4:5, :OFF_3]                   # f32 (1, OFF_3)
    w4_h3 = vecs_ref[4:5, OFF_3:K_TOT]                # f32 (1, N3)
    y4 = jnp.sum(acts_ref[...].astype(jnp.float32) * w4_pref,
                 axis=-1, keepdims=True)
    y4 = y4 + jnp.sum(h3 * w4_h3, axis=-1, keepdims=True)
    o_ref[...] = (y4 + vecs_ref[3:4, 0:1]).astype(o_ref.dtype)


def _choose_batch_tile(batch):
    # bf16 activations pack (16, 128) per vreg -> tile must be a multiple of 16.
    # Big tiles amortize the ~0.35 us per-grid-step overhead and the serial
    # inter-layer epilogue bubbles; cap at 1024 rows (~12-18 MB VMEM including
    # f32 temporaries, comfortably under the 32 MiB scoped limit and v7x's
    # 64 MiB physical VMEM).  For batches above one tile, pick the tile as
    # round_up(cdiv(B,2),16) so there are always >=2 grid steps: with
    # dimension_semantics=("parallel",) that keeps both v7x TensorCores busy.
    if batch <= 16:
        return 16
    cap = 1024
    half = ((batch + 1) // 2 + 15) // 16 * 16
    return min(cap, half)


@jax.jit
def purple_teletubbies_forward(kernel_params, x):
    """x: [B, 307] f32 -> [B, 1] f32 (eval-mode forward)."""
    w1, w2, w3, vecs = kernel_params
    batch = x.shape[0]
    bt = _choose_batch_tile(batch)
    b_pad = -(-batch // bt) * bt

    # Pad + cast to bf16 outside the kernel: halves the input DMA per tile.
    x_pad = (jnp.zeros((b_pad, KX), jnp.bfloat16)
             .at[:batch, :DX].set(x.astype(jnp.bfloat16)))

    out = pl.pallas_call(
        _fused_mlp_kernel,
        out_shape=jax.ShapeDtypeStruct((b_pad, 1), jnp.float32),
        grid=(b_pad // bt,),
        in_specs=[
            pl.BlockSpec((bt, KX), lambda i: (i, 0)),        # x batch tile (bf16)
            pl.BlockSpec((KX, N1), lambda i: (0, 0)),        # W1 (resident)
            pl.BlockSpec((OFF_2, N2), lambda i: (0, 0)),     # W2 (resident)
            pl.BlockSpec((OFF_3, N3), lambda i: (0, 0)),     # W3 (resident)
            pl.BlockSpec((8, K_TOT), lambda i: (0, 0)),      # biases + W4 row (f32)
        ],
        out_specs=pl.BlockSpec((bt, 1), lambda i: (i, 0)),   # 4 B/row writeback
        scratch_shapes=[pltpu.VMEM((bt, OFF_3), jnp.bfloat16)],
        compiler_params=pltpu.CompilerParams(
            dimension_semantics=("parallel",),   # batch tiles -> both TCs on v7x
            vmem_limit_bytes=32 * 1024 * 1024,
        ),
    )(x_pad, w1, w2, w3, vecs)

    return out[:batch, :]


# ---------------------------------------------------------------------------
# Parameter construction (deterministic, PyTorch-default-like init).
# ---------------------------------------------------------------------------
def _linear_params(key, in_f, out_f):
    kw, kb = jax.random.split(key)
    bound = 1.0 / math.sqrt(in_f)
    # Stored as [in, out] so forward is x @ W (PyTorch keeps [out, in]).
    w = jax.random.uniform(kw, (in_f, out_f), jnp.float32, -bound, bound)
    b = jax.random.uniform(kb, (out_f,), jnp.float32, -bound, bound)
    return w, b


def _bn_params(key, n, eps=1e-5):
    kg, kb = jax.random.split(key)
    gamma = jax.random.uniform(kg, (n,), jnp.float32, 0.5, 1.5)
    beta = jax.random.uniform(kb, (n,), jnp.float32, -0.5, 0.5)
    running_mean = jnp.zeros((n,), jnp.float32)
    running_var = jnp.ones((n,), jnp.float32)
    scale = gamma / jnp.sqrt(running_var + eps)   # eval-mode BN -> affine
    shift = beta - running_mean * scale
    return scale, shift


def init_params(seed=0):
    keys = jax.random.split(jax.random.PRNGKey(seed), 7)
    return {
        "fc1": _linear_params(keys[0], DX, D1),
        "bn1": _bn_params(keys[1], D1),
        "fc2": _linear_params(keys[2], DX + D1, D2),
        "bn2": _bn_params(keys[3], D2),
        "fc3": _linear_params(keys[4], DX + D1 + D2, D3),
        "bn3": _bn_params(keys[5], D3),
        "fc4": _linear_params(keys[6], DX + D1 + D2 + D3, D4),
    }


def prepare_kernel_params(params):
    """Fold eval-mode BN into downstream weights/biases, pad to the lane-aligned
    concatenated layout, cast the MXU weights to bf16 (biases and the folded
    layer-4 weight row stay f32)."""
    w1, b1 = params["fc1"]
    s1, t1 = params["bn1"]
    w2, b2 = params["fc2"]
    s2, t2 = params["bn2"]
    w3, b3 = params["fc3"]
    s3, t3 = params["bn3"]
    w4, b4 = params["fc4"]

    # Split each weight along the input dim into segments [x | x1 | x2 | x3].
    w2x, w2h1 = w2[:DX], w2[DX:]
    w3x, w3h1, w3h2 = w3[:DX], w3[DX:DX + D1], w3[DX + D1:]
    w4x, w4h1, w4h2, w4h3 = (w4[:DX], w4[DX:DX + D1],
                             w4[DX + D1:DX + D1 + D2], w4[DX + D1 + D2:])

    # (h*s + t) @ W  ==  h @ (s[:,None]*W) + (t @ W): fold BN affine downstream.
    b2f = b2 + t1 @ w2h1
    b3f = b3 + t1 @ w3h1 + t2 @ w3h2
    b4f = b4 + t1 @ w4h1 + t2 @ w4h2 + t3 @ w4h3

    def build(rows, cols, placements):
        w = jnp.zeros((rows, cols), jnp.float32)
        for off, blk in placements:
            w = w.at[off:off + blk.shape[0], :blk.shape[1]].set(blk)
        return w.astype(jnp.bfloat16)

    W1 = build(KX, N1, [(OFF_X, w1)])
    W2 = build(OFF_2, N2, [(OFF_X, w2x), (OFF_1, s1[:, None] * w2h1)])
    W3 = build(OFF_3, N3, [(OFF_X, w3x), (OFF_1, s1[:, None] * w3h1),
                           (OFF_2, s2[:, None] * w3h2)])

    # Folded layer-4 weights as a single f32 row over the padded concatenated
    # layout (one real output column -> computed on the VPU in-kernel).
    w4row = jnp.zeros((K_TOT,), jnp.float32)
    w4row = w4row.at[OFF_X:OFF_X + DX].set(w4x[:, 0])
    w4row = w4row.at[OFF_1:OFF_1 + D1].set((s1[:, None] * w4h1)[:, 0])
    w4row = w4row.at[OFF_2:OFF_2 + D2].set((s2[:, None] * w4h2)[:, 0])
    w4row = w4row.at[OFF_3:OFF_3 + D3].set((s3[:, None] * w4h3)[:, 0])

    vecs = jnp.zeros((8, K_TOT), jnp.float32)
    vecs = vecs.at[0, :D1].set(b1)
    vecs = vecs.at[1, :D2].set(b2f)
    vecs = vecs.at[2, :D3].set(b3f)
    vecs = vecs.at[3, 0].set(b4f[0])
    vecs = vecs.at[4, :].set(w4row)

    return W1, W2, W3, vecs


# ---------------------------------------------------------------------------
# Pure-JAX f32 reference (mirrors the PyTorch eval forward exactly).
# ---------------------------------------------------------------------------
def reference_forward(params, x):
    def lin(z, wb):
        w, b = wb
        return z @ w + b

    def bn(y, st):
        s, t = st
        return y * s + t

    x1 = bn(jnp.maximum(lin(x, params["fc1"]), 0.0), params["bn1"])
    x2 = bn(jnp.maximum(lin(jnp.concatenate([x, x1], 1), params["fc2"]), 0.0),
            params["bn2"])
    x3 = bn(jnp.maximum(lin(jnp.concatenate([x, x1, x2], 1), params["fc3"]), 0.0),
            params["bn3"])
    x4 = lin(jnp.concatenate([x, x1, x2, x3], 1), params["fc4"])
    return x4


if __name__ == "__main__":
    key = jax.random.PRNGKey(0)
    B = 8
    x = jax.random.normal(key, (B, DX), jnp.float32)

    params = init_params(seed=0)
    kparams = prepare_kernel_params(params)

    out = purple_teletubbies_forward(kparams, x)
    out = jax.block_until_ready(out)

    ref = reference_forward(params, x)
    assert out.shape == (B, 1), out.shape
    # bf16 weights/activations with f32 accumulation -> relax tolerance vs f32 ref.
    max_err = float(jnp.max(jnp.abs(out - ref)))
    assert jnp.allclose(out, ref, atol=3e-2, rtol=3e-2), max_err

    print("KERNEL_OK")
</pallas_src>

<mosaic_0001>
module attributes {stable_mosaic.version = 11 : i64} {
  func.func @_fused_mlp_kernel(%arg0: i32, %arg1: memref<16x384xbf16, #tpu.memory_space<vmem>>, %arg2: memref<384x512xbf16, #tpu.memory_space<vmem>>, %arg3: memref<896x384xbf16, #tpu.memory_space<vmem>>, %arg4: memref<1280x256xbf16, #tpu.memory_space<vmem>>, %arg5: memref<8x1536xf32, #tpu.memory_space<vmem>>, %arg6: memref<16x1xf32, #tpu.memory_space<vmem>>, %arg7: memref<16x1280xbf16, #tpu.memory_space<vmem>>) attributes {dimension_semantics = [#tpu.dimension_semantics<parallel>], iteration_bounds = array<i64: 1>, scalar_prefetch = 0 : i64, scratch_operands = 1 : i64, tpu.core_type = #tpu.core_type<tc>, window_params = [{transform_indices = @transform_0, window_bounds = array<i64: 16, 384>}, {pipeline_mode = #tpu.pipeline_mode<synchronous>, transform_indices = @transform_1, window_bounds = array<i64: 384, 512>}, {pipeline_mode = #tpu.pipeline_mode<synchronous>, transform_indices = @transform_2, window_bounds = array<i64: 896, 384>}, {pipeline_mode = #tpu.pipeline_mode<synchronous>, transform_indices = @transform_3, window_bounds = array<i64: 1280, 256>}, {pipeline_mode = #tpu.pipeline_mode<synchronous>, transform_indices = @transform_4, window_bounds = array<i64: 8, 1536>}, {transform_indices = @transform_5, window_bounds = array<i64: 16, 1>}]} {
    %c0 = arith.constant 0 : index
    %c0_0 = arith.constant 0 : index
    %0 = vector.load %arg1[%c0, %c0_0] : memref<16x384xbf16, #tpu.memory_space<vmem>>, vector<16x384xbf16>
    %c0_1 = arith.constant 0 : index
    %c0_2 = arith.constant 0 : index
    %1 = vector.load %arg7[%c0_1, %c0_2] : memref<16x1280xbf16, #tpu.memory_space<vmem>>, vector<16x384xbf16>
    tpu.vector_store %arg7[%c0_1, %c0_2], %0 {strides = array<i32>} : memref<16x1280xbf16, #tpu.memory_space<vmem>>, vector<16x384xbf16>,
    %c0_3 = arith.constant 0 : index
    %c0_4 = arith.constant 0 : index
    %2 = vector.load %arg2[%c0_3, %c0_4] : memref<384x512xbf16, #tpu.memory_space<vmem>>, vector<384x512xbf16>
    %cst = arith.constant dense<0.000000e+00> : vector<16x512xf32>
    %3 = tpu.matmul %0, %2, %cst {dimension_numbers = #tpu.dot_dimension_numbers<[1], [0], [0], [1], [0, 0, 1, 1], [], []>} : vector<16x384xbf16>, vector<384x512xbf16>, vector<16x512xf32> -> vector<16x512xf32>
    %c0_5 = arith.constant 0 : index
    %c0_6 = arith.constant 0 : index
    %4 = vector.load %arg5[%c0_5, %c0_6] : memref<8x1536xf32, #tpu.memory_space<vmem>>, vector<1x512xf32>
    %5 = vector.broadcast %4 : vector<1x512xf32> to vector<16x512xf32>
    %6 = arith.addf %3, %5 : vector<16x512xf32>
    %cst_7 = arith.constant 0.000000e+00 : f32
    %7 = vector.broadcast %cst_7 : f32 to vector<16x512xf32>
    %8 = arith.maximumf %6, %7 : vector<16x512xf32>
    %9 = arith.truncf %8 : vector<16x512xf32> to vector<16x512xbf16>
    %c0_8 = arith.constant 0 : index
    %c384 = arith.constant 384 : index
    %10 = vector.load %arg7[%c0_8, %c384] : memref<16x1280xbf16, #tpu.memory_space<vmem>>, vector<16x512xbf16>
    tpu.vector_store %arg7[%c0_8, %c384], %9 {strides = array<i32>} : memref<16x1280xbf16, #tpu.memory_space<vmem>>, vector<16x512xbf16>,
    %c0_9 = arith.constant 0 : index
    %c0_10 = arith.constant 0 : index
    %11 = vector.load %arg3[%c0_9, %c0_10] : memref<896x384xbf16, #tpu.memory_space<vmem>>, vector<384x384xbf16>
    %cst_11 = arith.constant dense<0.000000e+00> : vector<16x384xf32>
    %12 = tpu.matmul %0, %11, %cst_11 {dimension_numbers = #tpu.dot_dimension_numbers<[1], [0], [0], [1], [0, 0, 1, 1], [], []>} : vector<16x384xbf16>, vector<384x384xbf16>, vector<16x384xf32> -> vector<16x384xf32>
    %c384_12 = arith.constant 384 : index
    %c0_13 = arith.constant 0 : index
    %13 = vector.load %arg3[%c384_12, %c0_13] : memref<896x384xbf16, #tpu.memory_space<vmem>>, vector<512x384xbf16>
    %cst_14 = arith.constant dense<0.000000e+00> : vector<16x384xf32>
    %14 = tpu.matmul %9, %13, %cst_14 {dimension_numbers = #tpu.dot_dimension_numbers<[1], [0], [0], [1], [0, 0, 1, 1], [], []>} : vector<16x512xbf16>, vector<512x384xbf16>, vector<16x384xf32> -> vector<16x384xf32>
    %15 = arith.addf %12, %14 : vector<16x384xf32>
    %c1 = arith.constant 1 : index
    %c0_15 = arith.constant 0 : index
    %16 = vector.load %arg5[%c1, %c0_15] : memref<8x1536xf32, #tpu.memory_space<vmem>>, vector<1x384xf32>
    %17 = vector.broadcast %16 : vector<1x384xf32> to vector<16x384xf32>
    %18 = arith.addf %15, %17 : vector<16x384xf32>
    %cst_16 = arith.constant 0.000000e+00 : f32
    %19 = vector.broadcast %cst_16 : f32 to vector<16x384xf32>
    %20 = arith.maximumf %18, %19 : vector<16x384xf32>
    %21 = arith.truncf %20 : vector<16x384xf32> to vector<16x384xbf16>
    %c0_17 = arith.constant 0 : index
    %c896 = arith.constant 896 : index
    %22 = vector.load %arg7[%c0_17, %c896] : memref<16x1280xbf16, #tpu.memory_space<vmem>>, vector<16x384xbf16>
    tpu.vector_store %arg7[%c0_17, %c896], %21 {strides = array<i32>} : memref<16x1280xbf16, #tpu.memory_space<vmem>>, vector<16x384xbf16>,
    %c0_18 = arith.constant 0 : index
    %c0_19 = arith.constant 0 : index
    %23 = vector.load %arg7[%c0_18, %c0_19] : memref<16x1280xbf16, #tpu.memory_space<vmem>>, vector<16x896xbf16>
    %c0_20 = arith.constant 0 : index
    %c0_21 = arith.constant 0 : index
    %24 = vector.load %arg4[%c0_20, %c0_21] : memref<1280x256xbf16, #tpu.memory_space<vmem>>, vector<896x256xbf16>
    %cst_22 = arith.constant dense<0.000000e+00> : vector<16x256xf32>
    %25 = tpu.matmul %23, %24, %cst_22 {dimension_numbers = #tpu.dot_dimension_numbers<[1], [0], [0], [1], [0, 0, 1, 1], [], []>} : vector<16x896xbf16>, vector<896x256xbf16>, vector<16x256xf32> -> vector<16x256xf32>
    %c896_23 = arith.constant 896 : index
    %c0_24 = arith.constant 0 : index
    %26 = vector.load %arg4[%c896_23, %c0_24] : memref<1280x256xbf16, #tpu.memory_space<vmem>>, vector<384x256xbf16>
    %cst_25 = arith.constant dense<0.000000e+00> : vector<16x256xf32>
    %27 = tpu.matmul %21, %26, %cst_25 {dimension_numbers = #tpu.dot_dimension_numbers<[1], [0], [0], [1], [0, 0, 1, 1], [], []>} : vector<16x384xbf16>, vector<384x256xbf16>, vector<16x256xf32> -> vector<16x256xf32>
    %28 = arith.addf %25, %27 : vector<16x256xf32>
    %c2 = arith.constant 2 : index
    %c0_26 = arith.constant 0 : index
    %29 = vector.load %arg5[%c2, %c0_26] : memref<8x1536xf32, #tpu.memory_space<vmem>>, vector<1x256xf32>
    %30 = vector.broadcast %29 : vector<1x256xf32> to vector<16x256xf32>
    %31 = arith.addf %28, %30 : vector<16x256xf32>
    %cst_27 = arith.constant 0.000000e+00 : f32
    %32 = vector.broadcast %cst_27 : f32 to vector<16x256xf32>
    %33 = arith.maximumf %31, %32 : vector<16x256xf32>
    %c4 = arith.constant 4 : index
    %c0_28 = arith.constant 0 : index
    %34 = vector.load %arg5[%c4, %c0_28] : memref<8x1536xf32, #tpu.memory_space<vmem>>, vector<1x1280xf32>
    %c4_29 = arith.constant 4 : index
    %c1280 = arith.constant 1280 : index
    %35 = vector.load %arg5[%c4_29, %c1280] : memref<8x1536xf32, #tpu.memory_space<vmem>>, vector<1x256xf32>
    %c0_30 = arith.constant 0 : index
    %c0_31 = arith.constant 0 : index
    %36 = vector.load %arg7[%c0_30, %c0_31] : memref<16x1280xbf16, #tpu.memory_space<vmem>>, vector<16x1280xbf16>
    %37 = arith.extf %36 : vector<16x1280xbf16> to vector<16x1280xf32>
    %38 = vector.broadcast %34 : vector<1x1280xf32> to vector<16x1280xf32>
    %39 = arith.mulf %37, %38 : vector<16x1280xf32>
    %cst_32 = arith.constant dense<0.000000e+00> : vector<16xf32>
    %40 = vector.multi_reduction <add>, %39, %cst_32 [1] : vector<16x1280xf32> to vector<16xf32>
    %41 = vector.shape_cast %40 : vector<16xf32> to vector<16x1xf32>
    %42 = vector.broadcast %35 : vector<1x256xf32> to vector<16x256xf32>
    %43 = arith.mulf %33, %42 : vector<16x256xf32>
    %cst_33 = arith.constant dense<0.000000e+00> : vector<16xf32>
    %44 = vector.multi_reduction <add>, %43, %cst_33 [1] : vector<16x256xf32> to vector<16xf32>
    %45 = vector.shape_cast %44 : vector<16xf32> to vector<16x1xf32>
    %46 = arith.addf %41, %45 : vector<16x1xf32>
    %c3 = arith.constant 3 : index
    %c0_34 = arith.constant 0 : index
    %47 = vector.load %arg5[%c3, %c0_34] : memref<8x1536xf32, #tpu.memory_space<vmem>>, vector<1x1xf32>
    %48 = vector.broadcast %47 : vector<1x1xf32> to vector<16x1xf32>
    %49 = arith.addf %46, %48 : vector<16x1xf32>
    %c0_35 = arith.constant 0 : index
    %c0_36 = arith.constant 0 : index
    %50 = vector.load %arg6[%c0_35, %c0_36] : memref<16x1xf32, #tpu.memory_space<vmem>>, vector<16x1xf32>
    tpu.vector_store %arg6[%c0_35, %c0_36], %49 {strides = array<i32>} : memref<16x1xf32, #tpu.memory_space<vmem>>, vector<16x1xf32>,
    return
  }
  func.func @transform_0(%arg0: i32) -> (i32, i32) {
    %c0_i32 = arith.constant 0 : i32
    %c0_i32_0 = arith.constant 0 : i32
    return %arg0, %c0_i32 : i32, i32
  }
  func.func @transform_1(%arg0: i32) -> (i32, i32) {
    %c0_i32 = arith.constant 0 : i32
    %c0_i32_0 = arith.constant 0 : i32
    %c0_i32_1 = arith.constant 0 : i32
    return %c0_i32, %c0_i32_0 : i32, i32
  }
  func.func @transform_2(%arg0: i32) -> (i32, i32) {
    %c0_i32 = arith.constant 0 : i32
    %c0_i32_0 = arith.constant 0 : i32
    %c0_i32_1 = arith.constant 0 : i32
    return %c0_i32, %c0_i32_0 : i32, i32
  }
  func.func @transform_3(%arg0: i32) -> (i32, i32) {
    %c0_i32 = arith.constant 0 : i32
    %c0_i32_0 = arith.constant 0 : i32
    %c0_i32_1 = arith.constant 0 : i32
    return %c0_i32, %c0_i32_0 : i32, i32
  }
  func.func @transform_4(%arg0: i32) -> (i32, i32) {
    %c0_i32 = arith.constant 0 : i32
    %c0_i32_0 = arith.constant 0 : i32
    %c0_i32_1 = arith.constant 0 : i32
    return %c0_i32, %c0_i32_0 : i32, i32
  }
  func.func @transform_5(%arg0: i32) -> (i32, i32) {
    %c0_i32 = arith.constant 0 : i32
    %c0_i32_0 = arith.constant 0 : i32
    return %arg0, %c0_i32 : i32, i32
  }
}

</mosaic_0001>

<bundles_post_ra>
// kernel: purple_teletubbies_forward.1
= control target key start
LH: loop header
LB: loop body
LE: loop exit
PB: predicated region body
PF: predicated region fallthrough
CT: control target
= control target key end

     0   :  { %10 = vsyncpa [#allocation4], 0  ;;  %s6411_s0 = inlined_call_operand.vmem [shape: bf16[16,384], index: 0, kind: input, shape index: {}]   ;;  %s6412_s1 = inlined_call_operand.hbm [shape: bf16[384,512], index: 1, kind: input, shape index: {}]   ;;  %s6413_s2 = inlined_call_operand.hbm [shape: bf16[896,384], index: 2, kind: input, shape index: {}]   ;;  %s6414_s3 = inlined_call_operand.hbm [shape: bf16[1280,256], index: 3, kind: input, shape index: {}]   ;;  %s6415_s4 = inlined_call_operand.hbm [shape: f32[8,1536], index: 4, kind: input, shape index: {}]   ;;  %s6416_s5 = inlined_call_operand.vmem [shape: f32[16,1], index: 5, kind: output, shape index: {}]  }
   0x1   :  { %11 = vsyncpa [#allocation6], 0  ;;  %s32_s20 = sshll.u32 %s6413_s2, 4  ;;  %s33_s20 = int_to_ptr.hbm [resolvable:$true] %s32_s20 }
   0x2   :  { %12 = vsyncpa [#allocation9], 0  ;;  %s6069_s21 = smov [#allocation5]   ;;  %s19_s25 = sshll.u32 %s6412_s1, 4  ;;  %s20_s25 = int_to_ptr.hbm [resolvable:$true] %s19_s25 }
   0x3   :  { %s34_s22 = sshll.u32 %s6069_s21, 4  ;;  %s6070_s26 = smov 192   ;;  %s35_s22 = int_to_ptr.vmem [resolvable:$true] %s34_s22 }
   0x4   :  { %s6071_s27 = smov 12   ;;  %s6072_s28 = smov [#allocation3]  }
   0x5   :  { %40 = dma.hbm_to_vmem [thread:$0]  %s33_s20, 21504, %s35_s22, [#allocation6], %s6070_s26, %s6070_s26, %s6071_s27  }
   0x6   :  { %s21_s29 = sshll.u32 %s6072_s28, 4  ;;  %s6073_s30 = smov 256   ;;  %s22_s29 = int_to_ptr.vmem [resolvable:$true] %s21_s29 }
   0x7   :  { %s6074_s6 = smov 16   ;;  %s45_s8 = sshll.u32 %s6414_s3, 4  ;;  %s46_s8 = int_to_ptr.hbm [resolvable:$true] %s45_s8 }
   0x8   :  { %27 = dma.hbm_to_vmem [thread:$0]  %s20_s25, 12288, %s22_s29, [#allocation4], %s6073_s30, %s6073_s30, %s6074_s6  }
   0x9   :  { %s6075_s9 = smov [#allocation7]   ;;  %s59_s12 = sshll.u32 %s6415_s4, 4  ;;  %s60_s12 = int_to_ptr.hbm [resolvable:$true] %s59_s12 }
   0xa   :  { %s47_s10 = sshll.u32 %s6075_s9, 4  ;;  %s6076_s13 = smov 128   ;;  %s48_s10 = int_to_ptr.vmem [resolvable:$true] %s47_s10 }
   0xb   :  { %s6077_s14 = smov 8   ;;  %s6078_s15 = smov [#allocation8]  }
   0xc   :  { %53 = dma.hbm_to_vmem [thread:$0]  %s46_s8, 20480, %s48_s10, [#allocation6], %s6076_s13, %s6076_s13, %s6077_s14  }
   0xd   :  { %s61_s16 = sshll.u32 %s6078_s15, 4  ;;  %s62_s16 = int_to_ptr.vmem [resolvable:$true] %s61_s16 }
   0xe   :  { %64 = dma.hbm_to_vmem [thread:$0]  %s60_s12, 1536, %s62_s16, [#allocation9]  }
   0xf   :  { %6063 = dma.done.wait [#allocation4], 12288  }
  0x10   :  { %6064 = vsyncadd [#allocation4], 4294955008 }
  0x11   :  { %6065 = dma.done.wait [#allocation6], 41984  }
  0x12   :  { %6066 = vsyncadd [#allocation6], 4294925312 }
  0x13   :  { %6067 = dma.done.wait [#allocation9], 1536  }
  0x14   :  { %6068 = vsyncadd [#allocation9], 4294965760  ;;  %v3911_v0 = vld [vmem:[#allocation3 + $0xe0] sm:$0xf]  ;;  %v5554_v1 = vld [vmem:[#allocation3 + $0xec] sm:$0xf0] }
  0x15   :  { %v4039_v2 = vld [vmem:[#allocation3 + $0x1e0] sm:$0xf]  ;;  %v3912_v3 = vor.u32 %v5554_v1, %v3911_v0  ;;  %v5586_v4 = vld [vmem:[#allocation3 + $0x1ec] sm:$0xf0]  ;;  %v5552_v9 = vld [vmem:[#allocation3 + $0xe4] sm:$0xf] }
  0x16   :  { %v4167_v5 = vld [vmem:[#allocation3 + $0x2e0] sm:$0xf]  ;;  %v5618_v6 = vld [vmem:[#allocation3 + $0x2ec] sm:$0xf0]  ;;  %v4040_v7 = vor.u32 %v5586_v4, %v4039_v2  ;;  %v3913_v10 = vld [vmem:[#allocation3 + $0xf0] sm:$0xf0] }
  0x17   :  { %v4168_v8 = vor.u32 %v5618_v6, %v4167_v5  ;;  %v3895_v11 = vld [vmem:[#allocation3 + $0xc0] sm:$0xf]  ;;  %691 = vmatpush.bf16.msra.mxu0 %v3912_v3  ;;  %v3916_v12 = vor.u32 %v5552_v9, %v3913_v10  ;;  %v5550_v13 = vld [vmem:[#allocation3 + $0xcc] sm:$0xf0]  ;;  %v5548_v20 = vld [vmem:[#allocation3 + $0xc4] sm:$0xf] }
  0x18   :  { %v4023_v14 = vld [vmem:[#allocation3 + $0x1c0] sm:$0xf]  ;;  %v5582_v15 = vld [vmem:[#allocation3 + $0x1cc] sm:$0xf0]  ;;  %705 = vmatpush.bf16.msra.mxu1 %v4040_v7  ;;  %v3896_v16 = vor.u32 %v5550_v13, %v3895_v11  ;;  %v3897_v22 = vld [vmem:[#allocation3 + $0xd0] sm:$0xf0] }
  0x19   :  { %719 = vmatpush.bf16.msra.mxu2 %v4168_v8  ;;  %v4024_v17 = vor.u32 %v5582_v15, %v4023_v14  ;;  %v4151_v18 = vld [vmem:[#allocation3 + $0x2c0] sm:$0xf]  ;;  %v5614_v19 = vld [vmem:[#allocation3 + $0x2cc] sm:$0xf0]  ;;  %733 = vmatpush.bf16.msra.mxu3 %v3916_v12  ;;  %v3900_v25 = vor.u32 %v5548_v20, %v3897_v22  ;;  %v5544_v31 = vld [vmem:[#allocation3 + $0xa4] sm:$0xf] }
  0x1a   :  { %v4152_v21 = vor.u32 %v5614_v19, %v4151_v18  ;;  %v3879_v23 = vld [vmem:[#allocation3 + $0xa0] sm:$0xf]  ;;  %v5546_v24 = vld [vmem:[#allocation3 + $0xac] sm:$0xf0]  ;;  %v3881_v32 = vld [vmem:[#allocation3 + $0xb0] sm:$0xf0] }
  0x1b   :  { %v4007_v26 = vld [vmem:[#allocation3 + $0x1a0] sm:$0xf]  ;;  %v5578_v27 = vld [vmem:[#allocation3 + $0x1ac] sm:$0xf0]  ;;  %692 = vmatpush.bf16.msra.mxu0 %v3896_v16  ;;  %v3880_v29 = vor.u32 %v5546_v24, %v3879_v23  ;;  %v3884_v38 = vor.u32 %v5544_v31, %v3881_v32  ;;  %v5540_v42 = vld [vmem:[#allocation3 + $0x84] sm:$0xf] }
  0x1c   :  { %v4135_v28 = vld [vmem:[#allocation3 + $0x2a0] sm:$0xf]  ;;  %v5610_v30 = vld [vmem:[#allocation3 + $0x2ac] sm:$0xf0]  ;;  %706 = vmatpush.bf16.msra.mxu1 %v4024_v17  ;;  %v4008_v33 = vor.u32 %v5578_v27, %v4007_v26  ;;  %v3865_v43 = vld [vmem:[#allocation3 + $0x90] sm:$0xf0] }
  0x1d   :  { %720 = vmatpush.bf16.msra.mxu2 %v4152_v21  ;;  %v4136_v34 = vor.u32 %v5610_v30, %v4135_v28  ;;  %v3863_v35 = vld [vmem:[#allocation3 + $0x80] sm:$0xf]  ;;  %v5542_v36 = vld [vmem:[#allocation3 + $0x8c] sm:$0xf0]  ;;  %734 = vmatpush.bf16.msra.mxu3 %v3900_v25  ;;  %v3868_v50 = vor.u32 %v5540_v42, %v3865_v43  ;;  %v5536_v54 = vld [vmem:[#allocation3 + $0x64] sm:$0xf] }
  0x1e   :  { %v3991_v37 = vld [vmem:[#allocation3 + $0x180] sm:$0xf]  ;;  %v5574_v39 = vld [vmem:[#allocation3 + $0x18c] sm:$0xf0]  ;;  %v3864_v44 = vor.u32 %v5542_v36, %v3863_v35  ;;  %v3849_v55 = vld [vmem:[#allocation3 + $0x70] sm:$0xf0] }
  0x1f   :  { %v4119_v40 = vld [vmem:[#allocation3 + $0x280] sm:$0xf]  ;;  %v5606_v41 = vld [vmem:[#allocation3 + $0x28c] sm:$0xf0]  ;;  %693 = vmatpush.bf16.msra.mxu0 %v3880_v29  ;;  %v3992_v45 = vor.u32 %v5574_v39, %v3991_v37  ;;  %v3852_v62 = vor.u32 %v5536_v54, %v3849_v55  ;;  %v5532_v2 = vld [vmem:[#allocation3 + $0x44] sm:$0xf] }
  0x20   :  { %707 = vmatpush.bf16.msra.mxu1 %v4008_v33  ;;  %v4120_v46 = vor.u32 %v5606_v41, %v4119_v40  ;;  %v3847_v47 = vld [vmem:[#allocation3 + $0x60] sm:$0xf]  ;;  %v5538_v48 = vld [vmem:[#allocation3 + $0x6c] sm:$0xf0]  ;;  %v3833_v3 = vld [vmem:[#allocation3 + $0x50] sm:$0xf0] }
  0x21   :  { %721 = vmatpush.bf16.msra.mxu2 %v4136_v34  ;;  %v3975_v49 = vld [vmem:[#allocation3 + $0x160] sm:$0xf]  ;;  %735 = vmatpush.bf16.msra.mxu3 %v3884_v38  ;;  %v5570_v51 = vld [vmem:[#allocation3 + $0x16c] sm:$0xf0]  ;;  %v3848_v56 = vor.u32 %v5538_v48, %v3847_v47  ;;  %v3836_v10 = vor.u32 %v5532_v2, %v3833_v3  ;;  %v5528_v14 = vld [vmem:[#allocation3 + $0x24] sm:$0xf] }
  0x22   :  { %v4103_v52 = vld [vmem:[#allocation3 + $0x260] sm:$0xf]  ;;  %v5602_v53 = vld [vmem:[#allocation3 + $0x26c] sm:$0xf0]  ;;  %v3976_v57 = vor.u32 %v5570_v51, %v3975_v49  ;;  %v3817_v15 = vld [vmem:[#allocation3 + $0x30] sm:$0xf0] }
  0x23   :  { %694 = vmatpush.bf16.msra.mxu0 %v3864_v44  ;;  %v4104_v58 = vor.u32 %v5602_v53, %v4103_v52  ;;  %v3831_v59 = vld [vmem:[#allocation3 + $0x40] sm:$0xf]  ;;  %v5534_v60 = vld [vmem:[#allocation3 + $0x4c] sm:$0xf0]  ;;  %v3820_v24 = vor.u32 %v5528_v14, %v3817_v15  ;;  %v5524_v26 = vld [vmem:[#allocation3 + $0x4] sm:$0xf] }
  0x24   :  { %708 = vmatpush.bf16.msra.mxu1 %v3992_v45  ;;  %v3959_v61 = vld [vmem:[#allocation3 + $0x140] sm:$0xf]  ;;  %v5566_v63 = vld [vmem:[#allocation3 + $0x14c] sm:$0xf0]  ;;  %v3832_v4 = vor.u32 %v5534_v60, %v3831_v59  ;;  %v3801_v27 = vld [vmem:[#allocation3 + $0x10] sm:$0xf0] }
  0x25   :  { %722 = vmatpush.bf16.msra.mxu2 %v4120_v46  ;;  %736 = vmatpush.bf16.msra.mxu3 %v3868_v50  ;;  %v4087_v0 = vld [vmem:[#allocation3 + $0x240] sm:$0xf]  ;;  %v5598_v1 = vld [vmem:[#allocation3 + $0x24c] sm:$0xf0]  ;;  %v3960_v5 = vor.u32 %v5566_v63, %v3959_v61  ;;  %v5584_v28 = vld [vmem:[#allocation3 + $0x1e4] sm:$0xf]  ;;  %v3804_v39 = vor.u32 %v5524_v26, %v3801_v27 }
  0x26   :  { %v4088_v6 = vor.u32 %v5598_v1, %v4087_v0  ;;  %v3815_v7 = vld [vmem:[#allocation3 + $0x20] sm:$0xf]  ;;  %v5530_v8 = vld [vmem:[#allocation3 + $0x2c] sm:$0xf0]  ;;  %v4041_v29 = vld [vmem:[#allocation3 + $0x1f0] sm:$0xf0] }
  0x27   :  { %695 = vmatpush.bf16.msra.mxu0 %v3848_v56  ;;  %v3943_v9 = vld [vmem:[#allocation3 + $0x120] sm:$0xf]  ;;  %v5562_v11 = vld [vmem:[#allocation3 + $0x12c] sm:$0xf0]  ;;  %v3816_v16 = vor.u32 %v5530_v8, %v3815_v7  ;;  %v5616_v30 = vld [vmem:[#allocation3 + $0x2e4] sm:$0xf]  ;;  %v4044_v40 = vor.u32 %v5584_v28, %v4041_v29 }
  0x28   :  { %709 = vmatpush.bf16.msra.mxu1 %v3976_v57  ;;  %v4071_v12 = vld [vmem:[#allocation3 + $0x220] sm:$0xf]  ;;  %v5594_v13 = vld [vmem:[#allocation3 + $0x22c] sm:$0xf0]  ;;  %v3944_v19 = vor.u32 %v5562_v11, %v3943_v9  ;;  %v4169_v32 = vld [vmem:[#allocation3 + $0x2f0] sm:$0xf0] }
  0x29   :  { %723 = vmatpush.bf16.msra.mxu2 %v4104_v58  ;;  %737 = vmatpush.bf16.msra.mxu3 %v3852_v62  ;;  %v3799_v17 = vld [vmem:[#allocation3] sm:$0xf]  ;;  %v5526_v18 = vld [vmem:[#allocation3 + $0xc] sm:$0xf0]  ;;  %v4072_v20 = vor.u32 %v5594_v13, %v4071_v12  ;;  %v3919_v33 = vld [vmem:[#allocation3 + $0xe8] sm:$0xf]  ;;  %v4172_v42 = vor.u32 %v5616_v30, %v4169_v32 }
  0x2a   :  { %v3927_v21 = vld [vmem:[#allocation3 + $0x100] sm:$0xf]  ;;  %v5558_v22 = vld [vmem:[#allocation3 + $0x10c] sm:$0xf0]  ;;  %v3800_v31 = vor.u32 %v5526_v18, %v3799_v17  ;;  %v5555_v34 = vld [vmem:[#allocation3 + $0xf4] sm:$0xf0] }
  0x2b   :  { %696 = vmatpush.bf16.msra.mxu0 %v3832_v4  ;;  %v4055_v23 = vld [vmem:[#allocation3 + $0x200] sm:$0xf]  ;;  %v5590_v25 = vld [vmem:[#allocation3 + $0x20c] sm:$0xf0]  ;;  %v3928_v35 = vor.u32 %v5558_v22, %v3927_v21  ;;  %v4047_v37 = vld [vmem:[#allocation3 + $0x1e8] sm:$0xf]  ;;  %v3920_v43 = vor.u32 %v5555_v34, %v3919_v33 }
  0x2c   :  { %710 = vmatpush.bf16.msra.mxu1 %v3960_v5  ;;  %v4056_v36 = vor.u32 %v5590_v25, %v4055_v23  ;;  %v5587_v38 = vld [vmem:[#allocation3 + $0x1f4] sm:$0xf0]  ;;  %v5580_v41 = vld [vmem:[#allocation3 + $0x1c4] sm:$0xf]  ;;  %v4025_v44 = vld [vmem:[#allocation3 + $0x1d0] sm:$0xf0] }
  0x2d   :  { %724 = vmatpush.bf16.msra.mxu2 %v4088_v6  ;;  %738 = vmatpush.bf16.msra.mxu3 %v3836_v10  ;;  %v5612_v45 = vld [vmem:[#allocation3 + $0x2c4] sm:$0xf]  ;;  %v4153_v46 = vld [vmem:[#allocation3 + $0x2d0] sm:$0xf0]  ;;  %v4048_v47 = vor.u32 %v5587_v38, %v4047_v37  ;;  %v3903_v48 = vld [vmem:[#allocation3 + $0xc8] sm:$0xf]  ;;  %v4028_v54 = vor.u32 %v5580_v41, %v4025_v44 }
  0x2e   :  { %v5551_v49 = vld [vmem:[#allocation3 + $0xd4] sm:$0xf0]  ;;  %v4031_v50 = vld [vmem:[#allocation3 + $0x1c8] sm:$0xf]  ;;  %v3787_v52 = vld [vmem:[%s6411_s0] sm:$0xf]  ;;  %v4156_v59 = vor.u32 %v5612_v45, %v4153_v46 }
  0x2f   :  { %697 = vmatpush.bf16.msra.mxu0 %v3816_v16  ;;  %v5583_v51 = vld [vmem:[#allocation3 + $0x1d4] sm:$0xf0]  ;;  %v5522_v53 = vld [vmem:[%s6411_s0 + $0x8] sm:$0xf0]  ;;  %v5576_v55 = vld [vmem:[#allocation3 + $0x1a4] sm:$0xf]  ;;  %v3904_v60 = vor.u32 %v5551_v49, %v3903_v48 }
  0x30   :  { %711 = vmatpush.bf16.msra.mxu1 %v3944_v19  ;;  %v4009_v56 = vld [vmem:[#allocation3 + $0x1b0] sm:$0xf0]  ;;  %v5608_v57 = vld [vmem:[#allocation3 + $0x2a4] sm:$0xf]  ;;  %v6127_v58 = vor.u32 %v5522_v53, %v3787_v52  ;;  %v3887_v62 = vld [vmem:[#allocation3 + $0xa8] sm:$0xf]  ;;  %v4032_v0 = vor.u32 %v5583_v51, %v4031_v50 }
  0x31   :  { %725 = vmatpush.bf16.msra.mxu2 %v4072_v20  ;;  %739 = vmatpush.bf16.msra.mxu3 %v3820_v24  ;;  %v4137_v61 = vld [vmem:[#allocation3 + $0x2b0] sm:$0xf0]  ;;  %v5547_v63 = vld [vmem:[#allocation3 + $0xb4] sm:$0xf0]  ;;  %v4015_v1 = vld [vmem:[#allocation3 + $0x1a8] sm:$0xf]  ;;  %v4012_v8 = vor.u32 %v5576_v55, %v4009_v56 }
  0x32   :  { %v5521_v2 = vld [vmem:[%s6411_s0 + $0x4] sm:$0xf]  ;;  %v3789_v3 = vld [vmem:[%s6411_s0 + $0xc] sm:$0xf0]  ;;  %v5579_v4 = vld [vmem:[#allocation3 + $0x1b4] sm:$0xf0]  ;;  %v4140_v10 = vor.u32 %v5608_v57, %v4137_v61  ;;  %v3888_v11 = vor.u32 %v5547_v63, %v3887_v62 }
  0x33   :  { %698 = vmatpush.bf16.msra.mxu0 %v3800_v31  ;;  %v6136_v5 = vor.u32 %v5521_v2, %v3789_v3  ;;  %v3795_v6 = vld [vmem:[%s6411_s0 + $0x8] sm:$0xf]  ;;  %v5523_v7 = vld [vmem:[%s6411_s0 + $0x10] sm:$0xf0]  ;;  %v3993_v13 = vld [vmem:[#allocation3 + $0x190] sm:$0xf0]  ;;  %v4016_v15 = vor.u32 %v5579_v4, %v4015_v1 }
  0x34   :  { %712 = vmatpush.bf16.msra.mxu1 %v3928_v35  ;;  %v6145_v9 = vor.u32 %v5523_v7, %v3795_v6  ;;  %v5572_v12 = vld [vmem:[#allocation3 + $0x184] sm:$0xf]  ;;  %v4121_v16 = vld [vmem:[#allocation3 + $0x290] sm:$0xf0]  ;;  %v3871_v17 = vld [vmem:[#allocation3 + $0x88] sm:$0xf] }
  0x35   :  { %726 = vmatpush.bf16.msra.mxu2 %v4056_v36  ;;  %740 = vmatpush.bf16.msra.mxu3 %v3804_v39  ;;  %v5604_v14 = vld [vmem:[#allocation3 + $0x284] sm:$0xf]  ;;  %v5543_v18 = vld [vmem:[#allocation3 + $0x94] sm:$0xf0]  ;;  %v3999_v19 = vld [vmem:[#allocation3 + $0x188] sm:$0xf]  ;;  %v3996_v21 = vor.u32 %v5572_v12, %v3993_v13 }
  0x36   :  { %699 = vmatmul.bf16.vlgmr.msra.gmra.mxu0 %v6127_v58  ;;  %v5575_v20 = vld [vmem:[#allocation3 + $0x194] sm:$0xf0]  ;;  %v4124_v22 = vor.u32 %v5604_v14, %v4121_v16  ;;  %v3872_v23 = vor.u32 %v5543_v18, %v3871_v17  ;;  %v5568_v24 = vld [vmem:[#allocation3 + $0x164] sm:$0xf]  ;;  %v3977_v25 = vld [vmem:[#allocation3 + $0x170] sm:$0xf0] }
  0x37   :  { %747 = vmatpush.bf16.msrb.mxu0 %v4044_v40  ;;  %713 = vmatmul.bf16.vlgmr.msra.gmra.mxu1 %v6136_v5  ;;  %v5600_v26 = vld [vmem:[#allocation3 + $0x264] sm:$0xf]  ;;  %v4000_v27 = vor.u32 %v5575_v20, %v3999_v19  ;;  %v4105_v28 = vld [vmem:[#allocation3 + $0x270] sm:$0xf0]  ;;  %v3855_v29 = vld [vmem:[#allocation3 + $0x68] sm:$0xf]  ;;  %v3980_v33 = vor.u32 %v5568_v24, %v3977_v25 }
  0x38   :  { %761 = vmatpush.bf16.msrb.mxu1 %v4172_v42  ;;  %741 = vmatmul.bf16.vlgmr.msra.gmra.mxu3 %v6127_v58  ;;  %v5539_v30 = vld [vmem:[#allocation3 + $0x74] sm:$0xf0]  ;;  %v3983_v31 = vld [vmem:[#allocation3 + $0x168] sm:$0xf]  ;;  %v4108_v34 = vor.u32 %v5600_v26, %v4105_v28  ;;  %v5564_v36 = vld [vmem:[#allocation3 + $0x144] sm:$0xf] }
  0x39   :  { %775 = vmatpush.bf16.msrb.mxu2 %v3920_v43  ;;  %789 = vmatpush.bf16.msrb.mxu3 %v4048_v47  ;;  %v5571_v32 = vld [vmem:[#allocation3 + $0x174] sm:$0xf0]  ;;  %v3856_v35 = vor.u32 %v5539_v30, %v3855_v29  ;;  %v3961_v37 = vld [vmem:[#allocation3 + $0x150] sm:$0xf0]  ;;  %v5596_v38 = vld [vmem:[#allocation3 + $0x244] sm:$0xf] }
  0x3a   :  { %727 = vmatmul.bf16.vlgmr.msra.gmra.mxu2 %v6145_v9  ;;  %v3984_v39 = vor.u32 %v5571_v32, %v3983_v31  ;;  %v4089_v40 = vld [vmem:[#allocation3 + $0x250] sm:$0xf0]  ;;  %v3839_v41 = vld [vmem:[#allocation3 + $0x48] sm:$0xf]  ;;  %v5535_v42 = vld [vmem:[#allocation3 + $0x54] sm:$0xf0]  ;;  %v3964_v45 = vor.u32 %v5564_v36, %v3961_v37 }
  0x3b   :  { %748 = vmatpush.bf16.msrb.mxu0 %v4028_v54  ;;  %v3967_v43 = vld [vmem:[#allocation3 + $0x148] sm:$0xf]  ;;  %v5567_v44 = vld [vmem:[#allocation3 + $0x154] sm:$0xf0]  ;;  %v4092_v46 = vor.u32 %v5596_v38, %v4089_v40  ;;  %v3840_v47 = vor.u32 %v5535_v42, %v3839_v41  ;;  %v5560_v48 = vld [vmem:[#allocation3 + $0x124] sm:$0xf] }
  0x3c   :  { %762 = vmatpush.bf16.msrb.mxu1 %v4156_v59  ;;  %v3945_v49 = vld [vmem:[#allocation3 + $0x130] sm:$0xf0]  ;;  %v5592_v50 = vld [vmem:[#allocation3 + $0x224] sm:$0xf]  ;;  %v3968_v51 = vor.u32 %v5567_v44, %v3967_v43  ;;  %v3823_v53 = vld [vmem:[#allocation3 + $0x28] sm:$0xf] }
  0x3d   :  { %776 = vmatpush.bf16.msrb.mxu2 %v3904_v60  ;;  %790 = vmatpush.bf16.msrb.mxu3 %v4032_v0  ;;  %v4073_v52 = vld [vmem:[#allocation3 + $0x230] sm:$0xf0]  ;;  %v5531_v54 = vld [vmem:[#allocation3 + $0x34] sm:$0xf0]  ;;  %v3951_v55 = vld [vmem:[#allocation3 + $0x128] sm:$0xf]  ;;  %v3948_v57 = vor.u32 %v5560_v48, %v3945_v49 }
  0x3e   :  { %v5563_v56 = vld [vmem:[#allocation3 + $0x134] sm:$0xf0]  ;;  %v5556_v59 = vld [vmem:[#allocation3 + $0x104] sm:$0xf]  ;;  %v3929_v60 = vld [vmem:[#allocation3 + $0x110] sm:$0xf0]  ;;  %v4076_v61 = vor.u32 %v5592_v50, %v4073_v52  ;;  %v3824_v62 = vor.u32 %v5531_v54, %v3823_v53 }
  0x3f   :  { %749 = vmatpush.bf16.msrb.mxu0 %v4012_v8  ;;  %v5588_v63 = vld [vmem:[#allocation3 + $0x204] sm:$0xf]  ;;  %v4057_v0 = vld [vmem:[#allocation3 + $0x210] sm:$0xf0]  ;;  %v3807_v1 = vld [vmem:[#allocation3 + $0x8] sm:$0xf]  ;;  %v3952_v2 = vor.u32 %v5563_v56, %v3951_v55 }
  0x40   :  { %763 = vmatpush.bf16.msrb.mxu1 %v4140_v10  ;;  %v5527_v3 = vld [vmem:[#allocation3 + $0x14] sm:$0xf0]  ;;  %v3935_v4 = vld [vmem:[#allocation3 + $0x108] sm:$0xf]  ;;  %v5553_v10 = vld [vmem:[#allocation3 + $0xec] sm:$0xf] }
  0x41   :  { %777 = vmatpush.bf16.msrb.mxu2 %v3888_v11  ;;  %791 = vmatpush.bf16.msrb.mxu3 %v4016_v15  ;;  %v5559_v6 = vld [vmem:[#allocation3 + $0x114] sm:$0xf0]  ;;  %v4175_v7 = vld [vmem:[#allocation3 + $0x2e8] sm:$0xf]  ;;  %v3932_v11 = vor.u32 %v5556_v59, %v3929_v60  ;;  %v3921_v12 = vld [vmem:[#allocation3 + $0xf8] sm:$0xf0]  ;;  %v4060_v15 = vor.u32 %v5588_v63, %v4057_v0  ;;  %v3808_v16 = vor.u32 %v5527_v3, %v3807_v1 }
  0x42   :  { %v5619_v8 = vld [vmem:[#allocation3 + $0x2f4] sm:$0xf0]  ;;  %v5585_v13 = vld [vmem:[#allocation3 + $0x1ec] sm:$0xf]  ;;  %v4049_v14 = vld [vmem:[#allocation3 + $0x1f8] sm:$0xf0]  ;;  %v3936_v19 = vor.u32 %v5559_v6, %v3935_v4 }
  0x43   :  { %750 = vmatpush.bf16.msrb.mxu0 %v3996_v21  ;;  %v5617_v17 = vld [vmem:[#allocation3 + $0x2ec] sm:$0xf]  ;;  %v4177_v18 = vld [vmem:[#allocation3 + $0x2f8] sm:$0xf0]  ;;  %v4176_v20 = vor.u32 %v5619_v8, %v4175_v7  ;;  %v3924_v21 = vor.u32 %v5553_v10, %v3921_v12  ;;  %v5615_v24 = vld [vmem:[#allocation3 + $0x2d4] sm:$0xf0] }
  0x44   :  { %764 = vmatpush.bf16.msrb.mxu1 %v4124_v22  ;;  %v4052_v22 = vor.u32 %v5585_v13, %v4049_v14  ;;  %v5549_v25 = vld [vmem:[#allocation3 + $0xcc] sm:$0xf]  ;;  %v4180_v26 = vor.u32 %v5617_v17, %v4177_v18  ;;  %v4033_v29 = vld [vmem:[#allocation3 + $0x1d8] sm:$0xf0]  ;;  %v5611_v36 = vld [vmem:[#allocation3 + $0x2b4] sm:$0xf0] }
  0x45   :  { %778 = vmatpush.bf16.msrb.mxu2 %v3872_v23  ;;  %792 = vmatpush.bf16.msrb.mxu3 %v4000_v27  ;;  %v4159_v23 = vld [vmem:[#allocation3 + $0x2c8] sm:$0xf]  ;;  %v3905_v27 = vld [vmem:[#allocation3 + $0xd8] sm:$0xf0]  ;;  %v5581_v28 = vld [vmem:[#allocation3 + $0x1cc] sm:$0xf] }
  0x46   :  { %v5613_v30 = vld [vmem:[#allocation3 + $0x2cc] sm:$0xf]  ;;  %v4161_v31 = vld [vmem:[#allocation3 + $0x2d8] sm:$0xf0]  ;;  %v4160_v32 = vor.u32 %v5615_v24, %v4159_v23  ;;  %v5607_v48 = vld [vmem:[#allocation3 + $0x294] sm:$0xf0] }
  0x47   :  { %751 = vmatpush.bf16.msrb.mxu0 %v3980_v33  ;;  %v3908_v33 = vor.u32 %v5549_v25, %v3905_v27  ;;  %v5545_v37 = vld [vmem:[#allocation3 + $0xac] sm:$0xf]  ;;  %v4164_v38 = vor.u32 %v5613_v30, %v4161_v31  ;;  %v4017_v41 = vld [vmem:[#allocation3 + $0x1b8] sm:$0xf0]  ;;  %v4111_v60 = vld [vmem:[#allocation3 + $0x268] sm:$0xf] }
  0x48   :  { %765 = vmatpush.bf16.msrb.mxu1 %v4108_v34  ;;  %v4036_v34 = vor.u32 %v5581_v28, %v4033_v29  ;;  %v5577_v40 = vld [vmem:[#allocation3 + $0x1ac] sm:$0xf]  ;;  %v4145_v43 = vld [vmem:[#allocation3 + $0x2b8] sm:$0xf0]  ;;  %v4095_v10 = vld [vmem:[#allocation3 + $0x248] sm:$0xf] }
  0x49   :  { %779 = vmatpush.bf16.msrb.mxu2 %v3856_v35  ;;  %793 = vmatpush.bf16.msrb.mxu3 %v3984_v39  ;;  %v4143_v35 = vld [vmem:[#allocation3 + $0x2a8] sm:$0xf]  ;;  %v3889_v39 = vld [vmem:[#allocation3 + $0xb8] sm:$0xf0]  ;;  %v5609_v42 = vld [vmem:[#allocation3 + $0x2ac] sm:$0xf] }
  0x4a   :  { %v4144_v44 = vor.u32 %v5611_v36, %v4143_v35  ;;  %v5541_v49 = vld [vmem:[#allocation3 + $0x8c] sm:$0xf]  ;;  %v4148_v50 = vor.u32 %v5609_v42, %v4145_v43  ;;  %v4001_v53 = vld [vmem:[#allocation3 + $0x198] sm:$0xf0]  ;;  %v5595_v23 = vld [vmem:[#allocation3 + $0x234] sm:$0xf0] }
  0x4b   :  { %752 = vmatpush.bf16.msrb.mxu0 %v3964_v45  ;;  %v3892_v45 = vor.u32 %v5545_v37, %v3889_v39  ;;  %v5573_v52 = vld [vmem:[#allocation3 + $0x18c] sm:$0xf]  ;;  %v4129_v55 = vld [vmem:[#allocation3 + $0x298] sm:$0xf0]  ;;  %v5591_v35 = vld [vmem:[#allocation3 + $0x214] sm:$0xf0] }
  0x4c   :  { %766 = vmatpush.bf16.msrb.mxu1 %v4092_v46  ;;  %v4020_v46 = vor.u32 %v5577_v40, %v4017_v41  ;;  %v5605_v54 = vld [vmem:[#allocation3 + $0x28c] sm:$0xf]  ;;  %v4004_v59 = vor.u32 %v5573_v52, %v4001_v53  ;;  %v3857_v0 = vld [vmem:[#allocation3 + $0x78] sm:$0xf0]  ;;  %v4267_v43 = vld [vmem:[#allocation5 + $0x2e8] sm:$0xf] }
  0x4d   :  { %780 = vmatpush.bf16.msrb.mxu2 %v3840_v47  ;;  %794 = vmatpush.bf16.msrb.mxu3 %v3968_v51  ;;  %v4127_v47 = vld [vmem:[#allocation3 + $0x288] sm:$0xf]  ;;  %v3873_v51 = vld [vmem:[#allocation3 + $0x98] sm:$0xf0]  ;;  %v4132_v63 = vor.u32 %v5605_v54, %v4129_v55  ;;  %v5569_v1 = vld [vmem:[#allocation3 + $0x16c] sm:$0xf] }
  0x4e   :  { %v4128_v56 = vor.u32 %v5607_v48, %v4127_v47  ;;  %v5601_v3 = vld [vmem:[#allocation3 + $0x26c] sm:$0xf]  ;;  %v4113_v4 = vld [vmem:[#allocation3 + $0x278] sm:$0xf0]  ;;  %v5738_v47 = vld [vmem:[#allocation5 + $0x3b0] sm:$0xf0] }
  0x4f   :  { %753 = vmatpush.bf16.msrb.mxu0 %v3948_v57  ;;  %v3876_v57 = vor.u32 %v5541_v49, %v3873_v51  ;;  %v5533_v12 = vld [vmem:[#allocation3 + $0x4c] sm:$0xf]  ;;  %v4116_v13 = vor.u32 %v5601_v3, %v4113_v4  ;;  %v3841_v14 = vld [vmem:[#allocation3 + $0x58] sm:$0xf0]  ;;  %v4255_v53 = vld [vmem:[#allocation5 + $0x2d0] sm:$0xf] }
  0x50   :  { %767 = vmatpush.bf16.msrb.mxu1 %v4076_v61  ;;  %v5603_v61 = vld [vmem:[#allocation3 + $0x274] sm:$0xf0]  ;;  %v5597_v17 = vld [vmem:[#allocation3 + $0x24c] sm:$0xf]  ;;  %v4097_v18 = vld [vmem:[#allocation3 + $0x258] sm:$0xf0] }
  0x51   :  { %781 = vmatpush.bf16.msrb.mxu2 %v3824_v62  ;;  %795 = vmatpush.bf16.msrb.mxu3 %v3952_v2  ;;  %v5537_v62 = vld [vmem:[#allocation3 + $0x6c] sm:$0xf]  ;;  %v3985_v2 = vld [vmem:[#allocation3 + $0x178] sm:$0xf0]  ;;  %v4112_v6 = vor.u32 %v5603_v61, %v4111_v60  ;;  %v4100_v25 = vor.u32 %v5597_v17, %v4097_v18  ;;  %v4351_v55 = vld [vmem:[#allocation5 + $0x390] sm:$0xf] }
  0x52   :  { %v3860_v7 = vor.u32 %v5537_v62, %v3857_v0  ;;  %v3988_v8 = vor.u32 %v5569_v1, %v3985_v2  ;;  %v5529_v24 = vld [vmem:[#allocation3 + $0x2c] sm:$0xf]  ;;  %v3953_v28 = vld [vmem:[#allocation3 + $0x138] sm:$0xf0]  ;;  %v4243_v60 = vld [vmem:[#allocation5 + $0x2b8] sm:$0xf] }
  0x53   :  { %754 = vmatpush.bf16.msrb.mxu0 %v3932_v11  ;;  %v5599_v11 = vld [vmem:[#allocation3 + $0x254] sm:$0xf0]  ;;  %v5561_v27 = vld [vmem:[#allocation3 + $0x12c] sm:$0xf]  ;;  %v4081_v30 = vld [vmem:[#allocation3 + $0x238] sm:$0xf0] }
  0x54   :  { %768 = vmatpush.bf16.msrb.mxu1 %v4060_v15  ;;  %v5565_v15 = vld [vmem:[#allocation3 + $0x14c] sm:$0xf]  ;;  %v3809_v37 = vld [vmem:[#allocation3 + $0x18] sm:$0xf0]  ;;  %v5708_v61 = vld [vmem:[#allocation5 + $0x2c0] sm:$0xf0] }
  0x55   :  { %782 = vmatpush.bf16.msrb.mxu2 %v3808_v16  ;;  %796 = vmatpush.bf16.msrb.mxu3 %v3936_v19  ;;  %v3969_v16 = vld [vmem:[#allocation3 + $0x158] sm:$0xf0]  ;;  %v4096_v19 = vor.u32 %v5599_v11, %v4095_v10  ;;  %v5593_v29 = vld [vmem:[#allocation3 + $0x22c] sm:$0xf]  ;;  %v4339_v62 = vld [vmem:[#allocation5 + $0x378] sm:$0xf]  ;;  %v4244_v0 = vor.u32 %v5708_v61, %v4243_v60 }
  0x56   :  { %755 = vmatmul.bf16.vlgmr.msrb.gmra.mxu0 %v6136_v5  ;;  %v5525_v36 = vld [vmem:[#allocation3 + $0xc] sm:$0xf]  ;;  %v3937_v40 = vld [vmem:[#allocation3 + $0x118] sm:$0xf0]  ;;  %v4231_v2 = vld [vmem:[#allocation5 + $0x2a0] sm:$0xf] }
  0x57   :  { %803 = vmatpush.bf16.msra.mxu0 %v4176_v20  ;;  %769 = vmatmul.bf16.vlgmr.msrb.gmra.mxu1 %v6145_v9  ;;  %v3844_v20 = vor.u32 %v5533_v12, %v3841_v14  ;;  %v5557_v39 = vld [vmem:[#allocation3 + $0x10c] sm:$0xf]  ;;  %v4065_v42 = vld [vmem:[#allocation3 + $0x218] sm:$0xf0]  ;;  %v3812_v48 = vor.u32 %v5525_v36, %v3809_v37  ;;  %v4327_v4 = vld [vmem:[#allocation5 + $0x360] sm:$0xf] }
  0x58   :  { %817 = vmatpush.bf16.msra.mxu1 %v3924_v21  ;;  %783 = vmatmul.bf16.vlgmr.msrb.gmra.mxu2 %v6127_v58  ;;  %v3972_v21 = vor.u32 %v5565_v15, %v3969_v16  ;;  %v5589_v41 = vld [vmem:[#allocation3 + $0x20c] sm:$0xf]  ;;  %v3940_v49 = vor.u32 %v5557_v39, %v3937_v40  ;;  %v5711_v54 = vld [vmem:[#allocation5 + $0x2d8] sm:$0xf0]  ;;  %v4219_v10 = vld [vmem:[#allocation5 + $0x288] sm:$0xf] }
  0x59   :  { %831 = vmatpush.bf16.msra.mxu2 %v4052_v22  ;;  %845 = vmatpush.bf16.msra.mxu3 %v4180_v26  ;;  %v4079_v22 = vld [vmem:[#allocation3 + $0x228] sm:$0xf]  ;;  %v3825_v26 = vld [vmem:[#allocation3 + $0x38] sm:$0xf0]  ;;  %v5705_v3 = vld [vmem:[#allocation5 + $0x2a8] sm:$0xf0] }
  0x5a   :  { %797 = vmatmul.bf16.vlgmr.msrb.gmra.mxu3 %v6136_v5  ;;  %v4080_v31 = vor.u32 %v5595_v23, %v4079_v22  ;;  %v5702_v11 = vld [vmem:[#allocation5 + $0x290] sm:$0xf0]  ;;  %v4315_v12 = vld [vmem:[#allocation5 + $0x348] sm:$0xf]  ;;  %v4207_v16 = vld [vmem:[#allocation5 + $0x270] sm:$0xf] }
  0x5b   :  { %804 = vmatpush.bf16.msra.mxu0 %v4160_v32  ;;  %v4063_v32 = vld [vmem:[#allocation3 + $0x208] sm:$0xf]  ;;  %v4220_v14 = vor.u32 %v5702_v11, %v4219_v10  ;;  %v5699_v17 = vld [vmem:[#allocation5 + $0x278] sm:$0xf0]  ;;  %v4195_v22 = vld [vmem:[#allocation5 + $0x258] sm:$0xf] }
  0x5c   :  { %818 = vmatpush.bf16.msra.mxu1 %v3908_v33  ;;  %v3828_v33 = vor.u32 %v5529_v24, %v3825_v26  ;;  %v4208_v18 = vor.u32 %v5699_v17, %v4207_v16  ;;  %v5696_v23 = vld [vmem:[#allocation5 + $0x260] sm:$0xf0]  ;;  %v4291_v24 = vld [vmem:[#allocation5 + $0x318] sm:$0xf]  ;;  %v5737_v36 = vld [vmem:[#allocation5 + $0x3ac] sm:$0xf] }
  0x5d   :  { %832 = vmatpush.bf16.msra.mxu2 %v4036_v34  ;;  %846 = vmatpush.bf16.msra.mxu3 %v4164_v38  ;;  %v3956_v34 = vor.u32 %v5561_v27, %v3953_v28  ;;  %v4084_v38 = vor.u32 %v5593_v29, %v4081_v30  ;;  %v5720_v26 = vld [vmem:[#allocation5 + $0x320] sm:$0xf0]  ;;  %v4183_v27 = vld [vmem:[#allocation5 + $0x240] sm:$0xf]  ;;  %v5693_v28 = vld [vmem:[#allocation5 + $0x248] sm:$0xf0] }
  0x5e   :  { %v4292_v29 = vor.u32 %v5720_v26, %v4291_v24  ;;  %v4184_v30 = vor.u32 %v5693_v28, %v4183_v27  ;;  %v4365_v37 = vld [vmem:[#allocation5 + $0x3b4] sm:$0xf0]  ;;  %v5710_v40 = vld [vmem:[#allocation5 + $0x2d4] sm:$0xf]  ;;  %v5759_v60 = vld [vmem:[#allocation5 + $0x458] sm:$0xf0] }
  0x5f   :  { %805 = vmatpush.bf16.msra.mxu0 %v4144_v44  ;;  %v5714_v44 = vld [vmem:[#allocation5 + $0x2f0] sm:$0xf0]  ;;  %v4368_v39 = vor.u32 %v5737_v36, %v4365_v37  ;;  %v4543_v61 = vld [vmem:[#allocation5 + $0x510] sm:$0xf]  ;;  %v5756_v10 = vld [vmem:[#allocation5 + $0x440] sm:$0xf0] }
  0x60   :  { %819 = vmatpush.bf16.msra.mxu1 %v3892_v45  ;;  %v4064_v45 = vor.u32 %v5591_v35, %v4063_v32  ;;  %v4268_v51 = vor.u32 %v5714_v44, %v4267_v43  ;;  %v5717_v32 = vld [vmem:[#allocation5 + $0x308] sm:$0xf0]  ;;  %v4269_v35 = vld [vmem:[#allocation5 + $0x2f4] sm:$0xf0]  ;;  %v5734_v43 = vld [vmem:[#allocation5 + $0x394] sm:$0xf] }
  0x61   :  { %833 = vmatpush.bf16.msra.mxu2 %v4020_v46  ;;  %847 = vmatpush.bf16.msra.mxu3 %v4148_v50  ;;  %v4363_v46 = vld [vmem:[#allocation5 + $0x3a8] sm:$0xf]  ;;  %v4068_v50 = vor.u32 %v5589_v41, %v4065_v42  ;;  %v4257_v41 = vld [vmem:[#allocation5 + $0x2dc] sm:$0xf0]  ;;  %v4531_v11 = vld [vmem:[#allocation5 + $0x4f8] sm:$0xf] }
  0x62   :  { %v4364_v52 = vor.u32 %v5738_v47, %v4363_v46  ;;  %v4260_v42 = vor.u32 %v5710_v40, %v4257_v41  ;;  %v4353_v44 = vld [vmem:[#allocation5 + $0x39c] sm:$0xf0]  ;;  %v5762_v47 = vld [vmem:[#allocation5 + $0x470] sm:$0xf0]  ;;  %v4221_v16 = vld [vmem:[#allocation5 + $0x294] sm:$0xf0] }
  0x63   :  { %806 = vmatpush.bf16.msra.mxu0 %v4128_v56  ;;  %v5735_v56 = vld [vmem:[#allocation5 + $0x398] sm:$0xf0]  ;;  %v4356_v46 = vor.u32 %v5734_v43, %v4353_v44  ;;  %v5698_v27 = vld [vmem:[#allocation5 + $0x274] sm:$0xf]  ;;  %v4209_v28 = vld [vmem:[#allocation5 + $0x27c] sm:$0xf0] }
  0x64   :  { %820 = vmatpush.bf16.msra.mxu1 %v3876_v57  ;;  %v4256_v57 = vor.u32 %v5711_v54, %v4255_v53  ;;  %v4245_v53 = vld [vmem:[#allocation5 + $0x2c4] sm:$0xf0]  ;;  %v5750_v36 = vld [vmem:[#allocation5 + $0x410] sm:$0xf0]  ;;  %v82_v41 = vld [vmem:[%s6411_s0 + $0x8] sm:$0xf] }
  0x65   :  { %834 = vmatpush.bf16.msra.mxu2 %v4004_v59  ;;  %848 = vmatpush.bf16.msra.mxu3 %v4132_v63  ;;  %v4352_v59 = vor.u32 %v5735_v56, %v4351_v55  ;;  %v5732_v63 = vld [vmem:[#allocation5 + $0x380] sm:$0xf0]  ;;  %v5731_v55 = vld [vmem:[#allocation5 + $0x37c] sm:$0xf]  ;;  %v4341_v56 = vld [vmem:[#allocation5 + $0x384] sm:$0xf0] }
  0x66   :  { %v4340_v1 = vor.u32 %v5732_v63, %v4339_v62  ;;  %v5783_v63 = vld [vmem:[#allocation5 + $0x518] sm:$0xf0]  ;;  %v4507_v37 = vld [vmem:[#allocation5 + $0x4c8] sm:$0xf]  ;;  %v5774_v40 = vld [vmem:[#allocation5 + $0x4d0] sm:$0xf0] }
  0x67   :  { %807 = vmatpush.bf16.msra.mxu0 %v4112_v6  ;;  %v5729_v6 = vld [vmem:[#allocation5 + $0x368] sm:$0xf0]  ;;  %v5695_v43 = vld [vmem:[#allocation5 + $0x25c] sm:$0xf]  ;;  %v4197_v44 = vld [vmem:[#allocation5 + $0x264] sm:$0xf0] }
  0x68   :  { %821 = vmatpush.bf16.msra.mxu1 %v3860_v7  ;;  %v4232_v7 = vor.u32 %v5705_v3, %v4231_v2  ;;  %v4233_v2 = vld [vmem:[#allocation5 + $0x2ac] sm:$0xf0]  ;;  %86 = vst [vmem:[#allocation2 + $0x8] sm:$0xf] %v82_v41  ;;  %v84_v41 = vld [vmem:[%s6411_s0 + $0x14] sm:$0xf] }
  0x69   :  { %835 = vmatpush.bf16.msra.mxu2 %v3988_v8  ;;  %849 = vmatpush.bf16.msra.mxu3 %v4116_v13  ;;  %v4328_v8 = vor.u32 %v5729_v6, %v4327_v4  ;;  %v5726_v13 = vld [vmem:[#allocation5 + $0x350] sm:$0xf0]  ;;  %v5728_v4 = vld [vmem:[#allocation5 + $0x364] sm:$0xf]  ;;  %v4329_v6 = vld [vmem:[#allocation5 + $0x36c] sm:$0xf0] }
  0x6a   :  { %v4316_v15 = vor.u32 %v5726_v13, %v4315_v12  ;;  %v5780_v13 = vld [vmem:[#allocation5 + $0x500] sm:$0xf0]  ;;  %88 = vst [vmem:[#allocation2 + $0x30] sm:$0xf] %v84_v41  ;;  %v4389_v41 = vld [vmem:[#allocation5 + $0x3e4] sm:$0xf0] }
  0x6b   :  { %808 = vmatpush.bf16.msra.mxu0 %v4096_v19  ;;  %v4303_v19 = vld [vmem:[#allocation5 + $0x330] sm:$0xf]  ;;  %vm3775_vm0 = vcmask 7168  }
  0x6c   :  { %822 = vmatpush.bf16.msra.mxu1 %v3844_v20  ;;  %v5723_v20 = vld [vmem:[#allocation5 + $0x338] sm:$0xf0] }
  0x6d   :  { %836 = vmatpush.bf16.msra.mxu2 %v3972_v21  ;;  %850 = vmatpush.bf16.msra.mxu3 %v4100_v25  ;;  %v4304_v21 = vor.u32 %v5723_v20, %v4303_v19  ;;  %v4196_v25 = vor.u32 %v5696_v23, %v4195_v22  ;;  %v4317_v19 = vld [vmem:[#allocation5 + $0x354] sm:$0xf0]  ;;  %v5753_v22 = vld [vmem:[#allocation5 + $0x428] sm:$0xf0]  ;;  %v4519_v23 = vld [vmem:[#allocation5 + $0x4e0] sm:$0xf] }
  0x6f   :  { %809 = vmatpush.bf16.msra.mxu0 %v4080_v31  ;;  %v4279_v31 = vld [vmem:[#allocation5 + $0x300] sm:$0xf] }
  0x70   :  { %823 = vmatpush.bf16.msra.mxu1 %v3828_v33  ;;  %v5713_v33 = vld [vmem:[#allocation5 + $0x2ec] sm:$0xf] }
  0x71   :  { %837 = vmatpush.bf16.msra.mxu2 %v3956_v34  ;;  %851 = vmatpush.bf16.msra.mxu3 %v4084_v38  ;;  %v4280_v34 = vor.u32 %v5717_v32, %v4279_v31  ;;  %v4272_v38 = vor.u32 %v5713_v33, %v4269_v35  ;;  %v5722_v31 = vld [vmem:[#allocation5 + $0x334] sm:$0xf]  ;;  %v4305_v32 = vld [vmem:[#allocation5 + $0x33c] sm:$0xf0]  ;;  %v4411_v35 = vld [vmem:[#allocation5 + $0x408] sm:$0xf] }
  0x73   :  { %810 = vmatpush.bf16.msra.mxu0 %v4064_v45  ;;  %v4459_v45 = vld [vmem:[#allocation5 + $0x468] sm:$0xf] }
  0x74   :  { %824 = vmatpush.bf16.msra.mxu1 %v3812_v48  ;;  %v4555_v48 = vld [vmem:[#allocation5 + $0x528] sm:$0xf] }
  0x75   :  { %838 = vmatpush.bf16.msra.mxu2 %v3940_v49  ;;  %852 = vmatpush.bf16.msra.mxu3 %v4068_v50  ;;  %v5786_v49 = vld [vmem:[#allocation5 + $0x530] sm:$0xf0]  ;;  %v4460_v50 = vor.u32 %v5762_v47, %v4459_v45  ;;  %v4200_v45 = vor.u32 %v5695_v43, %v4197_v44  ;;  %v4293_v47 = vld [vmem:[#allocation5 + $0x324] sm:$0xf0]  ;;  %v5755_v43 = vld [vmem:[#allocation5 + $0x43c] sm:$0xf] }
  0x76   :  { %811 = vmatmul.bf16.vlgmr.msra.gmra.mxu0 %v6145_v9  ;;  %v4437_v44 = vld [vmem:[#allocation5 + $0x444] sm:$0xf0] }
  0x77   :  { %1631 = vmatpush.bf16.msrb.mxu0 %v4268_v51  ;;  %825 = vmatmul.bf16.vlgmr.msra.gmra.mxu1 %v6127_v58  ;;  %v4556_v51 = vor.u32 %v5786_v49, %v4555_v48  ;;  %v4399_v49 = vld [vmem:[#allocation5 + $0x3f0] sm:$0xf] }
  0x78   :  { %1645 = vmatpush.bf16.msrb.mxu1 %v4364_v52  ;;  %839 = vmatmul.bf16.vlgmr.msra.gmra.mxu2 %v6136_v5  ;;  %v5707_v52 = vld [vmem:[#allocation5 + $0x2bc] sm:$0xf] }
  0x79   :  { %853 = vmatmul.bf16.vlgmr.msra.gmra.mxu3 %v6145_v9  ;;  %1659 = vmatpush.bf16.msrb.mxu2 %v4460_v50  ;;  %v4248_v54 = vor.u32 %v5707_v52, %v4245_v53  ;;  %v5747_v50 = vld [vmem:[#allocation5 + $0x3f8] sm:$0xf0]  ;;  %v4495_v52 = vld [vmem:[#allocation5 + $0x4b0] sm:$0xf] }
  0x7a   :  { %1673 = vmatpush.bf16.msrb.mxu3 %v4556_v51  ;;  %v4400_v51 = vor.u32 %v5747_v50, %v4399_v49  ;;  %v5771_v53 = vld [vmem:[#allocation5 + $0x4b8] sm:$0xf0]  ;;  %v4533_v49 = vld [vmem:[#allocation5 + $0x504] sm:$0xf0] }
  0x7b   :  { %1632 = vmatpush.bf16.msrb.mxu0 %v4256_v57  ;;  %v4344_v57 = vor.u32 %v5731_v55, %v4341_v56  ;;  %v4496_v56 = vor.u32 %v5771_v53, %v4495_v52 }
  0x7c   :  { %1646 = vmatpush.bf16.msrb.mxu1 %v4352_v59  ;;  %v4447_v59 = vld [vmem:[#allocation5 + $0x450] sm:$0xf] }
  0x7d   :  { %v4448_v62 = vor.u32 %v5759_v60, %v4447_v59  ;;  %v5716_v60 = vld [vmem:[#allocation5 + $0x304] sm:$0xf] }
  0x7f   :  { %1633 = vmatpush.bf16.msrb.mxu0 %v4244_v0  ;;  %v4544_v0 = vor.u32 %v5783_v63, %v4543_v61  ;;  %1660 = vmatpush.bf16.msrb.mxu2 %v4448_v62  ;;  %v4281_v61 = vld [vmem:[#allocation5 + $0x30c] sm:$0xf0]  ;;  %v4387_v63 = vld [vmem:[#allocation5 + $0x3d8] sm:$0xf] }
  0x80   :  { %1647 = vmatpush.bf16.msrb.mxu1 %v4340_v1  ;;  %v5704_v1 = vld [vmem:[#allocation5 + $0x2a4] sm:$0xf]  ;;  %v4284_v62 = vor.u32 %v5716_v60, %v4281_v61  ;;  %v4521_v61 = vld [vmem:[#allocation5 + $0x4ec] sm:$0xf0] }
  0x81   :  { %v4236_v3 = vor.u32 %v5704_v1, %v4233_v2  ;;  %1674 = vmatpush.bf16.msrb.mxu3 %v4544_v0  ;;  %v5744_v0 = vld [vmem:[#allocation5 + $0x3e0] sm:$0xf0] }
  0x82   :  { %v4388_v2 = vor.u32 %v5744_v0, %v4387_v63 }
  0x83   :  { %1634 = vmatpush.bf16.msrb.mxu0 %v4232_v7  ;;  %v4332_v7 = vor.u32 %v5728_v4, %v4329_v6  ;;  %v5768_v4 = vld [vmem:[#allocation5 + $0x4a0] sm:$0xf0] }
  0x84   :  { %1648 = vmatpush.bf16.msrb.mxu1 %v4328_v8  ;;  %v4435_v8 = vld [vmem:[#allocation5 + $0x438] sm:$0xf] }
  0x85   :  { %v4436_v12 = vor.u32 %v5756_v10, %v4435_v8  ;;  %v81_v10 = vld [vmem:[%s6411_s0] sm:$0xff] }
  0x86   :  { %85 = vst [vmem:[#allocation2] sm:$0xff] %v81_v10  ;;  %v4509_v10 = vld [vmem:[#allocation5 + $0x4d4] sm:$0xf0] }
  0x87   :  { %1635 = vmatpush.bf16.msrb.mxu0 %v4220_v14  ;;  %v4532_v14 = vor.u32 %v5780_v13, %v4531_v11  ;;  %1661 = vmatpush.bf16.msrb.mxu2 %v4436_v12  ;;  %v4375_v13 = vld [vmem:[#allocation5 + $0x3c0] sm:$0xf] }
  0x88   :  { %1649 = vmatpush.bf16.msrb.mxu1 %v4316_v15  ;;  %v5701_v15 = vld [vmem:[#allocation5 + $0x28c] sm:$0xf] }
  0x89   :  { %v4224_v17 = vor.u32 %v5701_v15, %v4221_v16  ;;  %1675 = vmatpush.bf16.msrb.mxu3 %v4532_v14  ;;  %v5741_v14 = vld [vmem:[#allocation5 + $0x3c8] sm:$0xf0]  ;;  %v4471_v15 = vld [vmem:[#allocation5 + $0x480] sm:$0xf] }
  0x8a   :  { %v4376_v16 = vor.u32 %v5741_v14, %v4375_v13  ;;  %v4275_v14 = vld [vmem:[#allocation5 + $0x2f0] sm:$0xf] }
  0x8b   :  { %1636 = vmatpush.bf16.msrb.mxu0 %v4208_v18  ;;  %v5725_v18 = vld [vmem:[#allocation5 + $0x34c] sm:$0xf] }
  0x8c   :  { %1650 = vmatpush.bf16.msrb.mxu1 %v4304_v21  ;;  %v4320_v20 = vor.u32 %v5725_v18, %v4317_v19  ;;  %v4423_v21 = vld [vmem:[#allocation5 + $0x420] sm:$0xf] }
  0x8d   :  { %v4424_v24 = vor.u32 %v5753_v22, %v4423_v21  ;;  %v4461_v21 = vld [vmem:[#allocation5 + $0x474] sm:$0xf0]  ;;  %v5785_v22 = vld [vmem:[#allocation5 + $0x52c] sm:$0xf] }
  0x8f   :  { %1637 = vmatpush.bf16.msrb.mxu0 %v4196_v25  ;;  %v5777_v25 = vld [vmem:[#allocation5 + $0x4e8] sm:$0xf0]  ;;  %1662 = vmatpush.bf16.msrb.mxu2 %v4424_v24 }
  0x90   :  { %1651 = vmatpush.bf16.msrb.mxu1 %v4292_v29  ;;  %v4520_v26 = vor.u32 %v5777_v25, %v4519_v23  ;;  %v4557_v25 = vld [vmem:[#allocation5 + $0x534] sm:$0xf0] }
  0x92   :  { %1676 = vmatpush.bf16.msrb.mxu3 %v4520_v26 }
  0x93   :  { %1638 = vmatpush.bf16.msrb.mxu0 %v4184_v30  ;;  %v4212_v30 = vor.u32 %v5698_v27, %v4209_v28  ;;  %v4560_v27 = vor.u32 %v5785_v22, %v4557_v25  ;;  %v83_v28 = vld [vmem:[%s6411_s0 + $0xc] sm:$0xff] }
  0x94   :  { %1652 = vmatpush.bf16.msrb.mxu1 %v4280_v34  ;;  %v4308_v34 = vor.u32 %v5722_v31, %v4305_v32  ;;  %v5782_v31 = vld [vmem:[#allocation5 + $0x514] sm:$0xf]  ;;  %87 = vst [vmem:[#allocation2 + $0x28] sm:$0xff] %v83_v28 }
  0x97   :  { %1687 = vmatpush.bf16.msra.mxu0 %v4272_v38  ;;  %v6157_v38 = vld [vmem:[#allocation8] ss:$8 sm:$0xf] }
  0x98   :  { %1701 = vmatpush.bf16.msra.mxu1 %v4368_v39  ;;  %v4412_v39 = vor.u32 %v5750_v36, %v4411_v35  ;;  %v187_v55 = vperm.slane %v6157_v38, 0  ;;  %v188_v11 = vperm.slane %v6157_v38, 1 }
  0x9a   :  { %1663 = vmatpush.bf16.msrb.mxu2 %v4412_v39 }
  0x9b   :  { %1688 = vmatpush.bf16.msra.mxu0 %v4260_v42  ;;  %v4508_v42 = vor.u32 %v5774_v40, %v4507_v37 }
  0x9c   :  { %1702 = vmatpush.bf16.msra.mxu1 %v4356_v46  ;;  %v5719_v46 = vld [vmem:[#allocation5 + $0x31c] sm:$0xf] }
  0x9d   :  { %1677 = vmatpush.bf16.msrb.mxu3 %v4508_v42  ;;  %v4296_v48 = vor.u32 %v5719_v46, %v4293_v47 }
  0x9e   :  { %1664 = vmatpush.bf16.msrb.mxu2 %v4400_v51 }
  0x9f   :  { %1689 = vmatpush.bf16.msra.mxu0 %v4248_v54  ;;  %v5692_v54 = vld [vmem:[#allocation5 + $0x244] sm:$0xf] }
  0xa0   :  { %1703 = vmatpush.bf16.msra.mxu1 %v4344_v57  ;;  %v4185_v57 = vld [vmem:[#allocation5 + $0x24c] sm:$0xf0] }
  0xa1   :  { %v4188_v59 = vor.u32 %v5692_v54, %v4185_v57  ;;  %1678 = vmatpush.bf16.msrb.mxu3 %v4496_v56  ;;  %v4425_v56 = vld [vmem:[#allocation5 + $0x42c] sm:$0xf0]  ;;  %v5776_v57 = vld [vmem:[#allocation5 + $0x4e4] sm:$0xf] }
  0xa2   :  { %1665 = vmatpush.bf16.msrb.mxu2 %v4388_v2  ;;  %v4524_v63 = vor.u32 %v5776_v57, %v4521_v61 }
  0xa3   :  { %1690 = vmatpush.bf16.msra.mxu0 %v4236_v3  ;;  %v4483_v3 = vld [vmem:[#allocation5 + $0x498] sm:$0xf] }
  0xa4   :  { %1704 = vmatpush.bf16.msra.mxu1 %v4332_v7  ;;  %v4484_v8 = vor.u32 %v5768_v4, %v4483_v3  ;;  %v5749_v3 = vld [vmem:[#allocation5 + $0x40c] sm:$0xf]  ;;  %v4413_v4 = vld [vmem:[#allocation5 + $0x414] sm:$0xf0] }
  0xa6   :  { %1679 = vmatpush.bf16.msrb.mxu3 %v4484_v8  ;;  %1666 = vmatpush.bf16.msrb.mxu2 %v4376_v16  ;;  %v4416_v8 = vor.u32 %v5749_v3, %v4413_v4  ;;  %v5746_v16 = vld [vmem:[#allocation5 + $0x3f4] sm:$0xf]  ;;  %v190_v4 = vperm.slane %v6157_v38, 3 }
  0xa7   :  { %1691 = vmatpush.bf16.msra.mxu0 %v4224_v17  ;;  %v5765_v17 = vld [vmem:[#allocation5 + $0x488] sm:$0xf0] }
  0xa8   :  { %1705 = vmatpush.bf16.msra.mxu1 %v4320_v20  ;;  %v4472_v19 = vor.u32 %v5765_v17, %v4471_v15  ;;  %v5761_v20 = vld [vmem:[#allocation5 + $0x46c] sm:$0xf]  ;;  %v5715_v15 = vld [vmem:[#allocation5 + $0x2f8] sm:$0xf0]  ;;  %v4401_v17 = vld [vmem:[#allocation5 + $0x3fc] sm:$0xf0] }
  0xa9   :  { %v4464_v24 = vor.u32 %v5761_v20, %v4461_v21  ;;  %v4371_v20 = vld [vmem:[#allocation5 + $0x3b0] sm:$0xf]  ;;  %v5739_v21 = vld [vmem:[#allocation5 + $0x3b8] sm:$0xf0]  ;;  %v4404_v22 = vor.u32 %v5746_v16, %v4401_v17 }
  0xaa   :  { %1680 = vmatpush.bf16.msrb.mxu3 %v4472_v19 }
  0xab   :  { %1692 = vmatpush.bf16.msra.mxu0 %v4212_v30  ;;  %1715 = vmatpush.bf16.msra.mxu2 %v4464_v24  ;;  %v4449_v30 = vld [vmem:[#allocation5 + $0x45c] sm:$0xf0] }
  0xac   :  { %1706 = vmatpush.bf16.msra.mxu1 %v4308_v34  ;;  %v4545_v34 = vld [vmem:[#allocation5 + $0x51c] sm:$0xf0] }
  0xad   :  { %v4548_v36 = vor.u32 %v5782_v31, %v4545_v34  ;;  %v4359_v34 = vld [vmem:[#allocation5 + $0x398] sm:$0xf] }
  0xae   :  { %1729 = vmatpush.bf16.msra.mxu3 %v4560_v27 }
  0xaf   :  { %1693 = vmatpush.bf16.msra.mxu0 %v4200_v45  ;;  %v5779_v45 = vld [vmem:[#allocation5 + $0x4fc] sm:$0xf] }
  0xb0   :  { %1707 = vmatpush.bf16.msra.mxu1 %v4296_v48  ;;  %v4440_v48 = vor.u32 %v5755_v43, %v4437_v44  ;;  %v4536_v50 = vor.u32 %v5779_v45, %v4533_v49  ;;  %v4485_v43 = vld [vmem:[#allocation5 + $0x4a4] sm:$0xf0] }
  0xb2   :  { %1730 = vmatpush.bf16.msra.mxu3 %v4548_v36  ;;  %v5743_v36 = vld [vmem:[#allocation5 + $0x3dc] sm:$0xf] }
  0xb3   :  { %v700_v29 = vpop.f32.mrf.mxu0  ;;  %1694 = vmatpush.bf16.msra.mxu0 %v4188_v59  ;;  %v4392_v44 = vor.u32 %v5743_v36, %v4389_v41 }
  0xb4   :  { %v714_v33 = vpop.f32.mrf.mxu1  ;;  %v701_v6 = vadd.f32 %v700_v29, %v187_v55  ;;  %1708 = vmatpush.bf16.msra.mxu1 %v4284_v62  ;;  %v5758_v29 = vld [vmem:[#allocation5 + $0x454] sm:$0xf] }
  0xb6   :  { %v715_v18 = vadd.f32 %v714_v33, %v701_v6  ;;  %v4452_v33 = vor.u32 %v5758_v29, %v4449_v30  ;;  %1731 = vmatpush.bf16.msra.mxu3 %v4536_v50  ;;  %v5773_v6 = vld [vmem:[#allocation5 + $0x4cc] sm:$0xf]  ;;  %v4263_v29 = vld [vmem:[#allocation5 + $0x2d8] sm:$0xf]  ;;  %v5712_v30 = vld [vmem:[#allocation5 + $0x2e0] sm:$0xf0] }
  0xb7   :  { %v5740_v50 = vld [vmem:[#allocation5 + $0x3c4] sm:$0xf] }
  0xb8   :  { %1716 = vmatpush.bf16.msra.mxu2 %v4452_v33  ;;  %v4372_v33 = vor.u32 %v5739_v21, %v4371_v20  ;;  %v5700_v21 = vld [vmem:[#allocation5 + $0x280] sm:$0xf0] }
  0xba   :  { %1732 = vmatpush.bf16.msra.mxu3 %v4524_v63  ;;  %v5706_v63 = vld [vmem:[#allocation5 + $0x2b0] sm:$0xf0] }
  0xbb   :  { %v702_v1 = vpop.f32.mrf.mxu0  ;;  %v742_v12 = vpop.f32.mrf.mxu3 }
  0xbc   :  { %v716_v7 = vpop.f32.mrf.mxu1  ;;  %v743_v26 = vadd.f32 %v742_v12, %v188_v11  ;;  %v703_v37 = vadd.f32 %v702_v1, %v187_v55  ;;  %1717 = vmatpush.bf16.msra.mxu2 %v4440_v48  ;;  %v5752_v55 = vld [vmem:[#allocation5 + $0x424] sm:$0xf]  ;;  %v4264_v48 = vor.u32 %v5712_v30, %v4263_v29  ;;  %v4203_v29 = vld [vmem:[#allocation5 + $0x260] sm:$0xf] }
  0xbd   :  { %v728_v23 = vpop.f32.mrf.mxu2  ;;  %v4428_v60 = vor.u32 %v5752_v55, %v4425_v56  ;;  %v4473_v56 = vld [vmem:[#allocation5 + $0x48c] sm:$0xf0] }
  0xbe   :  { %v729_v32 = vadd.f32 %v728_v23, %v715_v18  ;;  %v717_v51 = vadd.f32 %v716_v7, %v703_v37  ;;  %v5770_v18 = vld [vmem:[#allocation5 + $0x4b4] sm:$0xf]  ;;  %v4497_v23 = vld [vmem:[#allocation5 + $0x4bc] sm:$0xf0] }
  0xbf   :  { %v4500_v24 = vor.u32 %v5770_v18, %v4497_v23 }
  0xc0   :  { %v859_v46 = vmax.f32 %v729_v32, 0.0  ;;  %1718 = vmatpush.bf16.msra.mxu2 %v4428_v60  ;;  %v4276_v32 = vor.u32 %v5715_v15, %v4275_v14  ;;  %v5727_v14 = vld [vmem:[#allocation5 + $0x358] sm:$0xf0] }
  0xc3   :  { %v744_v42 = vpop.f32.mrf.mxu3 }
  0xc4   :  { %v745_v53 = vadd.f32 %v744_v42, %v188_v11  ;;  %v4512_v11 = vor.u32 %v5773_v6, %v4509_v10  ;;  %1719 = vmatpush.bf16.msra.mxu2 %v4416_v8  ;;  %v5767_v42 = vld [vmem:[#allocation5 + $0x49c] sm:$0xf]  ;;  %v4227_v10 = vld [vmem:[#allocation5 + $0x290] sm:$0xf] }
  0xc5   :  { %v730_v54 = vpop.f32.mrf.mxu2  ;;  %v4488_v45 = vor.u32 %v5767_v42, %v4485_v43 }
  0xc6   :  { %v731_v0 = vadd.f32 %v730_v54, %v717_v51  ;;  %1733 = vmatpush.bf16.msra.mxu3 %v4512_v11  ;;  %v4377_v51 = vld [vmem:[#allocation5 + $0x3cc] sm:$0xf0]  ;;  %v5733_v54 = vld [vmem:[#allocation5 + $0x388] sm:$0xf0] }
  0xc7   :  { %v4380_v55 = vor.u32 %v5740_v50, %v4377_v51  ;;  %v5718_v50 = vld [vmem:[#allocation5 + $0x310] sm:$0xf0]  ;;  %v4651_v51 = vld [vmem:[#allocation5 + $0xa8] sm:$0xf] }
  0xc8   :  { %v863_v12 = vmax.f32 %v731_v0, 0.0  ;;  %1720 = vmatpush.bf16.msra.mxu2 %v4404_v22  ;;  %v4335_v0 = vld [vmem:[#allocation5 + $0x368] sm:$0xf]  ;;  %v5724_v22 = vld [vmem:[#allocation5 + $0x340] sm:$0xf0] }
  0xca   :  { %1734 = vmatpush.bf16.msra.mxu3 %v4500_v24 }
  0xcc   :  { %1721 = vmatpush.bf16.msra.mxu2 %v4392_v44  ;;  %v4191_v44 = vld [vmem:[#allocation5 + $0x248] sm:$0xf] }
  0xce   :  { %1735 = vmatpush.bf16.msra.mxu3 %v4488_v45  ;;  %v5694_v45 = vld [vmem:[#allocation5 + $0x250] sm:$0xf0] }
  0xd0   :  { %1722 = vmatpush.bf16.msra.mxu2 %v4380_v55  ;;  %v5666_v55 = vld [vmem:[#allocation5 + $0x170] sm:$0xf0] }
  0xd3   :  { %v756_v35 = vpop.f32.mrf.mxu0 }
  0xd4   :  { %v757_v39 = vadd.f32 %v756_v35, %v743_v26  ;;  %v770_v40 = vpop.f32.mrf.mxu1  ;;  %v5736_v35 = vld [vmem:[#allocation5 + $0x3a0] sm:$0xf0] }
  0xd5   :  { %v4360_v49 = vor.u32 %v5736_v35, %v4359_v34  ;;  %v5721_v34 = vld [vmem:[#allocation5 + $0x328] sm:$0xf0] }
  0xd6   :  { %v771_v47 = vadd.f32 %v770_v40, %v757_v39 }
  0xd8   :  { %v860_v52 = vmax.f32 %v771_v47, 0.0  ;;  %v5709_v47 = vld [vmem:[#allocation5 + $0x2c8] sm:$0xf0] }
  0xda   :  { %v867_v59 = vpack.c.bf16 %v860_v52, %v859_v46  ;;  %v4251_v46 = vld [vmem:[#allocation5 + $0x2c0] sm:$0xf]  ;;  %v5764_v52 = vld [vmem:[#allocation5 + $0x484] sm:$0xf] }
  0xdb   :  { %v758_v62 = vpop.f32.mrf.mxu0  ;;  %v784_v31 = vpop.f32.mrf.mxu2  ;;  %v4476_v57 = vor.u32 %v5764_v52, %v4473_v56  ;;  %v4252_v60 = vor.u32 %v5709_v47, %v4251_v46 }
  0xdc   :  { %871 = vst [vmem:[#allocation2 + $0xc] sm:$0xff] %v867_v59  ;;  %v759_v1 = vadd.f32 %v758_v62, %v745_v53  ;;  %v772_v2 = vpop.f32.mrf.mxu1  ;;  %v1103_v25 = vunpack.c.l.b16 %v867_v59  ;;  %v1104_v26 = vunpack.c.h.b16 %v867_v59  ;;  %v4347_v53 = vld [vmem:[#allocation5 + $0x380] sm:$0xf]  ;;  %v189_v59 = vperm.slane %v6157_v38, 2  ;;  %v4239_v62 = vld [vmem:[#allocation5 + $0x2a8] sm:$0xf] }
  0xdd   :  { %v798_v37 = vpop.f32.mrf.mxu3  ;;  %v4348_v61 = vor.u32 %v5733_v54, %v4347_v53  ;;  %1736 = vmatpush.bf16.msra.mxu3 %v4476_v57  ;;  %v4311_v38 = vld [vmem:[#allocation5 + $0x338] sm:$0xf]  ;;  %v5642_v53 = vld [vmem:[#allocation5 + $0xb0] sm:$0xf0]  ;;  %v4747_v54 = vld [vmem:[#allocation5 + $0x168] sm:$0xf] }
  0xde   :  { %v773_v7 = vadd.f32 %v772_v2, %v759_v1  ;;  %v5730_v1 = vld [vmem:[#allocation5 + $0x370] sm:$0xf0]  ;;  %v785_v11 = vadd.f32 %v784_v31, %v189_v59 }
  0xdf   :  { %v4336_v8 = vor.u32 %v5730_v1, %v4335_v0  ;;  %v4748_v0 = vor.u32 %v5666_v55, %v4747_v54  ;;  %v4639_v1 = vld [vmem:[#allocation5 + $0x90] sm:$0xf]  ;;  %v4527_v55 = vld [vmem:[#allocation5 + $0x4e8] sm:$0xf] }
  0xe0   :  { %v864_v13 = vmax.f32 %v773_v7, 0.0  ;;  %v4240_v7 = vor.u32 %v5706_v63, %v4239_v62  ;;  %v799_v20 = vadd.f32 %v798_v37, %v785_v11  ;;  %v4652_v63 = vor.u32 %v5642_v53, %v4651_v51  ;;  %v4563_v11 = vld [vmem:[#allocation5 + $0x530] sm:$0xf]  ;;  %v5754_v53 = vld [vmem:[#allocation5 + $0x430] sm:$0xf0] }
  0xe2   :  { %v869_v19 = vpack.c.bf16 %v864_v13, %v863_v12  ;;  %v5703_v12 = vld [vmem:[#allocation5 + $0x298] sm:$0xf0]  ;;  %v4323_v13 = vld [vmem:[#allocation5 + $0x350] sm:$0xf] }
  0xe3   :  { %v786_v2 = vpop.f32.mrf.mxu2  ;;  %v4228_v17 = vor.u32 %v5703_v12, %v4227_v10  ;;  %v4324_v18 = vor.u32 %v5727_v14, %v4323_v13  ;;  %v5763_v10 = vld [vmem:[#allocation5 + $0x478] sm:$0xf0] }
  0xe4   :  { %873 = vst [vmem:[#allocation2 + $0x34] sm:$0xff] %v869_v19  ;;  %v1107_v27 = vunpack.c.l.b16 %v869_v19  ;;  %v1108_v28 = vunpack.c.h.b16 %v869_v19  ;;  %v4215_v19 = vld [vmem:[#allocation5 + $0x278] sm:$0xf]  ;;  %v787_v30 = vadd.f32 %v786_v2, %v189_v59  ;;  %v5639_v2 = vld [vmem:[#allocation5 + $0x98] sm:$0xf0] }
  0xe5   :  { %v800_v3 = vpop.f32.mrf.mxu3  ;;  %v4640_v13 = vor.u32 %v5639_v2, %v4639_v1  ;;  %v5787_v14 = vld [vmem:[#allocation5 + $0x538] sm:$0xf0]  ;;  %v4419_v1 = vld [vmem:[#allocation5 + $0x410] sm:$0xf] }
  0xe6   :  { %v6173_v39 = vpack.c.b16 %v1107_v27, %v1103_v25  ;;  %v6175_v40 = vpack.c.b16 %v1108_v28, %v1104_v26  ;;  %v4216_v27 = vor.u32 %v5700_v21, %v4215_v19  ;;  %v4312_v28 = vor.u32 %v5724_v22, %v4311_v38  ;;  %v5660_v19 = vld [vmem:[#allocation5 + $0x140] sm:$0xf0]  ;;  %v5751_v2 = vld [vmem:[#allocation5 + $0x418] sm:$0xf0] }
  0xe7   :  { %v801_v46 = vadd.f32 %v800_v3, %v787_v30  ;;  %v4735_v3 = vld [vmem:[#allocation5 + $0x150] sm:$0xf]  ;;  %v4551_v30 = vld [vmem:[#allocation5 + $0x518] sm:$0xf] }
  0xe8   :  { %1639 = vmatmul.bf16.vlgmr.msrb.gmra.mxu0 %v6173_v39  ;;  %1653 = vmatmul.bf16.vlgmr.msrb.gmra.mxu1 %v6175_v40 }
  0xe9   :  { %1743 = vmatpush.bf16.msrb.mxu0 %v4276_v32  ;;  %1757 = vmatpush.bf16.msrb.mxu1 %v4372_v33  ;;  %v5697_v32 = vld [vmem:[#allocation5 + $0x268] sm:$0xf0]  ;;  %v4299_v33 = vld [vmem:[#allocation5 + $0x320] sm:$0xf] }
  0xea   :  { %v4204_v42 = vor.u32 %v5697_v32, %v4203_v29  ;;  %v4300_v43 = vor.u32 %v5721_v34, %v4299_v33  ;;  %v4615_v33 = vld [vmem:[#allocation5 + $0x60] sm:$0xf]  ;;  %v5633_v34 = vld [vmem:[#allocation5 + $0x68] sm:$0xf0] }
  0xed   :  { %1744 = vmatpush.bf16.msrb.mxu0 %v4264_v48  ;;  %1758 = vmatpush.bf16.msrb.mxu1 %v4360_v49  ;;  %v4287_v49 = vld [vmem:[#allocation5 + $0x308] sm:$0xf] }
  0xf1   :  { %1745 = vmatpush.bf16.msrb.mxu0 %v4252_v60  ;;  %1759 = vmatpush.bf16.msrb.mxu1 %v4348_v61  ;;  %v4192_v60 = vor.u32 %v5694_v45, %v4191_v44  ;;  %v4288_v61 = vor.u32 %v5718_v50, %v4287_v49  ;;  %v5781_v44 = vld [vmem:[#allocation5 + $0x508] sm:$0xf0]  ;;  %v5654_v49 = vld [vmem:[#allocation5 + $0x110] sm:$0xf0] }
  0xf3   :  { %v812_v15 = vpop.f32.mrf.mxu0 }
  0xf4   :  { %v826_v6 = vpop.f32.mrf.mxu1  ;;  %v813_v24 = vadd.f32 %v812_v15, %v799_v20 }
  0xf5   :  { %v827_v16 = vadd.f32 %v826_v6, %v190_v4  ;;  %1746 = vmatpush.bf16.msrb.mxu0 %v4240_v7  ;;  %1760 = vmatpush.bf16.msrb.mxu1 %v4336_v8  ;;  %v4467_v8 = vld [vmem:[#allocation5 + $0x470] sm:$0xf] }
  0xf6   :  { %v861_v36 = vmax.f32 %v813_v24, 0.0  ;;  %v4564_v24 = vor.u32 %v5787_v14, %v4563_v11  ;;  %v4675_v11 = vld [vmem:[#allocation5 + $0xd8] sm:$0xf] }
  0xf8   :  { %1695 = vmatmul.bf16.vlgmr.msra.gmra.mxu0 %v6173_v39  ;;  %1709 = vmatmul.bf16.vlgmr.msra.gmra.mxu1 %v6175_v40 }
  0xf9   :  { %1747 = vmatpush.bf16.msrb.mxu0 %v4228_v17  ;;  %1761 = vmatpush.bf16.msrb.mxu1 %v4324_v18  ;;  %v5636_v17 = vld [vmem:[#allocation5 + $0x80] sm:$0xf0]  ;;  %v4723_v18 = vld [vmem:[#allocation5 + $0x138] sm:$0xf] }
  0xfa   :  { %v4724_v32 = vor.u32 %v5660_v19, %v4723_v18  ;;  %v5772_v19 = vld [vmem:[#allocation5 + $0x4c0] sm:$0xf0] }
  0xfb   :  { %v840_v23 = vpop.f32.mrf.mxu2  ;;  %v814_v41 = vpop.f32.mrf.mxu0 }
  0xfc   :  { %v841_v25 = vadd.f32 %v840_v23, %v827_v16  ;;  %v854_v26 = vpop.f32.mrf.mxu3  ;;  %v828_v35 = vpop.f32.mrf.mxu1  ;;  %v815_v56 = vadd.f32 %v814_v41, %v801_v46  ;;  %v4627_v16 = vld [vmem:[#allocation5 + $0x78] sm:$0xf]  ;;  %v4468_v23 = vor.u32 %v5763_v10, %v4467_v8  ;;  %v5757_v41 = vld [vmem:[#allocation5 + $0x448] sm:$0xf0]  ;;  %v4603_v46 = vld [vmem:[#allocation5 + $0x48] sm:$0xf] }
  0xfd   :  { %1748 = vmatpush.bf16.msrb.mxu0 %v4216_v27  ;;  %1762 = vmatpush.bf16.msrb.mxu1 %v4312_v28  ;;  %v829_v48 = vadd.f32 %v828_v35, %v190_v4  ;;  %v5663_v4 = vld [vmem:[#allocation5 + $0x158] sm:$0xf0]  ;;  %v5760_v27 = vld [vmem:[#allocation5 + $0x460] sm:$0xf0]  ;;  %v4711_v35 = vld [vmem:[#allocation5 + $0x120] sm:$0xf] }
  0xfe   :  { %v855_v31 = vadd.f32 %v854_v26, %v841_v25  ;;  %v865_v6 = vmax.f32 %v815_v56, 0.0  ;;  %v4736_v15 = vor.u32 %v5663_v4, %v4735_v3  ;;  %v4628_v25 = vor.u32 %v5636_v17, %v4627_v16  ;;  %v4455_v26 = vld [vmem:[#allocation5 + $0x458] sm:$0xf]  ;;  %v5778_v56 = vld [vmem:[#allocation5 + $0x4f0] sm:$0xf0] }
  0xff   :  { %v4515_v4 = vld [vmem:[#allocation5 + $0x4d0] sm:$0xf]  ;;  %v4579_v8 = vld [vmem:[#allocation5 + $0x18] sm:$0xf]  ;;  %v5624_v10 = vld [vmem:[#allocation5 + $0x20] sm:$0xf0] }
 0x100   :  { %v862_v37 = vmax.f32 %v855_v31, 0.0  ;;  %v5784_v31 = vld [vmem:[#allocation5 + $0x520] sm:$0xf0]  ;;  %v4503_v17 = vld [vmem:[#allocation5 + $0x4b8] sm:$0xf]  ;;  %v4580_v18 = vor.u32 %v5624_v10, %v4579_v8 }
 0x101   :  { %1749 = vmatpush.bf16.msrb.mxu0 %v4204_v42  ;;  %1763 = vmatpush.bf16.msrb.mxu1 %v4300_v43  ;;  %v4616_v42 = vor.u32 %v5633_v34, %v4615_v33  ;;  %v4539_v43 = vld [vmem:[#allocation5 + $0x500] sm:$0xf]  ;;  %v5748_v16 = vld [vmem:[#allocation5 + $0x400] sm:$0xf0]  ;;  %v5745_v34 = vld [vmem:[#allocation5 + $0x3e8] sm:$0xf0] }
 0x102   :  { %v868_v47 = vpack.c.bf16 %v862_v37, %v861_v36  ;;  %v4552_v36 = vor.u32 %v5784_v31, %v4551_v30  ;;  %v4443_v37 = vld [vmem:[#allocation5 + $0x440] sm:$0xf]  ;;  %v4540_v51 = vor.u32 %v5781_v44, %v4539_v43  ;;  %v4504_v31 = vor.u32 %v5772_v19, %v4503_v17  ;;  %v5686_v43 = vld [vmem:[#allocation5 + $0x214] sm:$0xf]  ;;  %v5656_v8 = vld [vmem:[#allocation5 + $0x124] sm:$0xf] }
 0x103   :  { %v842_v52 = vpop.f32.mrf.mxu2  ;;  %v4444_v50 = vor.u32 %v5757_v41, %v4443_v37  ;;  %v5662_v37 = vld [vmem:[#allocation5 + $0x154] sm:$0xf]  ;;  %v4833_v44 = vld [vmem:[#allocation5 + $0x21c] sm:$0xf0]  ;;  %v5684_v17 = vld [vmem:[#allocation5 + $0x200] sm:$0xf0] }
 0x104   :  { %872 = vst [vmem:[#allocation2 + $0x14] sm:$0xff] %v868_v47  ;;  %v843_v57 = vadd.f32 %v842_v52, %v829_v48  ;;  %v856_v59 = vpop.f32.mrf.mxu3  ;;  %v1105_v20 = vunpack.c.l.b16 %v868_v47  ;;  %v1106_v21 = vunpack.c.h.b16 %v868_v47  ;;  %v5630_v47 = vld [vmem:[#allocation5 + $0x50] sm:$0xf0]  ;;  %v4699_v48 = vld [vmem:[#allocation5 + $0x108] sm:$0xf] }
 0x105   :  { %1750 = vmatpush.bf16.msrb.mxu0 %v4192_v60  ;;  %1764 = vmatpush.bf16.msrb.mxu1 %v4288_v61  ;;  %v4431_v52 = vld [vmem:[#allocation5 + $0x428] sm:$0xf]  ;;  %v4604_v54 = vor.u32 %v5630_v47, %v4603_v46  ;;  %v5627_v60 = vld [vmem:[#allocation5 + $0x38] sm:$0xf0]  ;;  %v4687_v61 = vld [vmem:[#allocation5 + $0xf0] sm:$0xf] }
 0x106   :  { %v857_v62 = vadd.f32 %v856_v59, %v843_v57  ;;  %v4700_v57 = vor.u32 %v5654_v49, %v4699_v48  ;;  %v4591_v59 = vld [vmem:[#allocation5 + $0x30] sm:$0xf]  ;;  %v4383_v47 = vld [vmem:[#allocation5 + $0x3c8] sm:$0xf]  ;;  %v5742_v48 = vld [vmem:[#allocation5 + $0x3d0] sm:$0xf0] }
 0x107   :  { %v4592_v3 = vor.u32 %v5627_v60, %v4591_v59  ;;  %v4479_v49 = vld [vmem:[#allocation5 + $0x488] sm:$0xf]  ;;  %v5683_v60 = vld [vmem:[#allocation5 + $0x1fc] sm:$0xf] }
 0x108   :  { %v866_v7 = vmax.f32 %v857_v62, 0.0  ;;  %1751 = vmatmul.bf16.vlgmr.msrb.gmra.mxu0 %v6173_v39  ;;  %1765 = vmatmul.bf16.vlgmr.msrb.gmra.mxu1 %v6175_v40  ;;  %v5657_v39 = vld [vmem:[#allocation5 + $0x128] sm:$0xf0]  ;;  %v4456_v40 = vor.u32 %v5760_v27, %v4455_v26  ;;  %v5651_v62 = vld [vmem:[#allocation5 + $0xf8] sm:$0xf0] }
 0x109   :  { %2183 = vmatpush.bf16.msra.mxu0 %v4652_v63  ;;  %2197 = vmatpush.bf16.msra.mxu1 %v4748_v0  ;;  %v4712_v45 = vor.u32 %v5657_v39, %v4711_v35  ;;  %v4432_v63 = vor.u32 %v5754_v53, %v4431_v52  ;;  %v4528_v0 = vor.u32 %v5778_v56, %v4527_v55  ;;  %v5689_v26 = vld [vmem:[#allocation5 + $0x22c] sm:$0xf]  ;;  %v4845_v27 = vld [vmem:[#allocation5 + $0x234] sm:$0xf0]  ;;  %v4491_v35 = vld [vmem:[#allocation5 + $0x4a0] sm:$0xf] }
 0x10a   :  { %v870_v12 = vpack.c.bf16 %v866_v7, %v865_v6  ;;  %v5775_v6 = vld [vmem:[#allocation5 + $0x4d8] sm:$0xf0]  ;;  %v4688_v7 = vor.u32 %v5651_v62, %v4687_v61  ;;  %v5769_v39 = vld [vmem:[#allocation5 + $0x4a8] sm:$0xf0]  ;;  %v4848_v41 = vor.u32 %v5689_v26, %v4845_v27  ;;  %v5690_v52 = vld [vmem:[#allocation5 + $0x230] sm:$0xf0]  ;;  %v4384_v62 = vor.u32 %v5742_v48, %v4383_v47 }
 0x10b   :  { %v4516_v14 = vor.u32 %v5775_v6, %v4515_v4  ;;  %v4492_v46 = vor.u32 %v5769_v39, %v4491_v35  ;;  %v5641_v53 = vld [vmem:[#allocation5 + $0xac] sm:$0xf]  ;;  %v5659_v56 = vld [vmem:[#allocation5 + $0x13c] sm:$0xf]  ;;  %v4725_v59 = vld [vmem:[#allocation5 + $0x144] sm:$0xf0] }
 0x10c   :  { %874 = vst [vmem:[#allocation2 + $0x3c] sm:$0xff] %v870_v12  ;;  %v1109_v38 = vunpack.c.l.b16 %v870_v12  ;;  %v1110_v22 = vunpack.c.h.b16 %v870_v12  ;;  %v5648_v12 = vld [vmem:[#allocation5 + $0xe0] sm:$0xf0]  ;;  %v4821_v61 = vld [vmem:[#allocation5 + $0x204] sm:$0xf0] }
 0x10d   :  { %2184 = vmatpush.bf16.msra.mxu0 %v4640_v13  ;;  %2198 = vmatpush.bf16.msra.mxu1 %v4736_v15  ;;  %v4420_v13 = vor.u32 %v5751_v2, %v4419_v1  ;;  %v4407_v15 = vld [vmem:[#allocation5 + $0x3f8] sm:$0xf]  ;;  %v4831_v2 = vld [vmem:[#allocation5 + $0x210] sm:$0xf]  ;;  %v5638_v4 = vld [vmem:[#allocation5 + $0x94] sm:$0xf]  ;;  %v4824_v10 = vor.u32 %v5683_v60, %v4821_v61 }
 0x10e   :  { %v6185_v28 = vpack.c.b16 %v1109_v38, %v1105_v20  ;;  %v6187_v29 = vpack.c.b16 %v1110_v22, %v1106_v21  ;;  %v4676_v20 = vor.u32 %v5648_v12, %v4675_v11  ;;  %v4567_v21 = vld [vmem:[#allocation5] sm:$0xf]  ;;  %v5621_v38 = vld [vmem:[#allocation5 + $0x8] sm:$0xf0]  ;;  %v4408_v30 = vor.u32 %v5748_v16, %v4407_v15  ;;  %v4713_v11 = vld [vmem:[#allocation5 + $0x12c] sm:$0xf0] }
 0x10f   :  { %v4663_v22 = vld [vmem:[#allocation5 + $0xc0] sm:$0xf]  ;;  %v4568_v33 = vor.u32 %v5621_v38, %v4567_v21  ;;  %v5680_v12 = vld [vmem:[#allocation5 + $0x1e4] sm:$0xf]  ;;  %v4819_v16 = vld [vmem:[#allocation5 + $0x1f8] sm:$0xf] }
 0x110   :  { %1667 = vmatmul.bf16.vlgmr.msrb.gmra.mxu2 %v6185_v28  ;;  %1681 = vmatmul.bf16.vlgmr.msrb.gmra.mxu3 %v6187_v29  ;;  %v4641_v6 = vld [vmem:[#allocation5 + $0x9c] sm:$0xf0]  ;;  %v4629_v19 = vld [vmem:[#allocation5 + $0x84] sm:$0xf0]  ;;  %v5653_v21 = vld [vmem:[#allocation5 + $0x10c] sm:$0xf] }
 0x111   :  { %1771 = vmatpush.bf16.msrb.mxu2 %v4468_v23  ;;  %1785 = vmatpush.bf16.msrb.mxu3 %v4564_v24  ;;  %v5645_v23 = vld [vmem:[#allocation5 + $0xc8] sm:$0xf0]  ;;  %v4644_v15 = vor.u32 %v5638_v4, %v4641_v6  ;;  %v4807_v27 = vld [vmem:[#allocation5 + $0x1e0] sm:$0xf]  ;;  %v4677_v47 = vld [vmem:[#allocation5 + $0xe4] sm:$0xf0] }
 0x112   :  { %2185 = vmatpush.bf16.msra.mxu0 %v4628_v25  ;;  %2199 = vmatpush.bf16.msra.mxu1 %v4724_v32  ;;  %v5665_v24 = vld [vmem:[#allocation5 + $0x16c] sm:$0xf]  ;;  %v4749_v25 = vld [vmem:[#allocation5 + $0x174] sm:$0xf0]  ;;  %v4395_v32 = vld [vmem:[#allocation5 + $0x3e0] sm:$0xf] }
 0x113   :  { %v4689_v39 = vld [vmem:[#allocation5 + $0xfc] sm:$0xf0]  ;;  %v5671_v48 = vld [vmem:[#allocation5 + $0x19c] sm:$0xf]  ;;  %v4665_v60 = vld [vmem:[#allocation5 + $0xcc] sm:$0xf0] }
 0x114   :  { %v5668_v61 = vld [vmem:[#allocation5 + $0x184] sm:$0xf]  ;;  %v5623_v6 = vld [vmem:[#allocation5 + $0x1c] sm:$0xf] }
 0x115   :  { %1772 = vmatpush.bf16.msrb.mxu2 %v4456_v40  ;;  %1786 = vmatpush.bf16.msrb.mxu3 %v4552_v36  ;;  %v4664_v40 = vor.u32 %v5645_v23, %v4663_v22  ;;  %v4752_v36 = vor.u32 %v5665_v24, %v4749_v25  ;;  %v4701_v22 = vld [vmem:[#allocation5 + $0x114] sm:$0xf0]  ;;  %v5677_v23 = vld [vmem:[#allocation5 + $0x1cc] sm:$0xf]  ;;  %v4820_v25 = vor.u32 %v5684_v17, %v4819_v16  ;;  %v5672_v4 = vld [vmem:[#allocation5 + $0x1a0] sm:$0xf0] }
 0x116   :  { %2186 = vmatpush.bf16.msra.mxu0 %v4616_v42  ;;  %2200 = vmatpush.bf16.msra.mxu1 %v4712_v45  ;;  %v4737_v42 = vld [vmem:[#allocation5 + $0x15c] sm:$0xf0]  ;;  %v4396_v45 = vor.u32 %v5745_v34, %v4395_v32  ;;  %v4797_v24 = vld [vmem:[#allocation5 + $0x1d4] sm:$0xf0]  ;;  %v4617_v32 = vld [vmem:[#allocation5 + $0x6c] sm:$0xf0] }
 0x117   :  { %v4740_v55 = vor.u32 %v5662_v37, %v4737_v42  ;;  %v5650_v34 = vld [vmem:[#allocation5 + $0xf4] sm:$0xf]  ;;  %v4800_v35 = vor.u32 %v5677_v23, %v4797_v24  ;;  %v4795_v37 = vld [vmem:[#allocation5 + $0x1c8] sm:$0xf]  ;;  %v5629_v42 = vld [vmem:[#allocation5 + $0x4c] sm:$0xf] }
 0x118   :  { %v4759_v16 = vld [vmem:[#allocation5 + $0x180] sm:$0xf]  ;;  %v5669_v17 = vld [vmem:[#allocation5 + $0x188] sm:$0xf0] }
 0x119   :  { %1773 = vmatpush.bf16.msrb.mxu2 %v4444_v50  ;;  %1787 = vmatpush.bf16.msrb.mxu3 %v4540_v51  ;;  %v5766_v50 = vld [vmem:[#allocation5 + $0x490] sm:$0xf0]  ;;  %v4843_v51 = vld [vmem:[#allocation5 + $0x228] sm:$0xf]  ;;  %v4827_v24 = vld [vmem:[#allocation5 + $0x200] sm:$0xf] }
 0x11a   :  { %2187 = vmatpush.bf16.msra.mxu0 %v4604_v54  ;;  %2201 = vmatpush.bf16.msra.mxu1 %v4700_v57  ;;  %v4653_v54 = vld [vmem:[#allocation5 + $0xb4] sm:$0xf0]  ;;  %v4836_v57 = vor.u32 %v5686_v43, %v4833_v44  ;;  %v4692_v44 = vor.u32 %v5650_v34, %v4689_v39 }
 0x11b   :  { %v4656_v1 = vor.u32 %v5641_v53, %v4653_v54  ;;  %v4605_v43 = vld [vmem:[#allocation5 + $0x54] sm:$0xf0]  ;;  %v5675_v53 = vld [vmem:[#allocation5 + $0x1b8] sm:$0xf0]  ;;  %v5626_v54 = vld [vmem:[#allocation5 + $0x34] sm:$0xf] }
 0x11c   :  { %v4743_v34 = vld [vmem:[#allocation5 + $0x158] sm:$0xf] }
 0x11d   :  { %1774 = vmatpush.bf16.msrb.mxu2 %v4432_v63  ;;  %1788 = vmatpush.bf16.msrb.mxu3 %v4528_v0  ;;  %v4480_v63 = vor.u32 %v5766_v50, %v4479_v49  ;;  %v4844_v0 = vor.u32 %v5690_v52, %v4843_v51  ;;  %v4773_v49 = vld [vmem:[#allocation5 + $0x1a4] sm:$0xf0]  ;;  %v4608_v51 = vor.u32 %v5629_v42, %v4605_v43  ;;  %v4783_v52 = vld [vmem:[#allocation5 + $0x1b0] sm:$0xf]  ;;  %v4731_v42 = vld [vmem:[#allocation5 + $0x140] sm:$0xf] }
 0x11e   :  { %2188 = vmatpush.bf16.msra.mxu0 %v4592_v3  ;;  %2202 = vmatpush.bf16.msra.mxu1 %v4688_v7  ;;  %v5687_v3 = vld [vmem:[#allocation5 + $0x218] sm:$0xf0]  ;;  %v4728_v7 = vor.u32 %v5659_v56, %v4725_v59  ;;  %v4776_v59 = vor.u32 %v5671_v48, %v4773_v49  ;;  %v5661_v43 = vld [vmem:[#allocation5 + $0x148] sm:$0xf0]  ;;  %v4623_v49 = vld [vmem:[#allocation5 + $0x68] sm:$0xf] }
 0x11f   :  { %v4732_v48 = vor.u32 %v5661_v43, %v4731_v42  ;;  %v5936_v42 = vld [vmem:[#allocation7 + $0x464] sm:$0xf0]  ;;  %v5919_v43 = vld [vmem:[#allocation7 + $0x3e4] sm:$0xf] }
 0x120   :  { %1723 = vmatmul.bf16.vlgmr.msra.gmra.mxu2 %v6185_v28  ;;  %1737 = vmatmul.bf16.vlgmr.msra.gmra.mxu3 %v6187_v29 }
 0x121   :  { %1775 = vmatpush.bf16.msrb.mxu2 %v4420_v13  ;;  %1789 = vmatpush.bf16.msrb.mxu3 %v4516_v14  ;;  %v4809_v13 = vld [vmem:[#allocation5 + $0x1ec] sm:$0xf0]  ;;  %v4832_v14 = vor.u32 %v5687_v3, %v4831_v2  ;;  %v4771_v3 = vld [vmem:[#allocation5 + $0x198] sm:$0xf] }
 0x122   :  { %2189 = vmatpush.bf16.msra.mxu0 %v4580_v18  ;;  %2203 = vmatpush.bf16.msra.mxu1 %v4676_v20  ;;  %v5635_v18 = vld [vmem:[#allocation5 + $0x7c] sm:$0xf]  ;;  %v4716_v20 = vor.u32 %v5656_v8, %v4713_v11  ;;  %v4812_v38 = vor.u32 %v5680_v12, %v4809_v13  ;;  %v4839_v12 = vld [vmem:[#allocation5 + $0x218] sm:$0xf]  ;;  %v5688_v13 = vld [vmem:[#allocation5 + $0x220] sm:$0xf0] }
 0x123   :  { %v4632_v26 = vor.u32 %v5635_v18, %v4629_v19  ;;  %v5620_v18 = vld [vmem:[#allocation5 + $0x4] sm:$0xf]  ;;  %v4569_v19 = vld [vmem:[#allocation5 + $0xc] sm:$0xf0]  ;;  %v4840_v23 = vor.u32 %v5688_v13, %v4839_v12  ;;  %v5670_v12 = vld [vmem:[#allocation5 + $0x190] sm:$0xf0] }
 0x125   :  { %1776 = vmatpush.bf16.msrb.mxu2 %v4408_v30  ;;  %1790 = vmatpush.bf16.msrb.mxu3 %v4504_v31  ;;  %v5681_v30 = vld [vmem:[#allocation5 + $0x1e8] sm:$0xf0]  ;;  %v5632_v31 = vld [vmem:[#allocation5 + $0x64] sm:$0xf] }
 0x126   :  { %2190 = vmatpush.bf16.msra.mxu0 %v4568_v33  ;;  %2204 = vmatpush.bf16.msra.mxu1 %v4664_v40  ;;  %v4704_v33 = vor.u32 %v5653_v21, %v4701_v22  ;;  %v4785_v40 = vld [vmem:[#allocation5 + $0x1bc] sm:$0xf0]  ;;  %v5643_v21 = vld [vmem:[#allocation5 + $0xb8] sm:$0xf0] }
 0x127   :  { %v5667_v22 = vld [vmem:[#allocation5 + $0x178] sm:$0xf0] }
 0x129   :  { %1777 = vmatpush.bf16.msrb.mxu2 %v4396_v45  ;;  %1791 = vmatpush.bf16.msrb.mxu3 %v4492_v46  ;;  %v5647_v45 = vld [vmem:[#allocation5 + $0xdc] sm:$0xf] }
 0x12a   :  { %2239 = vmatpush.bf16.msrb.mxu0 %v4752_v36  ;;  %2253 = vmatpush.bf16.msrb.mxu1 %v4848_v41  ;;  %v4620_v36 = vor.u32 %v5632_v31, %v4617_v32  ;;  %v5678_v41 = vld [vmem:[#allocation5 + $0x1d0] sm:$0xf0]  ;;  %v4680_v56 = vor.u32 %v5647_v45, %v4677_v47  ;;  %v4647_v32 = vld [vmem:[#allocation5 + $0x98] sm:$0xf]  ;;  %v4803_v45 = vld [vmem:[#allocation5 + $0x1d0] sm:$0xf] }
 0x12b   :  { %2191 = vmatmul.bf16.vlgmr.msra.gmra.mxu0 %v6127_v58  ;;  %2205 = vmatmul.bf16.vlgmr.msra.gmra.mxu1 %v6136_v5  ;;  %v4796_v50 = vor.u32 %v5678_v41, %v4795_v37  ;;  %v4635_v37 = vld [vmem:[#allocation5 + $0x80] sm:$0xf]  ;;  %v5637_v41 = vld [vmem:[#allocation5 + $0x88] sm:$0xf0] }
 0x12c   :  { %v4636_v47 = vor.u32 %v5637_v41, %v4635_v37  ;;  %v4967_v37 = vld [vmem:[#allocation7 + $0x460] sm:$0xf] }
 0x12d   :  { %1778 = vmatpush.bf16.msrb.mxu2 %v4384_v62  ;;  %1792 = vmatpush.bf16.msrb.mxu3 %v4480_v63  ;;  %v4761_v62 = vld [vmem:[#allocation5 + $0x18c] sm:$0xf0] }
 0x12e   :  { %2240 = vmatpush.bf16.msrb.mxu0 %v4740_v55  ;;  %2254 = vmatpush.bf16.msrb.mxu1 %v4836_v57  ;;  %v4593_v55 = vld [vmem:[#allocation5 + $0x3c] sm:$0xf0]  ;;  %v5644_v57 = vld [vmem:[#allocation5 + $0xc4] sm:$0xf]  ;;  %v4851_v63 = vld [vmem:[#allocation5 + $0x230] sm:$0xf] }
 0x12f   :  { %v4596_v2 = vor.u32 %v5626_v54, %v4593_v55  ;;  %v4668_v8 = vor.u32 %v5644_v57, %v4665_v60  ;;  %v4791_v54 = vld [vmem:[#allocation5 + $0x1b8] sm:$0xf]  ;;  %v5676_v55 = vld [vmem:[#allocation5 + $0x1c0] sm:$0xf0]  ;;  %v5631_v60 = vld [vmem:[#allocation5 + $0x58] sm:$0xf0] }
 0x130   :  { %1779 = vmatmul.bf16.vlgmr.msrb.gmra.mxu2 %v6185_v28  ;;  %1793 = vmatmul.bf16.vlgmr.msrb.gmra.mxu3 %v6187_v29  ;;  %v5674_v28 = vld [vmem:[#allocation5 + $0x1b4] sm:$0xf]  ;;  %v4808_v29 = vor.u32 %v5681_v30, %v4807_v27  ;;  %v4572_v27 = vor.u32 %v5620_v18, %v4569_v19  ;;  %v5649_v18 = vld [vmem:[#allocation5 + $0xe8] sm:$0xf0] }
 0x131   :  { %2211 = vmatpush.bf16.msra.mxu2 %v4844_v0  ;;  %2225 = vmatpush.bf16.msra.mxu3 %v4656_v1  ;;  %v4788_v46 = vor.u32 %v5674_v28, %v4785_v40  ;;  %v5691_v0 = vld [vmem:[#allocation5 + $0x238] sm:$0xf0]  ;;  %v4784_v1 = vor.u32 %v5675_v53, %v4783_v52  ;;  %v4815_v28 = vld [vmem:[#allocation5 + $0x1e8] sm:$0xf]  ;;  %v5682_v40 = vld [vmem:[#allocation5 + $0x1f0] sm:$0xf0] }
 0x132   :  { %2241 = vmatpush.bf16.msrb.mxu0 %v4728_v7  ;;  %2255 = vmatpush.bf16.msrb.mxu1 %v4824_v10  ;;  %v4581_v7 = vld [vmem:[#allocation5 + $0x24] sm:$0xf0]  ;;  %v4764_v10 = vor.u32 %v5668_v61, %v4761_v62  ;;  %v4852_v11 = vor.u32 %v5691_v0, %v4851_v63  ;;  %v5658_v52 = vld [vmem:[#allocation5 + $0x130] sm:$0xf0]  ;;  %v4707_v61 = vld [vmem:[#allocation5 + $0x110] sm:$0xf]  ;;  %v4792_v63 = vor.u32 %v5676_v55, %v4791_v54 }
 0x133   :  { %v5655_v62 = vld [vmem:[#allocation5 + $0x118] sm:$0xf0]  ;;  %v4779_v0 = vld [vmem:[#allocation5 + $0x1a0] sm:$0xf] }
 0x134   :  { %v4897_v54 = vld [vmem:[#allocation7 + $0x3d8] sm:$0xf0] }
 0x135   :  { %2212 = vmatpush.bf16.msra.mxu2 %v4832_v14  ;;  %2226 = vmatpush.bf16.msra.mxu3 %v4644_v15  ;;  %v4772_v14 = vor.u32 %v5672_v4, %v4771_v3  ;;  %v4584_v15 = vor.u32 %v5623_v6, %v4581_v7  ;;  %v4708_v3 = vor.u32 %v5655_v62, %v4707_v61  ;;  %v4599_v4 = vld [vmem:[#allocation5 + $0x38] sm:$0xf]  ;;  %v5628_v6 = vld [vmem:[#allocation5 + $0x40] sm:$0xf0]  ;;  %v5916_v61 = vld [vmem:[#allocation7 + $0x3c4] sm:$0xf0] }
 0x136   :  { %2242 = vmatpush.bf16.msrb.mxu0 %v4716_v20  ;;  %2256 = vmatpush.bf16.msrb.mxu1 %v4812_v38  ;;  %v4659_v20 = vld [vmem:[#allocation5 + $0xb0] sm:$0xf]  ;;  %v4695_v7 = vld [vmem:[#allocation5 + $0xf8] sm:$0xf]  ;;  %v4600_v13 = vor.u32 %v5628_v6, %v4599_v4  ;;  %v4951_v62 = vld [vmem:[#allocation7 + $0x440] sm:$0xf] }
 0x137   :  { %v4755_v38 = vld [vmem:[#allocation5 + $0x170] sm:$0xf]  ;;  %v4660_v30 = vor.u32 %v5643_v21, %v4659_v20 }
 0x138   :  { %v4756_v31 = vor.u32 %v5667_v22, %v4755_v38  ;;  %v4575_v38 = vld [vmem:[#allocation5 + $0x8] sm:$0xf]  ;;  %v5622_v22 = vld [vmem:[#allocation5 + $0x10] sm:$0xf0] }
 0x139   :  { %2213 = vmatpush.bf16.msra.mxu2 %v4820_v25  ;;  %2227 = vmatpush.bf16.msra.mxu3 %v4632_v26  ;;  %v5685_v25 = vld [vmem:[#allocation5 + $0x208] sm:$0xf0]  ;;  %v4760_v26 = vor.u32 %v5669_v17, %v4759_v16  ;;  %v4683_v17 = vld [vmem:[#allocation5 + $0xe0] sm:$0xf] }
 0x13a   :  { %2243 = vmatpush.bf16.msrb.mxu0 %v4704_v33  ;;  %2257 = vmatpush.bf16.msrb.mxu1 %v4800_v35  ;;  %v5640_v33 = vld [vmem:[#allocation5 + $0xa0] sm:$0xf0]  ;;  %v4828_v39 = vor.u32 %v5685_v25, %v4827_v24  ;;  %v5625_v16 = vld [vmem:[#allocation5 + $0x28] sm:$0xf0]  ;;  %v4684_v21 = vor.u32 %v5649_v18, %v4683_v17  ;;  %v5646_v24 = vld [vmem:[#allocation5 + $0xd0] sm:$0xf0]  ;;  %v4576_v25 = vor.u32 %v5622_v22, %v4575_v38 }
 0x13b   :  { %v5664_v35 = vld [vmem:[#allocation5 + $0x160] sm:$0xf0]  ;;  %v4871_v17 = vld [vmem:[#allocation7 + $0x3a0] sm:$0xf]  ;;  %v5912_v18 = vld [vmem:[#allocation7 + $0x3a4] sm:$0xf0] }
 0x13c   :  { %v5928_v38 = vld [vmem:[#allocation7 + $0x424] sm:$0xf0]  ;;  %v5911_v22 = vld [vmem:[#allocation7 + $0x3a4] sm:$0xf] }
 0x13d   :  { %2214 = vmatpush.bf16.msra.mxu2 %v4808_v29  ;;  %2228 = vmatpush.bf16.msra.mxu3 %v4620_v36  ;;  %v4648_v29 = vor.u32 %v5640_v33, %v4647_v32  ;;  %v4744_v36 = vor.u32 %v5664_v35, %v4743_v34  ;;  %v4911_v32 = vld [vmem:[#allocation7 + $0x3f0] sm:$0xf]  ;;  %v5922_v33 = vld [vmem:[#allocation7 + $0x3f4] sm:$0xf0] }
 0x13e   :  { %2244 = vmatpush.bf16.msrb.mxu0 %v4692_v44  ;;  %2258 = vmatpush.bf16.msrb.mxu1 %v4788_v46  ;;  %v4816_v44 = vor.u32 %v5682_v40, %v4815_v28  ;;  %v5679_v46 = vld [vmem:[#allocation5 + $0x1d8] sm:$0xf0]  ;;  %v4975_v34 = vld [vmem:[#allocation7 + $0x470] sm:$0xf]  ;;  %v5938_v28 = vld [vmem:[#allocation7 + $0x474] sm:$0xf0] }
 0x13f   :  { %v4804_v53 = vor.u32 %v5679_v46, %v4803_v45  ;;  %v4913_v40 = vld [vmem:[#allocation7 + $0x3f8] sm:$0xf0]  ;;  %v4968_v45 = vor.u32 %v5936_v42, %v4967_v37  ;;  %v4919_v37 = vld [vmem:[#allocation7 + $0x400] sm:$0xf] }
 0x141   :  { %2215 = vmatpush.bf16.msra.mxu2 %v4796_v50  ;;  %2229 = vmatpush.bf16.msra.mxu3 %v4608_v51  ;;  %v5634_v50 = vld [vmem:[#allocation5 + $0x70] sm:$0xf0]  ;;  %v4719_v51 = vld [vmem:[#allocation5 + $0x128] sm:$0xf] }
 0x142   :  { %2245 = vmatpush.bf16.msrb.mxu0 %v4680_v56  ;;  %2259 = vmatpush.bf16.msrb.mxu1 %v4776_v59  ;;  %v4624_v56 = vor.u32 %v5634_v50, %v4623_v49  ;;  %v4720_v57 = vor.u32 %v5658_v52, %v4719_v51  ;;  %v4611_v59 = vld [vmem:[#allocation5 + $0x50] sm:$0xf]  ;;  %v5934_v52 = vld [vmem:[#allocation7 + $0x454] sm:$0xf0] }
 0x143   :  { %v4959_v49 = vld [vmem:[#allocation7 + $0x450] sm:$0xf] }
 0x145   :  { %2216 = vmatpush.bf16.msra.mxu2 %v4784_v1  ;;  %2230 = vmatpush.bf16.msra.mxu3 %v4596_v2  ;;  %v5673_v1 = vld [vmem:[#allocation5 + $0x1a8] sm:$0xf0]  ;;  %v4612_v2 = vor.u32 %v5631_v60, %v4611_v59  ;;  %v4887_v60 = vld [vmem:[#allocation7 + $0x3c0] sm:$0xf] }
 0x146   :  { %2246 = vmatpush.bf16.msrb.mxu0 %v4668_v8  ;;  %2260 = vmatpush.bf16.msrb.mxu1 %v4764_v10  ;;  %v5652_v8 = vld [vmem:[#allocation5 + $0x100] sm:$0xf0]  ;;  %v4780_v10 = vor.u32 %v5673_v1, %v4779_v0  ;;  %v4888_v0 = vor.u32 %v5916_v61, %v4887_v60  ;;  %v5932_v1 = vld [vmem:[#allocation7 + $0x444] sm:$0xf0] }
 0x147   :  { %v4952_v4 = vor.u32 %v5932_v1, %v4951_v62 }
 0x149   :  { %2217 = vmatpush.bf16.msra.mxu2 %v4772_v14  ;;  %2231 = vmatpush.bf16.msra.mxu3 %v4584_v15  ;;  %v4696_v14 = vor.u32 %v5652_v8, %v4695_v7  ;;  %v4587_v15 = vld [vmem:[#allocation5 + $0x20] sm:$0xf]  ;;  %v4879_v7 = vld [vmem:[#allocation7 + $0x3b0] sm:$0xf]  ;;  %v5914_v8 = vld [vmem:[#allocation7 + $0x3b4] sm:$0xf0] }
 0x14a   :  { %2295 = vmatpush.bf16.msra.mxu0 %v4852_v11  ;;  %2261 = vmatmul.bf16.vlgmr.msrb.gmra.mxu1 %v6145_v9  ;;  %v4767_v11 = vld [vmem:[#allocation5 + $0x188] sm:$0xf]  ;;  %v4588_v20 = vor.u32 %v5625_v16, %v4587_v15 }
 0x14b   :  { %2247 = vmatmul.bf16.vlgmr.msrb.gmra.mxu0 %v6136_v5  ;;  %v4768_v19 = vor.u32 %v5670_v12, %v4767_v11  ;;  %v4880_v11 = vor.u32 %v5914_v8, %v4879_v7  ;;  %v5930_v12 = vld [vmem:[#allocation7 + $0x434] sm:$0xf0]  ;;  %v5031_v7 = vld [vmem:[#allocation7 + $0x4e0] sm:$0xf]  ;;  %v5952_v8 = vld [vmem:[#allocation7 + $0x4e4] sm:$0xf0] }
 0x14d   :  { %2218 = vmatpush.bf16.msra.mxu2 %v4760_v26  ;;  %2232 = vmatpush.bf16.msra.mxu3 %v4572_v27 }
 0x14e   :  { %2296 = vmatpush.bf16.msra.mxu0 %v4840_v23  ;;  %v4671_v23 = vld [vmem:[#allocation5 + $0xc8] sm:$0xf] }
 0x14f   :  { %v4672_v26 = vor.u32 %v5646_v24, %v4671_v23  ;;  %v4873_v23 = vld [vmem:[#allocation7 + $0x3a8] sm:$0xf0] }
 0x150   :  { %2219 = vmatmul.bf16.vlgmr.msra.gmra.mxu2 %v6145_v9  ;;  %2233 = vmatmul.bf16.vlgmr.msra.gmra.mxu3 %v6127_v58 }
 0x151   :  { %2267 = vmatpush.bf16.msrb.mxu2 %v4660_v30  ;;  %2281 = vmatpush.bf16.msrb.mxu3 %v4756_v31 }
 0x152   :  { %2297 = vmatpush.bf16.msra.mxu0 %v4828_v39  ;;  %v4912_v39 = vor.u32 %v5922_v33, %v4911_v32  ;;  %v4876_v32 = vor.u32 %v5911_v22, %v4873_v23  ;;  %v4863_v33 = vld [vmem:[#allocation7 + $0x390] sm:$0xf]  ;;  %v5933_v23 = vld [vmem:[#allocation7 + $0x454] sm:$0xf] }
 0x154   :  { %2762 = vmatpush.bf16.msra.mxu1 %v4912_v39  ;;  %v4927_v39 = vld [vmem:[#allocation7 + $0x410] sm:$0xf] }
 0x155   :  { %2268 = vmatpush.bf16.msrb.mxu2 %v4648_v29  ;;  %2282 = vmatpush.bf16.msrb.mxu3 %v4744_v36  ;;  %v4976_v29 = vor.u32 %v5938_v28, %v4975_v34  ;;  %v5910_v34 = vld [vmem:[#allocation7 + $0x394] sm:$0xf0] }
 0x156   :  { %2298 = vmatpush.bf16.msra.mxu0 %v4816_v44  ;;  %v4905_v44 = vld [vmem:[#allocation7 + $0x3e8] sm:$0xf0] }
 0x157   :  { %v4908_v46 = vor.u32 %v5919_v43, %v4905_v44  ;;  %v5924_v43 = vld [vmem:[#allocation7 + $0x404] sm:$0xf0]  ;;  %v5039_v44 = vld [vmem:[#allocation7 + $0x4f0] sm:$0xf] }
 0x158   :  { %v4920_v60 = vor.u32 %v5924_v43, %v4919_v37 }
 0x159   :  { %2269 = vmatpush.bf16.msrb.mxu2 %v4636_v47  ;;  %2283 = vmatpush.bf16.msrb.mxu3 %v4732_v48  ;;  %v4895_v47 = vld [vmem:[#allocation7 + $0x3d0] sm:$0xf]  ;;  %v5918_v48 = vld [vmem:[#allocation7 + $0x3d4] sm:$0xf0] }
 0x15a   :  { %2299 = vmatpush.bf16.msra.mxu0 %v4804_v53  ;;  %v4896_v51 = vor.u32 %v5918_v48, %v4895_v47  ;;  %v5917_v53 = vld [vmem:[#allocation7 + $0x3d4] sm:$0xf]  ;;  %v4857_v47 = vld [vmem:[#allocation7 + $0x388] sm:$0xf0] }
 0x15b   :  { %v4900_v59 = vor.u32 %v5917_v53, %v4897_v54  ;;  %v5041_v53 = vld [vmem:[#allocation7 + $0x4f8] sm:$0xf0] }
 0x15d   :  { %2270 = vmatpush.bf16.msrb.mxu2 %v4624_v56  ;;  %2284 = vmatpush.bf16.msrb.mxu3 %v4720_v57  ;;  %v4960_v57 = vor.u32 %v5934_v52, %v4959_v49  ;;  %v5937_v49 = vld [vmem:[#allocation7 + $0x474] sm:$0xf] }
 0x15e   :  { %2300 = vmatpush.bf16.msra.mxu0 %v4792_v63  ;;  %v5953_v52 = vld [vmem:[#allocation7 + $0x4f4] sm:$0xf] }
 0x15f   :  { %v5044_v1 = vor.u32 %v5953_v52, %v5041_v53 }
 0x161   :  { %2271 = vmatpush.bf16.msrb.mxu2 %v4612_v2  ;;  %2285 = vmatpush.bf16.msrb.mxu3 %v4708_v3  ;;  %v5915_v2 = vld [vmem:[#allocation7 + $0x3c4] sm:$0xf]  ;;  %v4889_v3 = vld [vmem:[#allocation7 + $0x3c8] sm:$0xf0] }
 0x162   :  { %2301 = vmatpush.bf16.msra.mxu0 %v4780_v10  ;;  %v4892_v6 = vor.u32 %v5915_v2, %v4889_v3  ;;  %v4943_v10 = vld [vmem:[#allocation7 + $0x430] sm:$0xf] }
 0x163   :  { %v4944_v15 = vor.u32 %v5930_v12, %v4943_v10  ;;  %v5935_v10 = vld [vmem:[#allocation7 + $0x464] sm:$0xf]  ;;  %v4969_v12 = vld [vmem:[#allocation7 + $0x468] sm:$0xf0] }
 0x165   :  { %2272 = vmatpush.bf16.msrb.mxu2 %v4600_v13  ;;  %2286 = vmatpush.bf16.msrb.mxu3 %v4696_v14  ;;  %v6204_v27 = vpop.f32.mrf.mxu0  ;;  %v6206_v30 = vpop.f32.mrf.mxu1  ;;  %v5913_v13 = vld [vmem:[#allocation7 + $0x3b4] sm:$0xf]  ;;  %v4881_v14 = vld [vmem:[#allocation7 + $0x3b8] sm:$0xf0] }
 0x166   :  { %2302 = vmatpush.bf16.msra.mxu0 %v4768_v19  ;;  %v4884_v16 = vor.u32 %v5913_v13, %v4881_v14  ;;  %v4935_v19 = vld [vmem:[#allocation7 + $0x420] sm:$0xf]  ;;  %v5951_v13 = vld [vmem:[#allocation7 + $0x4e4] sm:$0xf]  ;;  %v5033_v14 = vld [vmem:[#allocation7 + $0x4e8] sm:$0xf0] }
 0x169   :  { %2273 = vmatpush.bf16.msrb.mxu2 %v4588_v20  ;;  %2287 = vmatpush.bf16.msrb.mxu3 %v4684_v21  ;;  %v4872_v21 = vor.u32 %v5912_v18, %v4871_v17  ;;  %v5187_v17 = vld [vmem:[#allocation7 + $0xe0] sm:$0xf]  ;;  %v5824_v18 = vld [vmem:[#allocation7 + $0xe4] sm:$0xf0] }
 0x16a   :  { %2303 = vmatmul.bf16.vlgmr.msra.gmra.mxu0 %v6145_v9  ;;  %v5921_v9 = vld [vmem:[#allocation7 + $0x3f4] sm:$0xf] }
 0x16b   :  { %v4916_v36 = vor.u32 %v5921_v9, %v4913_v40  ;;  %v5926_v9 = vld [vmem:[#allocation7 + $0x414] sm:$0xf0]  ;;  %v5909_v40 = vld [vmem:[#allocation7 + $0x394] sm:$0xf] }
 0x16d   :  { %2274 = vmatpush.bf16.msrb.mxu2 %v4576_v25  ;;  %2288 = vmatpush.bf16.msrb.mxu3 %v4672_v26  ;;  %v6208_v31 = vpop.f32.mrf.mxu0  ;;  %v6210_v35 = vpop.f32.mrf.mxu1  ;;  %v4936_v26 = vor.u32 %v5928_v38, %v4935_v19  ;;  %v5188_v19 = vor.u32 %v5824_v18, %v5187_v17  ;;  %v5950_v38 = vld [vmem:[#allocation7 + $0x4d4] sm:$0xf0] }
 0x16e   :  { %2804 = vmatpush.bf16.msrb.mxu0 %v4916_v36  ;;  %v4864_v36 = vor.u32 %v5910_v34, %v4863_v33 }
 0x170   :  { %2275 = vmatmul.bf16.vlgmr.msrb.gmra.mxu2 %v6127_v58  ;;  %2289 = vmatmul.bf16.vlgmr.msrb.gmra.mxu3 %v6136_v5  ;;  %v4903_v58 = vld [vmem:[#allocation7 + $0x3e0] sm:$0xf]  ;;  %v5920_v5 = vld [vmem:[#allocation7 + $0x3e4] sm:$0xf0] }
 0x171   :  { %2776 = vmatpush.bf16.msra.mxu2 %v4976_v29  ;;  %v4904_v41 = vor.u32 %v5920_v5, %v4903_v58  ;;  %v4865_v29 = vld [vmem:[#allocation7 + $0x398] sm:$0xf0]  ;;  %v4855_v58 = vld [vmem:[#allocation7 + $0x380] sm:$0xf]  ;;  %v5908_v5 = vld [vmem:[#allocation7 + $0x384] sm:$0xf0] }
 0x172   :  { %2805 = vmatpush.bf16.msrb.mxu0 %v4908_v46  ;;  %v4868_v42 = vor.u32 %v5909_v40, %v4865_v29  ;;  %v5907_v46 = vld [vmem:[#allocation7 + $0x384] sm:$0xf]  ;;  %v4856_v54 = vor.u32 %v5908_v5, %v4855_v58  ;;  %v5822_v40 = vld [vmem:[#allocation7 + $0xd4] sm:$0xf0] }
 0x173   :  { %2763 = vmatpush.bf16.msra.mxu1 %v4904_v41  ;;  %v4928_v41 = vor.u32 %v5926_v9, %v4927_v39  ;;  %v4860_v61 = vor.u32 %v5907_v46, %v4857_v47  ;;  %v5025_v39 = vld [vmem:[#allocation7 + $0x4d8] sm:$0xf0]  ;;  %v5179_v9 = vld [vmem:[#allocation7 + $0xd0] sm:$0xf]  ;;  %v5947_v46 = vld [vmem:[#allocation7 + $0x4c4] sm:$0xf] }
 0x174   :  { %v5180_v5 = vor.u32 %v5822_v40, %v5179_v9  ;;  %v4991_v9 = vld [vmem:[#allocation7 + $0x490] sm:$0xf]  ;;  %v5942_v40 = vld [vmem:[#allocation7 + $0x494] sm:$0xf0] }
 0x175   :  { %2777 = vmatpush.bf16.msra.mxu2 %v4968_v45  ;;  %v6212_v50 = vpop.f32.mrf.mxu0  ;;  %v6218_v63 = vpop.f32.mrf.mxu1  ;;  %v5954_v45 = vld [vmem:[#allocation7 + $0x4f4] sm:$0xf0] }
 0x176   :  { %2806 = vmatpush.bf16.msrb.mxu0 %v4900_v59  ;;  %v5040_v48 = vor.u32 %v5954_v45, %v5039_v44  ;;  %v5826_v59 = vld [vmem:[#allocation7 + $0xf4] sm:$0xf0]  ;;  %v5931_v44 = vld [vmem:[#allocation7 + $0x444] sm:$0xf]  ;;  %v4953_v45 = vld [vmem:[#allocation7 + $0x448] sm:$0xf0] }
 0x177   :  { %2764 = vmatpush.bf16.msra.mxu1 %v4896_v51  ;;  %v4977_v51 = vld [vmem:[#allocation7 + $0x478] sm:$0xf0]  ;;  %v4956_v47 = vor.u32 %v5931_v44, %v4953_v45  ;;  %v1655_v44 = vadd.f32 %v6206_v30, %v6204_v27 }
 0x178   :  { %2790 = vmatpush.bf16.msra.mxu3 %v5040_v48  ;;  %v5017_v48 = vld [vmem:[#allocation7 + $0x4c8] sm:$0xf0] }
 0x179   :  { %2778 = vmatpush.bf16.msra.mxu2 %v4960_v57  ;;  %v5195_v57 = vld [vmem:[#allocation7 + $0xf0] sm:$0xf]  ;;  %v5020_v52 = vor.u32 %v5947_v46, %v5017_v48  ;;  %v5814_v48 = vld [vmem:[#allocation7 + $0x94] sm:$0xf0] }
 0x17a   :  { %2807 = vmatpush.bf16.msrb.mxu0 %v4892_v6 }
 0x17b   :  { %2765 = vmatpush.bf16.msra.mxu1 %v4888_v0  ;;  %v4980_v0 = vor.u32 %v5937_v49, %v4977_v51  ;;  %v5171_v49 = vld [vmem:[#allocation7 + $0xc0] sm:$0xf]  ;;  %v5820_v51 = vld [vmem:[#allocation7 + $0xc4] sm:$0xf0] }
 0x17c   :  { %v5172_v53 = vor.u32 %v5820_v51, %v5171_v49 }
 0x17d   :  { %2779 = vmatpush.bf16.msra.mxu2 %v4952_v4  ;;  %v6220_v20 = vpop.f32.mrf.mxu0  ;;  %v6226_v28 = vpop.f32.mrf.mxu1  ;;  %v5196_v4 = vor.u32 %v5826_v59, %v5195_v57  ;;  %v5946_v57 = vld [vmem:[#allocation7 + $0x4b4] sm:$0xf0]  ;;  %v5929_v59 = vld [vmem:[#allocation7 + $0x434] sm:$0xf] }
 0x17e   :  { %2808 = vmatpush.bf16.msrb.mxu0 %v4884_v16  ;;  %v5036_v16 = vor.u32 %v5951_v13, %v5033_v14  ;;  %v4999_v14 = vld [vmem:[#allocation7 + $0x4a0] sm:$0xf] }
 0x17f   :  { %2766 = vmatpush.bf16.msra.mxu1 %v4880_v11  ;;  %v5032_v11 = vor.u32 %v5952_v8, %v5031_v7 }
 0x181   :  { %2780 = vmatpush.bf16.msra.mxu2 %v4944_v15  ;;  %v4972_v15 = vor.u32 %v5935_v10, %v4969_v12  ;;  %2791 = vmatpush.bf16.msra.mxu3 %v5032_v11  ;;  %v5163_v10 = vld [vmem:[#allocation7 + $0xb0] sm:$0xf]  ;;  %v5818_v11 = vld [vmem:[#allocation7 + $0xb4] sm:$0xf0] }
 0x182   :  { %2809 = vmatpush.bf16.msrb.mxu0 %v4876_v32  ;;  %v5949_v32 = vld [vmem:[#allocation7 + $0x4d4] sm:$0xf]  ;;  %v5164_v12 = vor.u32 %v5818_v11, %v5163_v10  ;;  %v5131_v10 = vld [vmem:[#allocation7 + $0x70] sm:$0xf] }
 0x183   :  { %2767 = vmatpush.bf16.msra.mxu1 %v4872_v21  ;;  %v5023_v21 = vld [vmem:[#allocation7 + $0x4d0] sm:$0xf]  ;;  %v5028_v58 = vor.u32 %v5949_v32, %v5025_v39  ;;  %v5155_v32 = vld [vmem:[#allocation7 + $0xa0] sm:$0xf] }
 0x184   :  { %v5024_v22 = vor.u32 %v5950_v38, %v5023_v21  ;;  %v4937_v21 = vld [vmem:[#allocation7 + $0x428] sm:$0xf0]  ;;  %v5943_v38 = vld [vmem:[#allocation7 + $0x4a4] sm:$0xf] }
 0x185   :  { %2781 = vmatpush.bf16.msra.mxu2 %v4936_v26  ;;  %v6228_v62 = vpop.f32.mrf.mxu0  ;;  %v6234_v6 = vpop.f32.mrf.mxu1  ;;  %v4961_v26 = vld [vmem:[#allocation7 + $0x458] sm:$0xf0] }
 0x186   :  { %2810 = vmatpush.bf16.msrb.mxu0 %v4868_v42  ;;  %v4964_v34 = vor.u32 %v5933_v23, %v4961_v26  ;;  %2792 = vmatpush.bf16.msra.mxu3 %v5024_v22  ;;  %v5948_v42 = vld [vmem:[#allocation7 + $0x4c4] sm:$0xf0]  ;;  %v5001_v22 = vld [vmem:[#allocation7 + $0x4a8] sm:$0xf0] }
 0x187   :  { %2768 = vmatpush.bf16.msra.mxu1 %v4864_v36  ;;  %v5004_v26 = vor.u32 %v5943_v38, %v5001_v22 }
 0x189   :  { %2782 = vmatpush.bf16.msra.mxu2 %v4928_v41  ;;  %v5015_v41 = vld [vmem:[#allocation7 + $0x4c0] sm:$0xf] }
 0x18a   :  { %2811 = vmatpush.bf16.msrb.mxu0 %v4860_v61  ;;  %v5016_v43 = vor.u32 %v5948_v42, %v5015_v41  ;;  %v4945_v61 = vld [vmem:[#allocation7 + $0x438] sm:$0xf0]  ;;  %v5941_v42 = vld [vmem:[#allocation7 + $0x494] sm:$0xf] }
 0x18b   :  { %2769 = vmatpush.bf16.msra.mxu1 %v4856_v54  ;;  %v5007_v54 = vld [vmem:[#allocation7 + $0x4b0] sm:$0xf]  ;;  %v4948_v7 = vor.u32 %v5929_v59, %v4945_v61  ;;  %v4929_v41 = vld [vmem:[#allocation7 + $0x418] sm:$0xf0]  ;;  %v5939_v61 = vld [vmem:[#allocation7 + $0x484] sm:$0xf] }
 0x18c   :  { %2793 = vmatpush.bf16.msra.mxu3 %v5016_v43  ;;  %v4993_v43 = vld [vmem:[#allocation7 + $0x498] sm:$0xf0] }
 0x18d   :  { %2783 = vmatpush.bf16.msra.mxu2 %v4920_v60  ;;  %v6236_v33 = vpop.f32.mrf.mxu0  ;;  %v6242_v37 = vpop.f32.mrf.mxu1  ;;  %v5008_v60 = vor.u32 %v5946_v57, %v5007_v54  ;;  %v4996_v46 = vor.u32 %v5941_v42, %v4993_v43  ;;  %v5940_v54 = vld [vmem:[#allocation7 + $0x484] sm:$0xf0]  ;;  %v5923_v57 = vld [vmem:[#allocation7 + $0x404] sm:$0xf] }
 0x18e   :  { %3456 = vmatpush.bf16.msra.mxu0 %v5196_v4 }
 0x18f   :  { %2818 = vmatpush.bf16.msrb.mxu1 %v4980_v0  ;;  %v5945_v0 = vld [vmem:[#allocation7 + $0x4b4] sm:$0xf] }
 0x190   :  { %2794 = vmatpush.bf16.msra.mxu3 %v5008_v60  ;;  %v4921_v60 = vld [vmem:[#allocation7 + $0x408] sm:$0xf0] }
 0x191   :  { %2832 = vmatpush.bf16.msrb.mxu2 %v5044_v1  ;;  %v5009_v1 = vld [vmem:[#allocation7 + $0x4b8] sm:$0xf0]  ;;  %v4924_v30 = vor.u32 %v5923_v57, %v4921_v60 }
 0x192   :  { %3457 = vmatpush.bf16.msra.mxu0 %v5188_v19  ;;  %v5012_v8 = vor.u32 %v5945_v0, %v5009_v1  ;;  %v4985_v0 = vld [vmem:[#allocation7 + $0x488] sm:$0xf0] }
 0x193   :  { %v6214_v55 = vpop.f32.mrf.mxu2  ;;  %v6216_v56 = vpop.f32.mrf.mxu3  ;;  %2819 = vmatpush.bf16.msrb.mxu1 %v4972_v15  ;;  %v5944_v15 = vld [vmem:[#allocation7 + $0x4a4] sm:$0xf0]  ;;  %v4988_v1 = vor.u32 %v5939_v61, %v4985_v0 }
 0x194   :  { %v5000_v19 = vor.u32 %v5944_v15, %v4999_v14  ;;  %v1669_v51 = vadd.f32 %v6214_v55, %v1655_v44  ;;  %v5810_v14 = vld [vmem:[#allocation7 + $0x74] sm:$0xf0]  ;;  %v1711_v15 = vadd.f32 %v6218_v63, %v6212_v50 }
 0x195   :  { %2833 = vmatpush.bf16.msrb.mxu2 %v5036_v16  ;;  %v5927_v16 = vld [vmem:[#allocation7 + $0x424] sm:$0xf] }
 0x196   :  { %3458 = vmatpush.bf16.msra.mxu0 %v5180_v5  ;;  %v4940_v23 = vor.u32 %v5927_v16, %v4937_v21  ;;  %2795 = vmatpush.bf16.msra.mxu3 %v5000_v19  ;;  %v4992_v5 = vor.u32 %v5942_v40, %v4991_v9  ;;  %v1683_v16 = vadd.f32 %v6216_v56, %v1669_v51  ;;  %v5115_v40 = vld [vmem:[#allocation7 + $0x50] sm:$0xf] }
 0x197   :  { %2820 = vmatpush.bf16.msrb.mxu1 %v4964_v34  ;;  %v5816_v34 = vld [vmem:[#allocation7 + $0xa4] sm:$0xf0]  ;;  %v5132_v19 = vor.u32 %v5810_v14, %v5131_v10  ;;  %v1657_v21 = vadd.f32 %v6210_v35, %v6208_v31  ;;  %v1713_v31 = vadd.f32 %v6226_v28, %v6220_v20  ;;  %v5107_v20 = vld [vmem:[#allocation7 + $0x40] sm:$0xf] }
 0x198   :  { %v5156_v39 = vor.u32 %v5816_v34, %v5155_v32  ;;  %v6267_v34 = vld [vmem:[#allocation8 + $0x1] ss:$8 sm:$0x7]  ;;  %v3655_v10 = vld [vmem:[#allocation8 + $0x4] ss:$8 sm:$0xf0] }
 0x199   :  { %2834 = vmatpush.bf16.msrb.mxu2 %v5028_v58  ;;  %v5925_v58 = vld [vmem:[#allocation7 + $0x414] sm:$0xf]  ;;  %v2313_v44 = vperm.slane %v6267_v34, 1  ;;  %v5804_v28 = vld [vmem:[#allocation7 + $0x44] sm:$0xf0] }
 0x19a   :  { %3459 = vmatpush.bf16.msra.mxu0 %v5172_v53  ;;  %v4932_v45 = vor.u32 %v5925_v58, %v4929_v41  ;;  %2796 = vmatpush.bf16.msra.mxu3 %v4992_v5  ;;  %v4983_v53 = vld [vmem:[#allocation7 + $0x480] sm:$0xf]  ;;  %v5806_v58 = vld [vmem:[#allocation7 + $0x54] sm:$0xf0] }
 0x19b   :  { %v6222_v24 = vpop.f32.mrf.mxu2  ;;  %v6224_v25 = vpop.f32.mrf.mxu3  ;;  %2821 = vmatpush.bf16.msrb.mxu1 %v4956_v47  ;;  %v5147_v47 = vld [vmem:[#allocation7 + $0x90] sm:$0xf]  ;;  %v4984_v59 = vor.u32 %v5940_v54, %v4983_v53  ;;  %v5116_v42 = vor.u32 %v5806_v58, %v5115_v40  ;;  %v5890_v40 = vld [vmem:[#allocation7 + $0x2f4] sm:$0xf0] }
 0x19c   :  { %v5148_v49 = vor.u32 %v5814_v48, %v5147_v47  ;;  %v1671_v32 = vadd.f32 %v6222_v24, %v1657_v21  ;;  %v5108_v47 = vor.u32 %v5804_v28, %v5107_v20  ;;  %v5083_v21 = vld [vmem:[#allocation7 + $0x10] sm:$0xf]  ;;  %v6284_v20 = vld [vmem:[#allocation2 + $0x8] sm:$0xff] }
 0x19d   :  { %2835 = vmatpush.bf16.msrb.mxu2 %v5020_v52 }
 0x19e   :  { %3460 = vmatpush.bf16.msra.mxu0 %v5164_v12  ;;  %2797 = vmatpush.bf16.msra.mxu3 %v4984_v59  ;;  %v1685_v24 = vadd.f32 %v6224_v25, %v1671_v32  ;;  %v5259_v32 = vld [vmem:[#allocation7 + $0x170] sm:$0xf] }
 0x19f   :  { %2822 = vmatpush.bf16.msrb.mxu1 %v4948_v7  ;;  %v5139_v7 = vld [vmem:[#allocation7 + $0x80] sm:$0xf] }
 0x1a1   :  { %2836 = vmatpush.bf16.msrb.mxu2 %v5012_v8  ;;  %v5812_v8 = vld [vmem:[#allocation7 + $0x84] sm:$0xf0] }
 0x1a2   :  { %3461 = vmatpush.bf16.msra.mxu0 %v5156_v39  ;;  %v5140_v12 = vor.u32 %v5812_v8, %v5139_v7  ;;  %3442 = vmatpush.bf16.msrb.mxu3 %v5132_v19  ;;  %v3654_v8 = vld [vmem:[#allocation8 + $0x4] ss:$8 sm:$0xf] }
 0x1a3   :  { %v6230_v2 = vpop.f32.mrf.mxu2  ;;  %v6232_v3 = vpop.f32.mrf.mxu3  ;;  %2823 = vmatpush.bf16.msrb.mxu1 %v4940_v23  ;;  %v5123_v23 = vld [vmem:[#allocation7 + $0x60] sm:$0xf] }
 0x1a4   :  { %v1725_v38 = vadd.f32 %v6230_v2, %v1711_v15  ;;  %v2312_v2 = vperm.slane %v6267_v34, 0 }
 0x1a5   :  { %2837 = vmatpush.bf16.msrb.mxu2 %v5004_v26  ;;  %v5808_v26 = vld [vmem:[#allocation7 + $0x64] sm:$0xf0] }
 0x1a6   :  { %3462 = vmatpush.bf16.msra.mxu0 %v5148_v49  ;;  %v5124_v56 = vor.u32 %v5808_v26, %v5123_v23  ;;  %v1739_v63 = vadd.f32 %v6232_v3, %v1725_v38  ;;  %v5798_v38 = vld [vmem:[#allocation7 + $0x14] sm:$0xf0] }
 0x1a7   :  { %2824 = vmatpush.bf16.msrb.mxu1 %v4932_v45  ;;  %v5084_v26 = vor.u32 %v5798_v38, %v5083_v21  ;;  %v3674_v21 = vunpack.c.h.bf16 %v6284_v20 }
 0x1a8   :  { %v6244_v4 = vpop.f32.mrf.mxu0  ;;  %v6246_v13 = vpop.f32.mrf.mxu1  ;;  %3443 = vmatpush.bf16.msrb.mxu3 %v5124_v56 }
 0x1a9   :  { %2838 = vmatpush.bf16.msrb.mxu2 %v4996_v46  ;;  %v2193_v22 = vadd.f32 %v6244_v4, %v1683_v16  ;;  %v6278_v16 = vor.u32 %v3655_v10, %v3654_v8  ;;  %v5854_v8 = vld [vmem:[#allocation7 + $0x1d4] sm:$0xf0]  ;;  %v5435_v10 = vld [vmem:[#allocation7 + $0x2d0] sm:$0xf] }
 0x1aa   :  { %3463 = vmatpush.bf16.msra.mxu0 %v5140_v12 }
 0x1ab   :  { %v6238_v29 = vpop.f32.mrf.mxu2  ;;  %v6240_v36 = vpop.f32.mrf.mxu3  ;;  %2825 = vmatpush.bf16.msrb.mxu1 %v4924_v30  ;;  %v2207_v39 = vadd.f32 %v6246_v13, %v2193_v22  ;;  %v3693_v56 = vperm.slane %v6278_v16, 0  ;;  %v3696_v38 = vperm.slane %v6278_v16, 3 }
 0x1ac   :  { %v1727_v3 = vadd.f32 %v6238_v29, %v1713_v31  ;;  %3444 = vmatpush.bf16.msrb.mxu3 %v5116_v42  ;;  %v5099_v29 = vld [vmem:[#allocation7 + $0x30] sm:$0xf]  ;;  %v5075_v31 = vld [vmem:[#allocation7] sm:$0xf] }
 0x1ad   :  { %2839 = vmatpush.bf16.msrb.mxu2 %v4988_v1 }
 0x1ae   :  { %v1741_v48 = vadd.f32 %v6240_v36, %v1727_v3  ;;  %v5091_v36 = vld [vmem:[#allocation7 + $0x20] sm:$0xf] }
 0x1b0   :  { %v2194_v52 = vpop.f32.mrf.mxu0  ;;  %v2208_v27 = vpop.f32.mrf.mxu1  ;;  %3445 = vmatpush.bf16.msrb.mxu3 %v5108_v47 }
 0x1b1   :  { %v2195_v43 = vadd.f32 %v2194_v52, %v1685_v24  ;;  %v5802_v52 = vld [vmem:[#allocation7 + $0x34] sm:$0xf0]  ;;  %v5965_v24 = vld [vmem:[#allocation2] sm:$0xff] }
 0x1b2   :  { %v5100_v0 = vor.u32 %v5802_v52, %v5099_v29  ;;  %v5888_v29 = vld [vmem:[#allocation7 + $0x2e4] sm:$0xf0] }
 0x1b3   :  { %v6248_v17 = vpop.f32.mrf.mxu2  ;;  %v6250_v18 = vpop.f32.mrf.mxu3  ;;  %v2209_v49 = vadd.f32 %v2208_v27, %v2195_v43  ;;  %v5800_v27 = vld [vmem:[#allocation7 + $0x24] sm:$0xf0] }
 0x1b4   :  { %3446 = vmatpush.bf16.msrb.mxu3 %v5100_v0  ;;  %v5092_v15 = vor.u32 %v5800_v27, %v5091_v36  ;;  %v5838_v0 = vld [vmem:[#allocation7 + $0x154] sm:$0xf0] }
 0x1b5   :  { %v5886_v36 = vld [vmem:[#allocation7 + $0x2d4] sm:$0xf0] }
 0x1b6   :  { %v5966_v27 = vld [vmem:[#allocation2 + $0x28] sm:$0xff] }
 0x1b8   :  { %3447 = vmatpush.bf16.msrb.mxu3 %v5092_v15 }
 0x1bb   :  { %v6255_v11 = vpop.f32.mrf.mxu2  ;;  %v6257_v55 = vpop.f32.mrf.mxu3 }
 0x1bc   :  { %3448 = vmatpush.bf16.msrb.mxu3 %v5084_v26 }
 0x1c7   :  { %v2262_v9 = vpop.f32.mrf.mxu1 }
 0x1c8   :  { %v2248_v50 = vpop.f32.mrf.mxu0 }
 0x1cf   :  { %v2264_v30 = vpop.f32.mrf.mxu1 }
 0x1d0   :  { %v2250_v25 = vpop.f32.mrf.mxu0 }
 0x1d3   :  { %v2220_v35 = vpop.f32.mrf.mxu2  ;;  %v2234_v4 = vpop.f32.mrf.mxu3 }
 0x1d4   :  { %v2221_v5 = vadd.f32 %v2220_v35, %v2207_v39  ;;  %v2235_v41 = vadd.f32 %v2234_v4, %v1739_v63  ;;  %v3694_v63 = vperm.slane %v6278_v16, 1  ;;  %v5796_v35 = vld [vmem:[#allocation7 + $0x4] sm:$0xf0]  ;;  %v5451_v4 = vld [vmem:[#allocation7 + $0x2f0] sm:$0xf] }
 0x1d5   :  { %v5076_v58 = vor.u32 %v5796_v35, %v5075_v31  ;;  %v5436_v35 = vor.u32 %v5886_v36, %v5435_v10  ;;  %v6331_v10 = vld [vmem:[#allocation2 + $0x38] sm:$0xff] }
 0x1d6   :  { %v2249_v13 = vadd.f32 %v2248_v50, %v2235_v41  ;;  %v2318_v45 = vadd.f32 %v2312_v2, %v2221_v5  ;;  %v5842_v50 = vld [vmem:[#allocation7 + $0x174] sm:$0xf0]  ;;  %v3671_v5 = vunpack.c.l.bf16 %v5965_v24  ;;  %v3672_v41 = vunpack.c.h.bf16 %v5965_v24  ;;  %v5852_v24 = vld [vmem:[#allocation7 + $0x1c4] sm:$0xf0] }
 0x1d7   :  { %3449 = vmatpush.bf16.msrb.mxu3 %v5076_v58 }
 0x1d8   :  { %v2263_v46 = vadd.f32 %v2262_v9, %v2249_v13  ;;  %v2324_v53 = vmax.f32 %v2318_v45, 0.0  ;;  %v5323_v9 = vld [vmem:[#allocation7 + $0x1f0] sm:$0xf]  ;;  %v5260_v45 = vor.u32 %v5842_v50, %v5259_v32  ;;  %v2314_v32 = vperm.slane %v6267_v34, 2  ;;  %v6302_v50 = vld [vmem:[#allocation2 + $0x10] sm:$0xff] }
 0x1da   :  { %v2319_v51 = vadd.f32 %v2313_v44, %v2263_v46 }
 0x1db   :  { %v2222_v54 = vpop.f32.mrf.mxu2  ;;  %v2236_v57 = vpop.f32.mrf.mxu3 }
 0x1dc   :  { %v2325_v59 = vmax.f32 %v2319_v51, 0.0  ;;  %v2223_v60 = vadd.f32 %v2222_v54, %v2209_v49  ;;  %v2237_v61 = vadd.f32 %v2236_v57, %v1741_v48  ;;  %v5452_v48 = vor.u32 %v5890_v40, %v5451_v4  ;;  %v5251_v49 = vld [vmem:[#allocation7 + $0x160] sm:$0xf]  ;;  %v5840_v51 = vld [vmem:[#allocation7 + $0x164] sm:$0xf0] }
 0x1dd   :  { %v5856_v54 = vld [vmem:[#allocation7 + $0x1e4] sm:$0xf0]  ;;  %v5443_v57 = vld [vmem:[#allocation7 + $0x2e0] sm:$0xf]  ;;  %v5252_v52 = vor.u32 %v5840_v51, %v5251_v49  ;;  %v5227_v49 = vld [vmem:[#allocation7 + $0x130] sm:$0xf] }
 0x1de   :  { %v2330_v1 = vpack.c.bf16 %v2325_v59, %v2324_v53  ;;  %v2251_v7 = vadd.f32 %v2250_v25, %v2237_v61  ;;  %v2321_v12 = vadd.f32 %v2312_v2, %v2223_v60  ;;  %v5858_v2 = vld [vmem:[#allocation7 + $0x1f4] sm:$0xf0]  ;;  %v5315_v25 = vld [vmem:[#allocation7 + $0x1e0] sm:$0xf]  ;;  %v3695_v59 = vperm.slane %v6278_v16, 2 }
 0x1df   :  { %v5324_v47 = vor.u32 %v5858_v2, %v5323_v9  ;;  %v5444_v60 = vor.u32 %v5888_v29, %v5443_v57  ;;  %v5243_v61 = vld [vmem:[#allocation7 + $0x150] sm:$0xf]  ;;  %v5235_v2 = vld [vmem:[#allocation7 + $0x140] sm:$0xf]  ;;  %v5836_v4 = vld [vmem:[#allocation7 + $0x144] sm:$0xf0] }
 0x1e0   :  { %2334 = vst [vmem:[#allocation2 + $0x1c] sm:$0xff] %v2330_v1  ;;  %v2265_v14 = vadd.f32 %v2264_v30, %v2251_v7  ;;  %v2327_v22 = vmax.f32 %v2321_v12, 0.0  ;;  %v2510_v42 = vunpack.c.l.b16 %v2330_v1  ;;  %v2511_v43 = vunpack.c.h.b16 %v2330_v1  ;;  %v5307_v30 = vld [vmem:[#allocation7 + $0x1d0] sm:$0xf]  ;;  %v5299_v40 = vld [vmem:[#allocation7 + $0x1c0] sm:$0xf] }
 0x1e1   :  { %v3673_v1 = vunpack.c.l.bf16 %v6284_v20  ;;  %v3681_v12 = vunpack.c.l.bf16 %v5966_v27  ;;  %v5308_v31 = vor.u32 %v5854_v8, %v5307_v30  ;;  %v5236_v20 = vor.u32 %v5836_v4, %v5235_v2  ;;  %v5291_v51 = vld [vmem:[#allocation7 + $0x1b0] sm:$0xf]  ;;  %v5850_v57 = vld [vmem:[#allocation7 + $0x1b4] sm:$0xf0] }
 0x1e2   :  { %v2322_v19 = vadd.f32 %v2313_v44, %v2265_v14  ;;  %v1767_v44 = vadd.f32 %v6234_v6, %v6228_v62  ;;  %v3713_v62 = vmul.f32 %v3693_v56, %v3671_v5  ;;  %v3714_v6 = vmul.f32 %v3694_v63, %v3672_v41  ;;  %v5427_v5 = vld [vmem:[#allocation7 + $0x2c0] sm:$0xf]  ;;  %v5884_v41 = vld [vmem:[#allocation7 + $0x2c4] sm:$0xf0]  ;;  %v5419_v29 = vld [vmem:[#allocation7 + $0x2b0] sm:$0xf] }
 0x1e3   :  { %v3682_v14 = vunpack.c.h.bf16 %v5966_v27  ;;  %v5292_v27 = vor.u32 %v5850_v57, %v5291_v51  ;;  %v5828_v51 = vld [vmem:[#allocation7 + $0x104] sm:$0xf0] }
 0x1e4   :  { %v2328_v23 = vmax.f32 %v2322_v19, 0.0  ;;  %v1781_v53 = vadd.f32 %v6248_v17, %v1767_v44  ;;  %v5316_v17 = vor.u32 %v5856_v54, %v5315_v25 }
 0x1e6   :  { %v2332_v39 = vpack.c.bf16 %v2328_v23, %v2327_v22  ;;  %v1795_v7 = vadd.f32 %v6250_v18, %v1781_v53  ;;  %v3733_v22 = vadd.f32 %v3714_v6, %v3713_v62  ;;  %v1769_v23 = vadd.f32 %v6242_v37, %v6236_v33  ;;  %v5882_v62 = vld [vmem:[#allocation7 + $0x2b4] sm:$0xf0] }
 0x1e7   :  { %v5244_v18 = vor.u32 %v5838_v0, %v5243_v61  ;;  %v2304_v9 = vpop.f32.mrf.mxu0  ;;  %v3715_v33 = vmul.f32 %v3695_v59, %v3673_v1  ;;  %v3699_v61 = vperm.slane %v6278_v16, 6 }
 0x1e8   :  { %2336 = vst [vmem:[#allocation2 + $0x44] sm:$0xff] %v2332_v39  ;;  %v2513_v3 = vunpack.c.l.b16 %v2332_v39  ;;  %v2514_v13 = vunpack.c.h.b16 %v2332_v39  ;;  %v6304_v39 = vld [vmem:[#allocation2 + $0x30] sm:$0xff]  ;;  %v1783_v37 = vadd.f32 %v6255_v11, %v1769_v23  ;;  %v5788_v11 = vld [vmem:[#allocation2 + $0x4] sm:$0xf] }
 0x1e9   :  { %v3683_v44 = vunpack.c.l.bf16 %v6304_v39  ;;  %v3734_v25 = vadd.f32 %v3733_v22, %v3715_v33  ;;  %v3684_v22 = vunpack.c.h.bf16 %v6304_v39 }
 0x1ea   :  { %v2516_v28 = vpack.c.b16 %v2513_v3, %v2510_v42  ;;  %v6286_v46 = vpack.c.b16 %v2514_v13, %v2511_v43  ;;  %v3723_v42 = vmul.f32 %v3693_v56, %v3681_v12  ;;  %v3724_v3 = vmul.f32 %v3694_v63, %v3682_v14  ;;  %v5834_v63 = vld [vmem:[#allocation7 + $0x134] sm:$0xf0]  ;;  %v5219_v14 = vld [vmem:[#allocation7 + $0x120] sm:$0xf] }
 0x1eb   :  { %v3675_v43 = vunpack.c.l.bf16 %v6302_v50  ;;  %v3697_v13 = vperm.slane %v6278_v16, 4  ;;  %v5300_v56 = vor.u32 %v5852_v24, %v5299_v40  ;;  %v1797_v53 = vadd.f32 %v6257_v55, %v1783_v37 }
 0x1ec   :  { %2770 = vmatmul.bf16.vlgmr.msra.gmra.mxu1 %v2516_v28  ;;  %2784 = vmatmul.bf16.vlgmr.msra.gmra.mxu2 %v6286_v46  ;;  %v3744_v6 = vadd.f32 %v3724_v3, %v3723_v42  ;;  %v3725_v55 = vmul.f32 %v3695_v59, %v3683_v44  ;;  %v5228_v8 = vor.u32 %v5834_v63, %v5227_v49  ;;  %v3685_v40 = vunpack.c.l.bf16 %v6331_v10  ;;  %v5403_v44 = vld [vmem:[#allocation7 + $0x290] sm:$0xf] }
 0x1ed   :  { %2812 = vmatmul.bf16.vlgmr.msrb.gmra.mxu0 %v2516_v28  ;;  %3470 = vmatpush.bf16.msra.mxu1 %v5260_v45  ;;  %v5049_v28 = vld [vmem:[#allocation2 + $0x28] sm:$0xf0]  ;;  %v3717_v0 = vmul.f32 %v3697_v13, %v3675_v43  ;;  %v5420_v12 = vor.u32 %v5882_v62, %v5419_v29  ;;  %v3686_v42 = vunpack.c.h.bf16 %v6331_v10  ;;  %v5846_v43 = vld [vmem:[#allocation7 + $0x194] sm:$0xf0]  ;;  %v5844_v29 = vld [vmem:[#allocation7 + $0x184] sm:$0xf0] }
 0x1ee   :  { %3484 = vmatpush.bf16.msra.mxu2 %v5324_v47  ;;  %3512 = vmatpush.bf16.msrb.mxu0 %v5452_v48  ;;  %v3716_v47 = vmul.f32 %v3696_v38, %v3674_v21  ;;  %v5428_v48 = vor.u32 %v5884_v41, %v5427_v5  ;;  %v3745_v33 = vadd.f32 %v3744_v6, %v3725_v55  ;;  %v5211_v5 = vld [vmem:[#allocation7 + $0x110] sm:$0xf]  ;;  %v5830_v41 = vld [vmem:[#allocation7 + $0x114] sm:$0xf0]  ;;  %v5395_v62 = vld [vmem:[#allocation7 + $0x280] sm:$0xf] }
 0x1ef   :  { %v2306_v2 = vpop.f32.mrf.mxu0  ;;  %v6355_v49 = vld [vmem:[#allocation2 + $0x40] sm:$0xff]  ;;  %v3727_v34 = vmul.f32 %v3697_v13, %v3685_v40  ;;  %v5212_v63 = vor.u32 %v5830_v41, %v5211_v5  ;;  %v5876_v6 = vld [vmem:[#allocation7 + $0x284] sm:$0xf0]  ;;  %v5874_v13 = vld [vmem:[#allocation7 + $0x274] sm:$0xf0] }
 0x1f0   :  { %v3735_v21 = vadd.f32 %v3734_v25, %v3716_v47  ;;  %v5203_v47 = vld [vmem:[#allocation7 + $0x100] sm:$0xf]  ;;  %v5515_v10 = vld [vmem:[#allocation7 + $0x370] sm:$0xf]  ;;  %v5065_v40 = vld [vmem:[#allocation2 + $0x38] sm:$0xf0] }
 0x1f1   :  { %3471 = vmatpush.bf16.msra.mxu1 %v5252_v52  ;;  %v5267_v25 = vld [vmem:[#allocation7 + $0x180] sm:$0xf] }
 0x1f2   :  { %3485 = vmatpush.bf16.msra.mxu2 %v5316_v17  ;;  %3513 = vmatpush.bf16.msrb.mxu0 %v5444_v60  ;;  %v6321_v17 = vld [vmem:[#allocation2 + $0x18] sm:$0xff]  ;;  %v3698_v60 = vperm.slane %v6278_v16, 5  ;;  %v3736_v4 = vadd.f32 %v3735_v21, %v3717_v0  ;;  %v5387_v0 = vld [vmem:[#allocation7 + $0x270] sm:$0xf]  ;;  %v5809_v21 = vld [vmem:[#allocation7 + $0x74] sm:$0xf] }
 0x1f3   :  { %v2276_v15 = vpop.f32.mrf.mxu2  ;;  %v2290_v19 = vpop.f32.mrf.mxu3  ;;  %v5379_v41 = vld [vmem:[#allocation7 + $0x260] sm:$0xf] }
 0x1f4   :  { %v2277_v26 = vadd.f32 %v2276_v15, %v1795_v7  ;;  %v6329_v7 = vor.u32 %v5788_v11, %v5049_v28  ;;  %v5832_v15 = vld [vmem:[#allocation7 + $0x124] sm:$0xf0]  ;;  %v3726_v28 = vmul.f32 %v3696_v38, %v3684_v22  ;;  %v5133_v22 = vld [vmem:[#allocation7 + $0x78] sm:$0xf0] }
 0x1f5   :  { %3472 = vmatpush.bf16.msra.mxu1 %v5244_v18  ;;  %v5411_v18 = vld [vmem:[#allocation7 + $0x2a0] sm:$0xf]  ;;  %v5220_v37 = vor.u32 %v5832_v15, %v5219_v14  ;;  %v5136_v5 = vor.u32 %v5809_v21, %v5133_v22  ;;  %v5868_v21 = vld [vmem:[#allocation7 + $0x244] sm:$0xf0] }
 0x1f6   :  { %v2291_v58 = vadd.f32 %v2290_v19, %v2277_v26  ;;  %3486 = vmatpush.bf16.msra.mxu2 %v5308_v31  ;;  %3514 = vmatpush.bf16.msrb.mxu0 %v5436_v35  ;;  %v5283_v19 = vld [vmem:[#allocation7 + $0x1a0] sm:$0xf]  ;;  %v5848_v26 = vld [vmem:[#allocation7 + $0x1a4] sm:$0xf0]  ;;  %v3676_v31 = vunpack.c.h.bf16 %v6302_v50  ;;  %v3677_v35 = vunpack.c.l.bf16 %v6321_v17 }
 0x1f7   :  { %v5284_v50 = vor.u32 %v5848_v26, %v5283_v19 }
 0x1f8   :  { %v2305_v45 = vadd.f32 %v2304_v9, %v2291_v58  ;;  %v5880_v9 = vld [vmem:[#allocation7 + $0x2a4] sm:$0xf0]  ;;  %v3700_v58 = vperm.slane %v6278_v16, 7  ;;  %v3719_v11 = vmul.f32 %v3699_v61, %v3677_v35  ;;  %v5841_v35 = vld [vmem:[#allocation7 + $0x174] sm:$0xf] }
 0x1f9   :  { %3473 = vmatpush.bf16.msra.mxu1 %v5236_v20  ;;  %v5412_v24 = vor.u32 %v5880_v9, %v5411_v18  ;;  %v3718_v20 = vmul.f32 %v3698_v60, %v3676_v31  ;;  %v5268_v18 = vor.u32 %v5844_v29, %v5267_v25  ;;  %v5396_v9 = vor.u32 %v5876_v6, %v5395_v62  ;;  %v5371_v25 = vld [vmem:[#allocation7 + $0x250] sm:$0xf]  ;;  %v5491_v16 = vld [vmem:[#allocation7 + $0x340] sm:$0xf] }
 0x1fa   :  { %v2320_v54 = vadd.f32 %v2314_v32, %v2305_v45  ;;  %3487 = vmatpush.bf16.msra.mxu2 %v5300_v56  ;;  %3515 = vmatpush.bf16.msrb.mxu0 %v5428_v48  ;;  %v5878_v45 = vld [vmem:[#allocation7 + $0x294] sm:$0xf0]  ;;  %v6352_v56 = vld [vmem:[#allocation8 + $0x44] ss:$8 sm:$0x3]  ;;  %v3678_v48 = vunpack.c.h.bf16 %v6321_v17  ;;  %v5388_v31 = vor.u32 %v5874_v13, %v5387_v0 }
 0x1fb   :  { %v2278_v52 = vpop.f32.mrf.mxu2  ;;  %v2292_v36 = vpop.f32.mrf.mxu3  ;;  %v5404_v57 = vor.u32 %v5878_v45, %v5403_v44  ;;  %v3701_v55 = vperm.slane %v6352_v56, 0  ;;  %v5904_v44 = vld [vmem:[#allocation7 + $0x364] sm:$0xf0]  ;;  %v5807_v45 = vld [vmem:[#allocation7 + $0x64] sm:$0xf] }
 0x1fc   :  { %v2326_v30 = vmax.f32 %v2320_v54, 0.0  ;;  %v2279_v1 = vadd.f32 %v2278_v52, %v1797_v53  ;;  %2826 = vmatmul.bf16.vlgmr.msrb.gmra.mxu1 %v6286_v46  ;;  %v5275_v46 = vld [vmem:[#allocation7 + $0x190] sm:$0xf]  ;;  %v3737_v53 = vadd.f32 %v3736_v4, %v3718_v20  ;;  %v3746_v54 = vadd.f32 %v3745_v33, %v3726_v28  ;;  %v5125_v20 = vld [vmem:[#allocation7 + $0x68] sm:$0xf0] }
 0x1fd   :  { %3464 = vmatmul.bf16.vlgmr.msra.gmra.mxu0 %v6329_v7  ;;  %3474 = vmatpush.bf16.msra.mxu1 %v5228_v8  ;;  %v5276_v38 = vor.u32 %v5846_v43, %v5275_v46  ;;  %v3728_v52 = vmul.f32 %v3698_v60, %v3686_v42  ;;  %v5204_v8 = vor.u32 %v5828_v51, %v5203_v47  ;;  %v5872_v46 = vld [vmem:[#allocation7 + $0x264] sm:$0xf0]  ;;  %v5507_v42 = vld [vmem:[#allocation7 + $0x360] sm:$0xf]  ;;  %v5839_v47 = vld [vmem:[#allocation7 + $0x164] sm:$0xf] }
 0x1fe   :  { %v6334_v59 = vpack.c.bf16 %v2326_v30, %v2326_v30  ;;  %v2293_v23 = vadd.f32 %v2292_v36, %v2279_v1  ;;  %3488 = vmatpush.bf16.msra.mxu2 %v5292_v27  ;;  %3516 = vmatpush.bf16.msrb.mxu0 %v5420_v12  ;;  %v3738_v30 = vadd.f32 %v3737_v53, %v3719_v11  ;;  %v3687_v1 = vunpack.c.l.bf16 %v6355_v49  ;;  %v5906_v36 = vld [vmem:[#allocation7 + $0x374] sm:$0xf0]  ;;  %v5499_v29 = vld [vmem:[#allocation7 + $0x350] sm:$0xf]  ;;  %v5117_v0 = vld [vmem:[#allocation7 + $0x58] sm:$0xf0] }
 0x1ff   :  { %v3702_v12 = vperm.slane %v6352_v56, 1  ;;  %v3720_v14 = vmul.f32 %v3700_v58, %v3678_v48  ;;  %v3747_v15 = vadd.f32 %v3746_v54, %v3727_v34  ;;  %v5253_v48 = vld [vmem:[#allocation7 + $0x168] sm:$0xf0] }
 0x200   :  { %2335 = vst [vmem:[#allocation2 + $0x24] sm:$0xf] %v6334_v59  ;;  %v2307_v39 = vadd.f32 %v2306_v2, %v2293_v23  ;;  %v2512_v60 = vunpack.c.l.b16 %v6334_v59  ;;  %v5261_v2 = vld [vmem:[#allocation7 + $0x178] sm:$0xf0]  ;;  %v5256_v6 = vor.u32 %v5839_v47, %v5253_v48 }
 0x201   :  { %3475 = vmatpush.bf16.msra.mxu1 %v5220_v37  ;;  %v3739_v59 = vadd.f32 %v3738_v30, %v3720_v14  ;;  %v5055_v37 = vld [vmem:[#allocation2 + $0x8] sm:$0xf]  ;;  %v5264_v43 = vor.u32 %v5841_v35, %v5261_v2  ;;  %v5237_v35 = vld [vmem:[#allocation7 + $0x148] sm:$0xf0]  ;;  %v5047_v2 = vld [vmem:[#allocation2] sm:$0xf] }
 0x202   :  { %v2323_v3 = vadd.f32 %v2314_v32, %v2307_v39  ;;  %3489 = vmatpush.bf16.msra.mxu2 %v5284_v50  ;;  %3517 = vmatpush.bf16.msrb.mxu0 %v5412_v24  ;;  %v3729_v39 = vmul.f32 %v3699_v61, %v3687_v1  ;;  %v5792_v50 = vld [vmem:[#allocation2 + $0x2c] sm:$0xf0]  ;;  %v5516_v24 = vor.u32 %v5906_v36, %v5515_v10  ;;  %v3688_v61 = vunpack.c.h.bf16 %v6355_v49  ;;  %v5870_v49 = vld [vmem:[#allocation7 + $0x254] sm:$0xf0]  ;;  %v5245_v10 = vld [vmem:[#allocation7 + $0x158] sm:$0xf0] }
 0x203   :  { %v6374_v34 = vor.u32 %v5792_v50, %v5055_v37  ;;  %v5372_v36 = vor.u32 %v5870_v49, %v5371_v25  ;;  %v5866_v37 = vld [vmem:[#allocation7 + $0x234] sm:$0xf0]  ;;  %v5483_v50 = vld [vmem:[#allocation7 + $0x330] sm:$0xf]  ;;  %v5831_v25 = vld [vmem:[#allocation7 + $0x124] sm:$0xf] }
 0x204   :  { %v2329_v32 = vmax.f32 %v2323_v3, 0.0  ;;  %v3748_v3 = vadd.f32 %v3747_v15, %v3728_v52  ;;  %v5902_v52 = vld [vmem:[#allocation7 + $0x354] sm:$0xf0]  ;;  %v3730_v1 = vmul.f32 %v3700_v58, %v3688_v61  ;;  %v5900_v58 = vld [vmem:[#allocation7 + $0x344] sm:$0xf0] }
 0x205   :  { %3476 = vmatpush.bf16.msra.mxu1 %v5212_v63  ;;  %v5380_v63 = vor.u32 %v5872_v46, %v5379_v41  ;;  %v5101_v41 = vld [vmem:[#allocation7 + $0x38] sm:$0xf0]  ;;  %v5057_v46 = vld [vmem:[#allocation2 + $0x30] sm:$0xf0]  ;;  %v5475_v61 = vld [vmem:[#allocation7 + $0x320] sm:$0xf] }
 0x206   :  { %v2333_v17 = vpack.c.bf16 %v2329_v32, %v2329_v32  ;;  %3490 = vmatpush.bf16.msra.mxu2 %v5276_v38  ;;  %3518 = vmatpush.bf16.msrb.mxu0 %v5404_v57  ;;  %v5790_v32 = vld [vmem:[#allocation2 + $0x14] sm:$0xf]  ;;  %v3749_v53 = vadd.f32 %v3748_v3, %v3729_v39  ;;  %v5508_v38 = vor.u32 %v5904_v44, %v5507_v42  ;;  %v5355_v39 = vld [vmem:[#allocation7 + $0x230] sm:$0xf]  ;;  %v5833_v42 = vld [vmem:[#allocation7 + $0x134] sm:$0xf] }
 0x207   :  { %v3665_v27 = vld [vmem:[#allocation2 + $0x20] sm:$0xff]  ;;  %v6376_v54 = vor.u32 %v5790_v32, %v5065_v40  ;;  %v5128_v57 = vor.u32 %v5807_v45, %v5125_v20  ;;  %v5229_v3 = vld [vmem:[#allocation7 + $0x138] sm:$0xf0]  ;;  %v5356_v44 = vor.u32 %v5866_v37, %v5355_v39  ;;  %v5896_v32 = vld [vmem:[#allocation7 + $0x324] sm:$0xf0] }
 0x208   :  { %2337 = vst [vmem:[#allocation2 + $0x4c] sm:$0xf] %v2333_v17  ;;  %v2515_v19 = vunpack.c.l.b16 %v2333_v17  ;;  %v3679_v23 = vunpack.c.l.bf16 %v3665_v27  ;;  %v3680_v26 = vunpack.c.h.bf16 %v3665_v27  ;;  %v5805_v17 = vld [vmem:[#allocation7 + $0x54] sm:$0xf]  ;;  %v5363_v27 = vld [vmem:[#allocation7 + $0x240] sm:$0xf]  ;;  %v3750_v15 = vadd.f32 %v3749_v53, %v3730_v1 }
 0x209   :  { %3477 = vmatpush.bf16.msra.mxu1 %v5204_v8  ;;  %v5837_v8 = vld [vmem:[#allocation7 + $0x154] sm:$0xf]  ;;  %v5232_v48 = vor.u32 %v5833_v42, %v5229_v3  ;;  %v5221_v53 = vld [vmem:[#allocation7 + $0x128] sm:$0xf0]  ;;  %v5213_v1 = vld [vmem:[#allocation7 + $0x118] sm:$0xf0] }
 0x20a   :  { %v2518_v4 = vpack.c.b16 %v2515_v19, %v2512_v60  ;;  %v3721_v33 = vmul.f32 %v3701_v55, %v3679_v23  ;;  %v3722_v11 = vmul.f32 %v3702_v12, %v3680_v26  ;;  %3491 = vmatpush.bf16.msra.mxu2 %v5268_v18  ;;  %3519 = vmatpush.bf16.msrb.mxu0 %v5396_v9  ;;  %v5803_v23 = vld [vmem:[#allocation7 + $0x44] sm:$0xf]  ;;  %v5109_v26 = vld [vmem:[#allocation7 + $0x48] sm:$0xf0]  ;;  %v5794_v37 = vld [vmem:[#allocation2 + $0x3c] sm:$0xf0] }
 0x20b   :  { %v5500_v60 = vor.u32 %v5902_v52, %v5499_v29  ;;  %v5120_v19 = vor.u32 %v5805_v17, %v5117_v0  ;;  %v5248_v22 = vor.u32 %v5837_v8, %v5245_v10  ;;  %v5339_v29 = vld [vmem:[#allocation7 + $0x210] sm:$0xf]  ;;  %v5224_v52 = vor.u32 %v5831_v25, %v5221_v53  ;;  %v5894_v17 = vld [vmem:[#allocation7 + $0x314] sm:$0xf0]  ;;  %v5797_v0 = vld [vmem:[#allocation7 + $0x14] sm:$0xf] }
 0x20c   :  { %2798 = vmatmul.bf16.vlgmr.msra.gmra.mxu3 %v2518_v4  ;;  %v3740_v28 = vadd.f32 %v3739_v59, %v3721_v33  ;;  %2840 = vmatmul.bf16.vlgmr.msrb.gmra.mxu2 %v2518_v4  ;;  %v5364_v4 = vor.u32 %v5868_v21, %v5363_v27  ;;  %v5492_v33 = vor.u32 %v5900_v58, %v5491_v16  ;;  %v5331_v10 = vld [vmem:[#allocation7 + $0x200] sm:$0xf]  ;;  %v5077_v16 = vld [vmem:[#allocation7 + $0x8] sm:$0xf0]  ;;  %v5827_v58 = vld [vmem:[#allocation7 + $0x104] sm:$0xf] }
 0x20d   :  { %3498 = vmatpush.bf16.msra.mxu3 %v5388_v31  ;;  %3526 = vmatpush.bf16.msrb.mxu1 %v5516_v24  ;;  %v5835_v31 = vld [vmem:[#allocation7 + $0x144] sm:$0xf]  ;;  %v5112_v59 = vor.u32 %v5803_v23, %v5109_v26  ;;  %v5825_v23 = vld [vmem:[#allocation7 + $0xf4] sm:$0xf]  ;;  %v5197_v26 = vld [vmem:[#allocation7 + $0xf8] sm:$0xf0] }
 0x20e   :  { %v3741_v51 = vadd.f32 %v3740_v28, %v3722_v11  ;;  %3540 = vmatpush.bf16.msrb.mxu2 %v5136_v5  ;;  %3568 = vmatpush.bf16.msra.mxu0 %v5264_v43  ;;  %v5240_v24 = vor.u32 %v5835_v31, %v5237_v35  ;;  %v5801_v5 = vld [vmem:[#allocation7 + $0x34] sm:$0xf]  ;;  %v5789_v43 = vld [vmem:[#allocation2 + $0xc] sm:$0xf]  ;;  %v5347_v11 = vld [vmem:[#allocation7 + $0x220] sm:$0xf]  ;;  %v5200_v39 = vor.u32 %v5825_v23, %v5197_v26 }
 0x20f   :  { %v3670_v62 = vld [vmem:[#allocation2 + $0x48] sm:$0xff]  ;;  %3520 = vmatmul.bf16.vlgmr.msrb.gmra.mxu0 %v6376_v54  ;;  %3478 = vmatmul.bf16.vlgmr.msra.gmra.mxu1 %v6374_v34  ;;  %v5104_v20 = vor.u32 %v5801_v5, %v5101_v41  ;;  %v5864_v28 = vld [vmem:[#allocation7 + $0x224] sm:$0xf0]  ;;  %v6389_v47 = vor.u32 %v5789_v43, %v5057_v46  ;;  %v5873_v35 = vld [vmem:[#allocation7 + $0x274] sm:$0xf] }
 0x210   :  { %3742 = vadd.xlane.f32.xlu0 %v3741_v51  ;;  %v3689_v13 = vunpack.c.l.bf16 %v3670_v62  ;;  %v3690_v30 = vunpack.c.h.bf16 %v3670_v62  ;;  %v5093_v51 = vld [vmem:[#allocation7 + $0x28] sm:$0xf0]  ;;  %v5862_v62 = vld [vmem:[#allocation7 + $0x214] sm:$0xf0]  ;;  %v5325_v31 = vld [vmem:[#allocation7 + $0x1f8] sm:$0xf0] }
 0x211   :  { %3499 = vmatpush.bf16.msra.mxu3 %v5380_v63  ;;  %3527 = vmatpush.bf16.msrb.mxu1 %v5508_v38  ;;  %v5799_v63 = vld [vmem:[#allocation7 + $0x24] sm:$0xf]  ;;  %v5348_v38 = vor.u32 %v5864_v28, %v5347_v11  ;;  %v5340_v8 = vor.u32 %v5862_v62, %v5339_v29  ;;  %v5189_v41 = vld [vmem:[#allocation7 + $0xe8] sm:$0xf0]  ;;  %v5821_v25 = vld [vmem:[#allocation7 + $0xd4] sm:$0xf] }
 0x212   :  { %v3731_v14 = vmul.f32 %v3701_v55, %v3689_v13  ;;  %3541 = vmatpush.bf16.msrb.mxu2 %v5128_v57  ;;  %3569 = vmatpush.bf16.msra.mxu0 %v5256_v6  ;;  %v3732_v18 = vmul.f32 %v3702_v12, %v3690_v30  ;;  %v5791_v55 = vld [vmem:[#allocation2 + $0x24] sm:$0xf0]  ;;  %v5476_v57 = vor.u32 %v5896_v32, %v5475_v61  ;;  %v5467_v6 = vld [vmem:[#allocation7 + $0x310] sm:$0xf]  ;;  %v5085_v13 = vld [vmem:[#allocation7 + $0x18] sm:$0xf0] }
 0x213   :  { %v6386_v56 = vor.u32 %v5791_v55, %v5047_v2  ;;  %v5898_v12 = vld [vmem:[#allocation7 + $0x334] sm:$0xf0]  ;;  %v5096_v49 = vor.u32 %v5799_v63, %v5093_v51  ;;  %v5829_v30 = vld [vmem:[#allocation7 + $0x114] sm:$0xf]  ;;  %v5468_v27 = vor.u32 %v5894_v17, %v5467_v6  ;;  %v5389_v2 = vld [vmem:[#allocation7 + $0x278] sm:$0xf0] }
 0x214   :  { %v3751_v9 = vadd.f32 %v3750_v15, %v3731_v14  ;;  %v5484_v45 = vor.u32 %v5898_v12, %v5483_v50  ;;  %v5088_v14 = vor.u32 %v5797_v0, %v5085_v13  ;;  %v5459_v15 = vld [vmem:[#allocation7 + $0x300] sm:$0xf]  ;;  %v5216_v21 = vor.u32 %v5829_v30, %v5213_v1  ;;  %v5793_v50 = vld [vmem:[#allocation2 + $0x34] sm:$0xf0]  ;;  %v5823_v5 = vld [vmem:[#allocation7 + $0xe4] sm:$0xf] }
 0x215   :  { %3500 = vmatpush.bf16.msra.mxu3 %v5372_v36  ;;  %3528 = vmatpush.bf16.msrb.mxu1 %v5500_v60  ;;  %v5860_v36 = vld [vmem:[#allocation7 + $0x204] sm:$0xf0]  ;;  %v5392_v12 = vor.u32 %v5873_v35, %v5389_v2  ;;  %v5855_v46 = vld [vmem:[#allocation7 + $0x1e4] sm:$0xf]  ;;  %v5317_v3 = vld [vmem:[#allocation7 + $0x1e8] sm:$0xf0] }
 0x216   :  { %v3752_v40 = vadd.f32 %v3751_v9, %v3732_v18  ;;  %3542 = vmatpush.bf16.msrb.mxu2 %v5120_v19  ;;  %3570 = vmatpush.bf16.msra.mxu0 %v5248_v22  ;;  %v5892_v60 = vld [vmem:[#allocation7 + $0x304] sm:$0xf0]  ;;  %v5795_v19 = vld [vmem:[#allocation7 + $0x4] sm:$0xf]  ;;  %v5205_v22 = vld [vmem:[#allocation7 + $0x108] sm:$0xf0]  ;;  %v5332_v9 = vor.u32 %v5860_v36, %v5331_v10  ;;  %v5320_v63 = vor.u32 %v5855_v46, %v5317_v3 }
 0x217   :  { %v5857_v18 = vld [vmem:[#allocation7 + $0x1f4] sm:$0xf]  ;;  %v5460_v55 = vor.u32 %v5892_v60, %v5459_v15  ;;  %v5871_v43 = vld [vmem:[#allocation7 + $0x264] sm:$0xf]  ;;  %v5509_v11 = vld [vmem:[#allocation7 + $0x368] sm:$0xf0] }
 0x218   :  { %3753 = vadd.xlane.f32.xlu0 %v3752_v40  ;;  %v5905_v40 = vld [vmem:[#allocation7 + $0x374] sm:$0xf]  ;;  %v5063_v61 = vld [vmem:[#allocation2 + $0x10] sm:$0xf]  ;;  %v5181_v53 = vld [vmem:[#allocation7 + $0xd8] sm:$0xf0] }
 0x219   :  { %3501 = vmatpush.bf16.msra.mxu3 %v5364_v4  ;;  %3529 = vmatpush.bf16.msrb.mxu1 %v5492_v33  ;;  %v5080_v4 = vor.u32 %v5795_v19, %v5077_v16  ;;  %v5517_v33 = vld [vmem:[#allocation7 + $0x378] sm:$0xf0]  ;;  %v6394_v32 = vor.u32 %v5793_v50, %v5063_v61  ;;  %v5869_v29 = vld [vmem:[#allocation7 + $0x254] sm:$0xf]  ;;  %v5184_v17 = vor.u32 %v5821_v25, %v5181_v53  ;;  %v5819_v30 = vld [vmem:[#allocation7 + $0xc4] sm:$0xf] }
 0x21a   :  { %3543 = vmatpush.bf16.msrb.mxu2 %v5112_v59  ;;  %3571 = vmatpush.bf16.msra.mxu0 %v5240_v24  ;;  %v5208_v59 = vor.u32 %v5827_v58, %v5205_v22  ;;  %v5328_v24 = vor.u32 %v5857_v18, %v5325_v31  ;;  %v5520_v42 = vor.u32 %v5905_v40, %v5517_v33  ;;  %v5373_v62 = vld [vmem:[#allocation7 + $0x258] sm:$0xf0]  ;;  %v5901_v6 = vld [vmem:[#allocation7 + $0x354] sm:$0xf]  ;;  %v5173_v1 = vld [vmem:[#allocation7 + $0xc8] sm:$0xf0] }
 0x21b   :  { %v5376_v13 = vor.u32 %v5869_v29, %v5373_v62  ;;  %v5301_v36 = vld [vmem:[#allocation7 + $0x1c8] sm:$0xf0]  ;;  %v5899_v15 = vld [vmem:[#allocation7 + $0x344] sm:$0xf]  ;;  %v5176_v60 = vor.u32 %v5819_v30, %v5173_v1  ;;  %v5165_v16 = vld [vmem:[#allocation7 + $0xb8] sm:$0xf0] }
 0x21c   :  { %3450 = vmatmul.bf16.vlgmr.msrb.gmra.mxu3 %v6386_v56  ;;  %3492 = vmatmul.bf16.vlgmr.msra.gmra.mxu2 %v6389_v47  ;;  %v5849_v58 = vld [vmem:[#allocation7 + $0x1b4] sm:$0xf]  ;;  %v5293_v23 = vld [vmem:[#allocation7 + $0x1b8] sm:$0xf0]  ;;  %v5157_v40 = vld [vmem:[#allocation7 + $0xa8] sm:$0xf0] }
 0x21d   :  { %3502 = vmatpush.bf16.msra.mxu3 %v5356_v44  ;;  %3530 = vmatpush.bf16.msrb.mxu1 %v5484_v45  ;;  %v5381_v44 = vld [vmem:[#allocation7 + $0x268] sm:$0xf0]  ;;  %v5071_v45 = vld [vmem:[#allocation2 + $0x18] sm:$0xf]  ;;  %v5865_v26 = vld [vmem:[#allocation7 + $0x234] sm:$0xf]  ;;  %v5296_v2 = vor.u32 %v5849_v58, %v5293_v23 }
 0x21e   :  { %3544 = vmatpush.bf16.msrb.mxu2 %v5104_v20  ;;  %3572 = vmatpush.bf16.msra.mxu0 %v5232_v48  ;;  %v5903_v20 = vld [vmem:[#allocation7 + $0x364] sm:$0xf]  ;;  %v6392_v28 = vor.u32 %v5794_v37, %v5071_v45  ;;  %v5192_v48 = vor.u32 %v5823_v5, %v5189_v41  ;;  %v5384_v51 = vor.u32 %v5871_v43, %v5381_v44  ;;  %v5357_v18 = vld [vmem:[#allocation7 + $0x238] sm:$0xf0]  ;;  %v5349_v50 = vld [vmem:[#allocation7 + $0x228] sm:$0xf0] }
 0x21f   :  { %v5485_v31 = vld [vmem:[#allocation7 + $0x338] sm:$0xf0]  ;;  %v5847_v33 = vld [vmem:[#allocation7 + $0x1a4] sm:$0xf]  ;;  %v5845_v43 = vld [vmem:[#allocation7 + $0x194] sm:$0xf] }
 0x220   :  { %v5863_v37 = vld [vmem:[#allocation7 + $0x224] sm:$0xf]  ;;  %v5149_v3 = vld [vmem:[#allocation7 + $0x98] sm:$0xf0]  ;;  %v5893_v61 = vld [vmem:[#allocation7 + $0x314] sm:$0xf] }
 0x221   :  { %3503 = vmatpush.bf16.msra.mxu3 %v5348_v38  ;;  %3531 = vmatpush.bf16.msrb.mxu1 %v5476_v57  ;;  %v5853_v38 = vld [vmem:[#allocation7 + $0x1d4] sm:$0xf]  ;;  %v5512_v57 = vor.u32 %v5903_v20, %v5509_v11  ;;  %v5352_v46 = vor.u32 %v5863_v37, %v5349_v50  ;;  %v5277_v45 = vld [vmem:[#allocation7 + $0x198] sm:$0xf0]  ;;  %v5859_v62 = vld [vmem:[#allocation7 + $0x204] sm:$0xf] }
 0x222   :  { %3545 = vmatpush.bf16.msrb.mxu2 %v5096_v49  ;;  %3573 = vmatpush.bf16.msra.mxu0 %v5224_v52  ;;  %v5309_v49 = vld [vmem:[#allocation7 + $0x1d8] sm:$0xf0]  ;;  %v5861_v20 = vld [vmem:[#allocation7 + $0x214] sm:$0xf]  ;;  %v5280_v25 = vor.u32 %v5845_v43, %v5277_v45 }
 0x223   :  { %v5501_v52 = vld [vmem:[#allocation7 + $0x358] sm:$0xf0]  ;;  %v5312_v0 = vor.u32 %v5853_v38, %v5309_v49  ;;  %v5141_v38 = vld [vmem:[#allocation7 + $0x88] sm:$0xf0]  ;;  %v5881_v58 = vld [vmem:[#allocation7 + $0x2b4] sm:$0xf] }
 0x224   :  { %v5504_v10 = vor.u32 %v5901_v6, %v5501_v52  ;;  %v5341_v11 = vld [vmem:[#allocation7 + $0x218] sm:$0xf0]  ;;  %v5269_v49 = vld [vmem:[#allocation7 + $0x188] sm:$0xf0]  ;;  %v5891_v52 = vld [vmem:[#allocation7 + $0x304] sm:$0xf] }
 0x225   :  { %3504 = vmatpush.bf16.msra.mxu3 %v5340_v8  ;;  %3532 = vmatpush.bf16.msrb.mxu1 %v5468_v27  ;;  %v5851_v8 = vld [vmem:[#allocation7 + $0x1c4] sm:$0xf]  ;;  %v5344_v53 = vor.u32 %v5861_v20, %v5341_v11  ;;  %v5333_v6 = vld [vmem:[#allocation7 + $0x208] sm:$0xf0] }
 0x226   :  { %3546 = vmatpush.bf16.msrb.mxu2 %v5088_v14  ;;  %3574 = vmatpush.bf16.msra.mxu0 %v5216_v21  ;;  %v5867_v27 = vld [vmem:[#allocation7 + $0x244] sm:$0xf]  ;;  %v5365_v14 = vld [vmem:[#allocation7 + $0x248] sm:$0xf0]  ;;  %v5304_v19 = vor.u32 %v5851_v8, %v5301_v36  ;;  %v5817_v21 = vld [vmem:[#allocation7 + $0xb4] sm:$0xf]  ;;  %v5336_v8 = vor.u32 %v5859_v62, %v5333_v6 }
 0x227   :  { %v5168_v35 = vor.u32 %v5817_v21, %v5165_v16  ;;  %v5429_v21 = vld [vmem:[#allocation7 + $0x2c8] sm:$0xf0] }
 0x229   :  { %3505 = vmatpush.bf16.msra.mxu3 %v5332_v9  ;;  %3533 = vmatpush.bf16.msrb.mxu1 %v5460_v55  ;;  %v5897_v9 = vld [vmem:[#allocation7 + $0x334] sm:$0xf]  ;;  %v5360_v55 = vor.u32 %v5865_v26, %v5357_v18  ;;  %v5879_v26 = vld [vmem:[#allocation7 + $0x2a4] sm:$0xf] }
 0x22a   :  { %3547 = vmatpush.bf16.msrb.mxu2 %v5080_v4  ;;  %3575 = vmatpush.bf16.msra.mxu0 %v5208_v59  ;;  %v5815_v4 = vld [vmem:[#allocation7 + $0xa4] sm:$0xf]  ;;  %v5488_v59 = vor.u32 %v5897_v9, %v5485_v31  ;;  %v5877_v9 = vld [vmem:[#allocation7 + $0x294] sm:$0xf] }
 0x22b   :  { %v5160_v5 = vor.u32 %v5815_v4, %v5157_v40  ;;  %v5875_v31 = vld [vmem:[#allocation7 + $0x284] sm:$0xf] }
 0x22c   :  { %3534 = vmatmul.bf16.vlgmr.msrb.gmra.mxu1 %v6392_v28  ;;  %3506 = vmatmul.bf16.vlgmr.msra.gmra.mxu3 %v6394_v32 }
 0x22d   :  { %3554 = vmatpush.bf16.msrb.mxu3 %v5200_v39  ;;  %3582 = vmatpush.bf16.msra.mxu1 %v5328_v24  ;;  %v5285_v39 = vld [vmem:[#allocation7 + $0x1a8] sm:$0xf0]  ;;  %v5895_v24 = vld [vmem:[#allocation7 + $0x324] sm:$0xf] }
 0x22e   :  { %3596 = vmatpush.bf16.msra.mxu2 %v5392_v12  ;;  %3624 = vmatpush.bf16.msrb.mxu0 %v5520_v42  ;;  %v5477_v12 = vld [vmem:[#allocation7 + $0x328] sm:$0xf0]  ;;  %v5288_v41 = vor.u32 %v5847_v33, %v5285_v39  ;;  %v5813_v42 = vld [vmem:[#allocation7 + $0x94] sm:$0xf] }
 0x22f   :  { %3548 = vmatmul.bf16.vlgmr.msrb.gmra.mxu2 %v6386_v56  ;;  %3576 = vmatmul.bf16.vlgmr.msra.gmra.mxu0 %v6374_v34  ;;  %v5493_v56 = vld [vmem:[#allocation7 + $0x348] sm:$0xf0]  ;;  %v5368_v34 = vor.u32 %v5867_v27, %v5365_v14  ;;  %v5480_v44 = vor.u32 %v5895_v24, %v5477_v12  ;;  %v5887_v27 = vld [vmem:[#allocation7 + $0x2e4] sm:$0xf] }
 0x230   :  { %v5496_v22 = vor.u32 %v5899_v15, %v5493_v56  ;;  %v5445_v14 = vld [vmem:[#allocation7 + $0x2e8] sm:$0xf0]  ;;  %v5885_v56 = vld [vmem:[#allocation7 + $0x2d4] sm:$0xf] }
 0x231   :  { %3555 = vmatpush.bf16.msrb.mxu3 %v5192_v48  ;;  %3583 = vmatpush.bf16.msra.mxu1 %v5320_v63  ;;  %v5469_v48 = vld [vmem:[#allocation7 + $0x318] sm:$0xf0]  ;;  %v5152_v63 = vor.u32 %v5813_v42, %v5149_v3  ;;  %v5448_v15 = vor.u32 %v5887_v27, %v5445_v14 }
 0x232   :  { %3597 = vmatpush.bf16.msra.mxu2 %v5384_v51  ;;  %3625 = vmatpush.bf16.msrb.mxu0 %v5512_v57  ;;  %v5811_v51 = vld [vmem:[#allocation7 + $0x84] sm:$0xf]  ;;  %v5472_v29 = vor.u32 %v5893_v61, %v5469_v48 }
 0x233   :  { %v5843_v57 = vld [vmem:[#allocation7 + $0x184] sm:$0xf]  ;;  %v5144_v30 = vor.u32 %v5811_v51, %v5141_v38 }
 0x234   :  { %v5272_v1 = vor.u32 %v5843_v57, %v5269_v49 }
 0x235   :  { %3556 = vmatpush.bf16.msrb.mxu3 %v5184_v17  ;;  %3584 = vmatpush.bf16.msra.mxu1 %v5312_v0  ;;  %v5461_v17 = vld [vmem:[#allocation7 + $0x308] sm:$0xf0]  ;;  %v5889_v0 = vld [vmem:[#allocation7 + $0x2f4] sm:$0xf] }
 0x236   :  { %3598 = vmatpush.bf16.msra.mxu2 %v5376_v13  ;;  %3626 = vmatpush.bf16.msrb.mxu0 %v5504_v10  ;;  %v5453_v13 = vld [vmem:[#allocation7 + $0x2f8] sm:$0xf0]  ;;  %v5464_v10 = vor.u32 %v5891_v52, %v5461_v17 }
 0x237   :  { %v5456_v36 = vor.u32 %v5889_v0, %v5453_v13 }
 0x239   :  { %3557 = vmatpush.bf16.msrb.mxu3 %v5176_v60  ;;  %3585 = vmatpush.bf16.msra.mxu1 %v5304_v19  ;;  %v5437_v60 = vld [vmem:[#allocation7 + $0x2d8] sm:$0xf0] }
 0x23a   :  { %3599 = vmatpush.bf16.msra.mxu2 %v5368_v34  ;;  %3627 = vmatpush.bf16.msrb.mxu0 %v5496_v22  ;;  %v5440_v19 = vor.u32 %v5885_v56, %v5437_v60  ;;  %v5883_v34 = vld [vmem:[#allocation7 + $0x2c4] sm:$0xf]  ;;  %v5421_v22 = vld [vmem:[#allocation7 + $0x2b8] sm:$0xf0] }
 0x23b   :  { %v5432_v16 = vor.u32 %v5883_v34, %v5429_v21  ;;  %v5424_v23 = vor.u32 %v5881_v58, %v5421_v22 }
 0x23d   :  { %3558 = vmatpush.bf16.msrb.mxu3 %v5168_v35  ;;  %3586 = vmatpush.bf16.msra.mxu1 %v5296_v2 }
 0x23e   :  { %3600 = vmatpush.bf16.msra.mxu2 %v5360_v55  ;;  %3628 = vmatpush.bf16.msrb.mxu0 %v5488_v59 }
 0x241   :  { %3559 = vmatpush.bf16.msrb.mxu3 %v5160_v5  ;;  %3587 = vmatpush.bf16.msra.mxu1 %v5288_v41 }
 0x242   :  { %3601 = vmatpush.bf16.msra.mxu2 %v5352_v46  ;;  %3629 = vmatpush.bf16.msrb.mxu0 %v5480_v44 }
 0x245   :  { %3560 = vmatpush.bf16.msrb.mxu3 %v5152_v63  ;;  %3588 = vmatpush.bf16.msra.mxu1 %v5280_v25 }
 0x246   :  { %3602 = vmatpush.bf16.msra.mxu2 %v5344_v53  ;;  %3630 = vmatpush.bf16.msrb.mxu0 %v5472_v29 }
 0x249   :  { %3561 = vmatpush.bf16.msrb.mxu3 %v5144_v30  ;;  %3589 = vmatpush.bf16.msra.mxu1 %v5272_v1 }
 0x24a   :  { %3603 = vmatpush.bf16.msra.mxu2 %v5336_v8  ;;  %3631 = vmatpush.bf16.msrb.mxu0 %v5464_v10 }
 0x24c   :  { %3562 = vmatmul.bf16.vlgmr.msrb.gmra.mxu3 %v6329_v7  ;;  %3590 = vmatmul.bf16.vlgmr.msra.gmra.mxu1 %v6389_v47  ;;  %v5413_v7 = vld [vmem:[#allocation7 + $0x2a8] sm:$0xf0]  ;;  %v5405_v47 = vld [vmem:[#allocation7 + $0x298] sm:$0xf0] }
 0x24d   :  { %3610 = vmatpush.bf16.msra.mxu3 %v5456_v36  ;;  %3604 = vmatmul.bf16.vlgmr.msra.gmra.mxu2 %v6394_v32  ;;  %v5416_v18 = vor.u32 %v5879_v26, %v5413_v7  ;;  %v5408_v32 = vor.u32 %v5877_v9, %v5405_v47 }
 0x24e   :  { %3632 = vmatmul.bf16.vlgmr.msrb.gmra.mxu0 %v6392_v28  ;;  %v5397_v28 = vld [vmem:[#allocation7 + $0x288] sm:$0xf0] }
 0x24f   :  { %v5400_v35 = vor.u32 %v5875_v31, %v5397_v28 }
 0x251   :  { %3611 = vmatpush.bf16.msra.mxu3 %v5448_v15 }
 0x255   :  { %3612 = vmatpush.bf16.msra.mxu3 %v5440_v19 }
 0x259   :  { %3613 = vmatpush.bf16.msra.mxu3 %v5432_v16 }
 0x25d   :  { %3614 = vmatpush.bf16.msra.mxu3 %v5424_v23  ;;  %v3639_v23 = vld [vmem:[#allocation8 + $0x2] ss:$8 sm:$0x3] }
 0x25e   :  { %v3641_v31 = vperm.slane %v3639_v23, 0 }
 0x261   :  { %3615 = vmatpush.bf16.msra.mxu3 %v5416_v18 }
 0x265   :  { %3616 = vmatpush.bf16.msra.mxu3 %v5408_v32 }
 0x269   :  { %3617 = vmatpush.bf16.msra.mxu3 %v5400_v35  ;;  %v2771_v2 = vpop.f32.mrf.mxu1 }
 0x26a   :  { %v2813_v4 = vpop.f32.mrf.mxu0 }
 0x26c   :  { %3618 = vmatmul.bf16.vlgmr.msra.gmra.mxu3 %v6376_v54 }
 0x26f   :  { %v2785_v55 = vpop.f32.mrf.mxu2 }
 0x270   :  { %v2786_v61 = vadd.f32 %v2785_v55, %v2771_v2 }
 0x271   :  { %v2773_v33 = vpop.f32.mrf.mxu1 }
 0x272   :  { %v2815_v39 = vpop.f32.mrf.mxu0 }
 0x277   :  { %v2787_v59 = vpop.f32.mrf.mxu2 }
 0x278   :  { %v2788_v57 = vadd.f32 %v2787_v59, %v2773_v33  ;;  %v3642_v33 = vperm.slane %v3639_v23, 1 }
 0x279   :  { %v2827_v50 = vpop.f32.mrf.mxu1 }
 0x27a   :  { %v3465_v12 = vpop.f32.mrf.mxu0  ;;  %v2828_v62 = vadd.f32 %v2827_v50, %v2813_v4 }
 0x281   :  { %v2829_v41 = vpop.f32.mrf.mxu1 }
 0x282   :  { %v3467_v42 = vpop.f32.mrf.mxu0  ;;  %v2830_v14 = vadd.f32 %v2829_v41, %v2815_v39  ;;  %v3660_v39 = vld [vmem:[#allocation8 + $0x54] ss:$8 sm:$0x3] }
 0x28c   :  { %v3479_v3 = vpop.f32.mrf.mxu1  ;;  %v3521_v45 = vpop.f32.mrf.mxu0 }
 0x28f   :  { %v2799_v40 = vpop.f32.mrf.mxu3  ;;  %v2841_v24 = vpop.f32.mrf.mxu2 }
 0x290   :  { %v2800_v63 = vadd.f32 %v2799_v40, %v2786_v61  ;;  %v2842_v17 = vadd.f32 %v2841_v24, %v2828_v62  ;;  %v3743_v62 = vpop.xlane.xlu0 %3742 }
 0x294   :  { %v3481_v54 = vpop.f32.mrf.mxu1  ;;  %v3523_v48 = vpop.f32.mrf.mxu0 }
 0x297   :  { %v2801_v37 = vpop.f32.mrf.mxu3  ;;  %v2843_v46 = vpop.f32.mrf.mxu2 }
 0x298   :  { %v2802_v6 = vadd.f32 %v2801_v37, %v2788_v57  ;;  %v2844_v60 = vadd.f32 %v2843_v46, %v2830_v14 }
 0x29f   :  { %v3451_v5 = vpop.f32.mrf.mxu3  ;;  %v3493_v44 = vpop.f32.mrf.mxu2 }
 0x2a0   :  { %v3452_v53 = vadd.f32 %v3451_v5, %v2800_v63 }
 0x2a2   :  { %v3466_v49 = vadd.f32 %v3465_v12, %v3452_v53  ;;  %v3756_v12 = vperm.slane %v3660_v39, 0 }
 0x2a4   :  { %v3480_v0 = vadd.f32 %v3479_v3, %v3466_v49 }
 0x2a6   :  { %v3494_v8 = vadd.f32 %v3493_v44, %v3480_v0 }
 0x2a7   :  { %v3453_v43 = vpop.f32.mrf.mxu3  ;;  %v3495_v11 = vpop.f32.mrf.mxu2 }
 0x2a8   :  { %v3454_v13 = vadd.f32 %v3453_v43, %v2802_v6  ;;  %v3772_v6 = vld [vmem:[#allocation8 + $0x3] ss:$0 sm:$0xff] }
 0x2a9   :  { %v3535_v51 = vpop.f32.mrf.mxu1 }
 0x2aa   :  { %v3468_v10 = vadd.f32 %v3467_v42, %v3454_v13  ;;  %v3757_v42 = vperm.slane %v3660_v39, 1  ;;  %v3754_v13 = vpop.xlane.xlu0 %3753 }
 0x2ac   :  { %v3577_v29 = vpop.f32.mrf.mxu0  ;;  %v3482_v19 = vadd.f32 %v3481_v54, %v3468_v10 }
 0x2ae   :  { %v3496_v26 = vadd.f32 %v3495_v11, %v3482_v19 }
 0x2af   :  { %v3507_v20 = vpop.f32.mrf.mxu3 }
 0x2b0   :  { %v3508_v15 = vadd.f32 %v3507_v20, %v3494_v8 }
 0x2b1   :  { %v3537_v30 = vpop.f32.mrf.mxu1 }
 0x2b2   :  { %v3549_v38 = vpop.f32.mrf.mxu2  ;;  %v3522_v58 = vadd.f32 %v3521_v45, %v3508_v15 }
 0x2b3   :  { %v3550_v1 = vadd.f32 %v3549_v38, %v2842_v17 }
 0x2b4   :  { %v3579_v56 = vpop.f32.mrf.mxu0  ;;  %v3536_v47 = vadd.f32 %v3535_v51, %v3522_v58 }
 0x2b6   :  { %v3645_v59 = vadd.f32 %v3641_v31, %v3536_v47 }
 0x2b7   :  { %v3509_v25 = vpop.f32.mrf.mxu3 }
 0x2b8   :  { %v3510_v32 = vadd.f32 %v3509_v25, %v3496_v26  ;;  %v3649_v46 = vmax.f32 %v3645_v59, 0.0 }
 0x2ba   :  { %v3551_v27 = vpop.f32.mrf.mxu2  ;;  %v3524_v4 = vadd.f32 %v3523_v48, %v3510_v32  ;;  %v3760_v20 = vmul.f32 %v3756_v12, %v3649_v46 }
 0x2bb   :  { %v3552_v22 = vadd.f32 %v3551_v27, %v2844_v60 }
 0x2bc   :  { %v3538_v5 = vadd.f32 %v3537_v30, %v3524_v4 }
 0x2be   :  { %v3647_v61 = vadd.f32 %v3641_v31, %v3538_v5 }
 0x2c0   :  { %v3651_v53 = vmax.f32 %v3647_v61, 0.0 }
 0x2c2   :  { %v3762_v57 = vmul.f32 %v3756_v12, %v3651_v53 }
 0x2c9   :  { %v3591_v21 = vpop.f32.mrf.mxu1 }
 0x2cb   :  { %v3633_v2 = vpop.f32.mrf.mxu0 }
 0x2cf   :  { %v3563_v52 = vpop.f32.mrf.mxu3 }
 0x2d0   :  { %v3564_v36 = vadd.f32 %v3563_v52, %v3550_v1  ;;  %v3605_v9 = vpop.f32.mrf.mxu2 }
 0x2d1   :  { %v3593_v37 = vpop.f32.mrf.mxu1 }
 0x2d2   :  { %v3578_v34 = vadd.f32 %v3577_v29, %v3564_v36 }
 0x2d3   :  { %v3635_v48 = vpop.f32.mrf.mxu0 }
 0x2d4   :  { %v3592_v7 = vadd.f32 %v3591_v21, %v3578_v34 }
 0x2d6   :  { %v3606_v28 = vadd.f32 %v3605_v9, %v3592_v7 }
 0x2d7   :  { %v3565_v16 = vpop.f32.mrf.mxu3 }
 0x2d8   :  { %v3566_v18 = vadd.f32 %v3565_v16, %v3552_v22  ;;  %v3607_v3 = vpop.f32.mrf.mxu2 }
 0x2da   :  { %v3580_v35 = vadd.f32 %v3579_v56, %v3566_v18 }
 0x2dc   :  { %v3594_v50 = vadd.f32 %v3593_v37, %v3580_v35 }
 0x2de   :  { %v3608_v43 = vadd.f32 %v3607_v3, %v3594_v50 }
 0x2ef   :  { %v3619_v55 = vpop.f32.mrf.mxu3 }
 0x2f0   :  { %v3620_v40 = vadd.f32 %v3619_v55, %v3606_v28 }
 0x2f2   :  { %v3634_v24 = vadd.f32 %v3633_v2, %v3620_v40 }
 0x2f4   :  { %v3646_v41 = vadd.f32 %v3642_v33, %v3634_v24 }
 0x2f6   :  { %v3650_v44 = vmax.f32 %v3646_v41, 0.0 }
 0x2f7   :  { %v3621_v45 = vpop.f32.mrf.mxu3 }
 0x2f8   :  { %v3622_v54 = vadd.f32 %v3621_v45, %v3608_v43  ;;  %v3761_v11 = vmul.f32 %v3757_v42, %v3650_v44 }
 0x2fa   :  { %v3636_v63 = vadd.f32 %v3635_v48, %v3622_v54  ;;  %v3764_v51 = vadd.f32 %v3761_v11, %v3760_v20 }
 0x2fc   :  { %v3648_v25 = vadd.f32 %v3642_v33, %v3636_v63  ;;  %3765 = vadd.xlane.f32.xlu1 %v3764_v51 }
 0x2fe   :  { %v3652_v38 = vmax.f32 %v3648_v25, 0.0 }
 0x300   :  { %v3763_v49 = vmul.f32 %v3757_v42, %v3652_v38 }
 0x302   :  { %v3767_v29 = vadd.f32 %v3763_v49, %v3762_v57 }
 0x304   :  { %3768 = vadd.xlane.f32.xlu1 %v3767_v29 }
 0x36f   :  { %v3766_v52 = vpop.xlane.xlu1 %3765 }
 0x370   :  { %v3770_v17 = vadd.f32 %v3766_v52, %v3743_v62 }
 0x372   :  { %v3773_v0 = vadd.f32 %v3772_v6, %v3770_v17 }
 0x374   :  { %3776 = vst.msk [vmem:[%s6416_s5] sm:$0xff] %vm3775_vm0, %v3773_v0 }
 0x377   :  { %v3769_v30 = vpop.xlane.xlu1 %3768 }
 0x378   :  { %v3771_v1 = vadd.f32 %v3769_v30, %v3754_v13 }
 0x37a   :  { %v3774_v8 = vadd.f32 %v3772_v6, %v3771_v1 }
 0x37c   :  { %3777 = vst.msk [vmem:[%s6416_s5 + $0x8] sm:$0xff] %vm3775_vm0, %v3774_v8 }
 0x37d   :  { %3782 = vsyncpa [#allocation4], 1 }
 0x37e   :  { %3783 = vsyncpa [#allocation6], 1 }
 0x37f   :  { %3784 = vsyncpa [#allocation9], 1 }

</bundles_post_ra>
